<compile_context>
chip_gen: v7x
topology: tpu7x:2x2x1
jax: 0.10.0
libtpu: 0.0.40
codegen_flags: <defaults>
</compile_context>

<pallas_src>
import functools

import jax
import jax.numpy as jnp
from jax.experimental import pallas as pl
from jax.experimental.pallas import tpu as pltpu


NEG_SLOPE = 0.01  # F.leaky_relu default negative slope


def _mlp_encoder_kernel(x_ref, w1_ref, b1_ref, w2_ref, b2_ref, o_ref):
    # x_ref : (B, K1, D)   reshaped input, VMEM-resident (constant index_map)
    # w1_ref: (H, K1)      dense1 weight, columns pre-permuted (n,c) -> (c,n)
    # b1_ref: (H, 1)       dense1 bias (column vector, broadcasts over D)
    # w2_ref: (H, TN, D)   streamed dense2 weight row tile of the [H, O, D] layout
    # b2_ref: (1, TN)      dense2 bias tile
    # o_ref : (B, TN)      lane-dense output tile
    B = x_ref.shape[0]
    H = w1_ref.shape[0]
    TN = o_ref.shape[1]

    w1 = w1_ref[...]
    b1 = b1_ref[...]

    # ---- stage 1: dense1 + leaky_relu, lane-dense over D ----------------------
    # Recomputed every grid step (~1 MFLOP, free vs. the 2.5 MiB weight DMA) so the
    # grid axis stays "parallel" for megacore sharding.
    hs = []
    for b in range(B):
        hb = jnp.dot(w1, x_ref[b], preferred_element_type=jnp.float32) + b1  # (H, D)
        hs.append(jnp.where(hb > 0, hb, NEG_SLOPE * hb))

    # ---- stage 2: dense2 for this TN-wide output-column tile ------------------
    # out[b, t] = sum_{j,d} h[b, j, d] * w2[j, t, d]
    # (attention-style NT contractions over the lane dim D; w2_ref[j] read once per j)
    accs = [jnp.zeros((1, TN), jnp.float32) for _ in range(B)]
    for j in range(H):
        w2j = w2_ref[j]                                   # (TN, D)
        for b in range(B):
            accs[b] = accs[b] + jax.lax.dot_general(
                hs[b][j:j + 1, :], w2j,
                dimension_numbers=(((1,), (1,)), ((), ())),
                preferred_element_type=jnp.float32)

    b2 = b2_ref[...]
    for b in range(B):
        o_ref[b:b + 1, :] = (accs[b] + b2).astype(o_ref.dtype)


def prepare_mlp_encoder_params(w1, b1, w2, b2, *, num_sample=5, n_classes=10):
    """One-time (init-time) re-layout of the PyTorch Linear parameters.

    w1: [H, N*C]  dense1 weight (PyTorch [out, in]; in-index = n*C + c)
    b1: [H]
    w2: [O, D*H]  dense2 weight (PyTorch [out, in]; in-index = d*H + j)
    b2: [O]
    Returns (w1p, b1c, w2p, b2r) ready for the fused kernel.  Runs outside the
    per-call hot path, so its transposes cost nothing per forward pass.
    """
    H, K1 = w1.shape
    O, K2 = w2.shape
    N, C = num_sample, n_classes
    assert K1 == N * C, (K1, N, C)
    assert K2 % H == 0, (K2, H)
    D = K2 // H
    # dense1: permute columns from (n c) ordering to (c n) ordering so the kernel can
    # consume x.reshape(B, C*N, D) without any transpose of x.
    w1p = w1.reshape(H, N, C).transpose(0, 2, 1).reshape(H, C * N)
    b1c = b1.reshape(H, 1)
    # dense2: re-lay the contraction index (d*H + j) as [j, o, d] so the streamed row
    # tiles are contiguous in HBM and contract over the lane-dense D axis.
    w2p = w2.reshape(O, D, H).transpose(2, 0, 1)          # (H, O, D)
    b2r = b2.reshape(1, O)
    return w1p, b1c, w2p, b2r


@functools.partial(jax.jit, static_argnames=("in_ch", "in_res"))
def mlp_encoder(x, w1p, b1c, w2p, b2r, *, in_ch=1, in_res=32):
    """x: [B, C, N, D] f32; params from prepare_mlp_encoder_params."""
    B, C, N, D = x.shape
    H, O, D2 = w2p.shape
    K1 = C * N
    assert D2 == D and w1p.shape == (H, K1) and b1c.shape == (H, 1)
    assert b2r.shape == (1, O) and O == in_ch * in_res * in_res

    # Free reshape (rows are c-major, n-minor); no transpose of x in the hot path.
    x2 = x.reshape(B, K1, D)

    # Output-column tile: 128 gives an 8-step grid for O=1024 (>= 4 pipeline steps per
    # v7x TensorCore) and a 2.5 MiB weight tile (~5.2 MiB double-buffered, well inside
    # v5e's 16 MiB default scoped VMEM).  Full-O fallback is always layout-legal.
    TN = 128 if O % 128 == 0 else O
    assert O % TN == 0
    grid = (O // TN,)

    out = pl.pallas_call(
        _mlp_encoder_kernel,
        out_shape=jax.ShapeDtypeStruct((B, O), x.dtype),
        grid_spec=pltpu.PrefetchScalarGridSpec(
            num_scalar_prefetch=0,
            grid=grid,
            in_specs=[
                pl.BlockSpec((B, K1, D), lambda j: (0, 0, 0)),   # x, resident
                pl.BlockSpec((H, K1), lambda j: (0, 0)),         # w1p, resident
                pl.BlockSpec((H, 1), lambda j: (0, 0)),          # b1, resident
                pl.BlockSpec((H, TN, D), lambda j: (0, j, 0)),   # w2p row tile (stream)
                pl.BlockSpec((1, TN), lambda j: (0, j)),         # b2 tile
            ],
            out_specs=pl.BlockSpec((B, TN), lambda j: (0, j)),
        ),
        compiler_params=pltpu.CompilerParams(
            dimension_semantics=("parallel",)),
    )(x2, w1p, b1c, w2p, b2r)

    return out.reshape(B, in_ch, in_res, in_res)


if __name__ == "__main__":
    key = jax.random.PRNGKey(0)
    kx, kw1, kb1, kw2, kb2 = jax.random.split(key, 5)

    B = 2
    IN_CH, NUM_SAMPLE, IN_RES, N_CLASSES = 1, 5, 32, 10
    H = 10                              # dense1 output width
    D = 5120 // H                       # = 512, forced by dense2's input dim
    C, N = N_CLASSES, NUM_SAMPLE        # x layout: [B, C, N, D], C*N = 50
    K1 = NUM_SAMPLE * N_CLASSES         # 50
    K2 = D * H                          # 5120
    O = IN_CH * IN_RES * IN_RES         # 1024

    # Deterministic synthetic inputs / parameters (PyTorch Linear layout [out, in]).
    x = jax.random.normal(kx, (B, C, N, D), dtype=jnp.float32)
    w1 = jax.random.normal(kw1, (H, K1), dtype=jnp.float32) * 0.02
    b1 = jax.random.normal(kb1, (H,), dtype=jnp.float32) * 0.01
    w2 = jax.random.normal(kw2, (O, K2), dtype=jnp.float32) * 0.02
    b2 = jax.random.normal(kb2, (O,), dtype=jnp.float32) * 0.01

    # One-time parameter re-layout (init-time, outside the hot path).
    params = prepare_mlp_encoder_params(
        w1, b1, w2, b2, num_sample=NUM_SAMPLE, n_classes=N_CLASSES)

    out = mlp_encoder(x, *params, in_ch=IN_CH, in_res=IN_RES)
    out = jax.block_until_ready(out)

    # Pure-JAX reference (same math as the PyTorch module, original layouts).
    x1 = jnp.transpose(x, (0, 3, 2, 1)).reshape(B, D, K1)   # 'b c n d -> b d (n c)'
    href = jnp.einsum("bdk,hk->bdh", x1, w1) + b1
    href = jnp.where(href > 0, href, NEG_SLOPE * href)
    href = href.reshape(B, K2)                               # 'b d n -> b (d n)'
    ref = (href @ w2.T + b2).reshape(B, IN_CH, IN_RES, IN_RES)

    assert out.shape == (B, IN_CH, IN_RES, IN_RES)
    assert jnp.allclose(out, ref, atol=2e-4, rtol=2e-4)

    print("KERNEL_OK")
</pallas_src>

<mosaic_0001>
module attributes {stable_mosaic.version = 11 : i64} {
  func.func @_mlp_encoder_kernel(%arg0: i32, %arg1: memref<2x50x512xf32, #tpu.memory_space<vmem>>, %arg2: memref<10x50xf32, #tpu.memory_space<vmem>>, %arg3: memref<10x1xf32, #tpu.memory_space<vmem>>, %arg4: memref<10x128x512xf32, #tpu.memory_space<vmem>>, %arg5: memref<1x128xf32, #tpu.memory_space<vmem>>, %arg6: memref<2x128xf32, #tpu.memory_space<vmem>>) attributes {dimension_semantics = [#tpu.dimension_semantics<parallel>], iteration_bounds = array<i64: 8>, scalar_prefetch = 0 : i64, scratch_operands = 0 : i64, tpu.core_type = #tpu.core_type<tc>, window_params = [{pipeline_mode = #tpu.pipeline_mode<synchronous>, transform_indices = @transform_0, window_bounds = array<i64: 2, 50, 512>}, {pipeline_mode = #tpu.pipeline_mode<synchronous>, transform_indices = @transform_1, window_bounds = array<i64: 10, 50>}, {pipeline_mode = #tpu.pipeline_mode<synchronous>, transform_indices = @transform_2, window_bounds = array<i64: 10, 1>}, {transform_indices = @transform_3, window_bounds = array<i64: 10, 128, 512>}, {transform_indices = @transform_4, window_bounds = array<i64: 1, 128>}, {transform_indices = @transform_5, window_bounds = array<i64: 2, 128>}]} {
    %c0 = arith.constant 0 : index
    %c0_0 = arith.constant 0 : index
    %0 = vector.load %arg2[%c0, %c0_0] : memref<10x50xf32, #tpu.memory_space<vmem>>, vector<10x50xf32>
    %c0_1 = arith.constant 0 : index
    %c0_2 = arith.constant 0 : index
    %1 = vector.load %arg3[%c0_1, %c0_2] : memref<10x1xf32, #tpu.memory_space<vmem>>, vector<10x1xf32>
    %c0_3 = arith.constant 0 : index
    %c0_4 = arith.constant 0 : index
    %c0_5 = arith.constant 0 : index
    %2 = vector.load %arg1[%c0_3, %c0_4, %c0_5] : memref<2x50x512xf32, #tpu.memory_space<vmem>>, vector<1x50x512xf32>
    %3 = vector.shape_cast %2 : vector<1x50x512xf32> to vector<50x512xf32>
    %cst = arith.constant dense<0.000000e+00> : vector<10x512xf32>
    %4 = tpu.matmul %0, %3, %cst {dimension_numbers = #tpu.dot_dimension_numbers<[1], [0], [0], [1], [0, 0, 1, 1], [], []>} : vector<10x50xf32>, vector<50x512xf32>, vector<10x512xf32> -> vector<10x512xf32>
    %5 = vector.broadcast %1 : vector<10x1xf32> to vector<10x512xf32>
    %6 = arith.addf %4, %5 : vector<10x512xf32>
    %cst_6 = arith.constant 0.000000e+00 : f32
    %7 = vector.broadcast %cst_6 : f32 to vector<10x512xf32>
    %8 = arith.cmpf ogt, %6, %7 : vector<10x512xf32>
    %cst_7 = arith.constant 0.00999999977 : f32
    %9 = vector.broadcast %cst_7 : f32 to vector<10x512xf32>
    %10 = arith.mulf %9, %6 : vector<10x512xf32>
    %11 = arith.select %8, %6, %10 : vector<10x512xi1>, vector<10x512xf32>
    %c1 = arith.constant 1 : index
    %c0_8 = arith.constant 0 : index
    %c0_9 = arith.constant 0 : index
    %12 = vector.load %arg1[%c1, %c0_8, %c0_9] : memref<2x50x512xf32, #tpu.memory_space<vmem>>, vector<1x50x512xf32>
    %13 = vector.shape_cast %12 : vector<1x50x512xf32> to vector<50x512xf32>
    %cst_10 = arith.constant dense<0.000000e+00> : vector<10x512xf32>
    %14 = tpu.matmul %0, %13, %cst_10 {dimension_numbers = #tpu.dot_dimension_numbers<[1], [0], [0], [1], [0, 0, 1, 1], [], []>} : vector<10x50xf32>, vector<50x512xf32>, vector<10x512xf32> -> vector<10x512xf32>
    %15 = vector.broadcast %1 : vector<10x1xf32> to vector<10x512xf32>
    %16 = arith.addf %14, %15 : vector<10x512xf32>
    %cst_11 = arith.constant 0.000000e+00 : f32
    %17 = vector.broadcast %cst_11 : f32 to vector<10x512xf32>
    %18 = arith.cmpf ogt, %16, %17 : vector<10x512xf32>
    %cst_12 = arith.constant 0.00999999977 : f32
    %19 = vector.broadcast %cst_12 : f32 to vector<10x512xf32>
    %20 = arith.mulf %19, %16 : vector<10x512xf32>
    %21 = arith.select %18, %16, %20 : vector<10x512xi1>, vector<10x512xf32>
    %cst_13 = arith.constant 0.000000e+00 : f32
    %22 = vector.broadcast %cst_13 : f32 to vector<1x128xf32>
    %cst_14 = arith.constant 0.000000e+00 : f32
    %23 = vector.broadcast %cst_14 : f32 to vector<1x128xf32>
    %c0_15 = arith.constant 0 : index
    %c0_16 = arith.constant 0 : index
    %c0_17 = arith.constant 0 : index
    %24 = vector.load %arg4[%c0_15, %c0_16, %c0_17] : memref<10x128x512xf32, #tpu.memory_space<vmem>>, vector<1x128x512xf32>
    %25 = vector.shape_cast %24 : vector<1x128x512xf32> to vector<128x512xf32>
    %26 = vector.extract_strided_slice %11 {offsets = [0, 0], sizes = [1, 512], strides = [1, 1]} : vector<10x512xf32> to vector<1x512xf32>
    %cst_18 = arith.constant dense<0.000000e+00> : vector<1x128xf32>
    %27 = tpu.matmul %26, %25, %cst_18 {dimension_numbers = #tpu.dot_dimension_numbers<[1], [1], [0], [0], [0, 0, 1, 0], [], []>} : vector<1x512xf32>, vector<128x512xf32>, vector<1x128xf32> -> vector<1x128xf32>
    %28 = arith.addf %22, %27 : vector<1x128xf32>
    %29 = vector.extract_strided_slice %21 {offsets = [0, 0], sizes = [1, 512], strides = [1, 1]} : vector<10x512xf32> to vector<1x512xf32>
    %cst_19 = arith.constant dense<0.000000e+00> : vector<1x128xf32>
    %30 = tpu.matmul %29, %25, %cst_19 {dimension_numbers = #tpu.dot_dimension_numbers<[1], [1], [0], [0], [0, 0, 1, 0], [], []>} : vector<1x512xf32>, vector<128x512xf32>, vector<1x128xf32> -> vector<1x128xf32>
    %31 = arith.addf %23, %30 : vector<1x128xf32>
    %c1_20 = arith.constant 1 : index
    %c0_21 = arith.constant 0 : index
    %c0_22 = arith.constant 0 : index
    %32 = vector.load %arg4[%c1_20, %c0_21, %c0_22] : memref<10x128x512xf32, #tpu.memory_space<vmem>>, vector<1x128x512xf32>
    %33 = vector.shape_cast %32 : vector<1x128x512xf32> to vector<128x512xf32>
    %34 = vector.extract_strided_slice %11 {offsets = [1, 0], sizes = [1, 512], strides = [1, 1]} : vector<10x512xf32> to vector<1x512xf32>
    %cst_23 = arith.constant dense<0.000000e+00> : vector<1x128xf32>
    %35 = tpu.matmul %34, %33, %cst_23 {dimension_numbers = #tpu.dot_dimension_numbers<[1], [1], [0], [0], [0, 0, 1, 0], [], []>} : vector<1x512xf32>, vector<128x512xf32>, vector<1x128xf32> -> vector<1x128xf32>
    %36 = arith.addf %28, %35 : vector<1x128xf32>
    %37 = vector.extract_strided_slice %21 {offsets = [1, 0], sizes = [1, 512], strides = [1, 1]} : vector<10x512xf32> to vector<1x512xf32>
    %cst_24 = arith.constant dense<0.000000e+00> : vector<1x128xf32>
    %38 = tpu.matmul %37, %33, %cst_24 {dimension_numbers = #tpu.dot_dimension_numbers<[1], [1], [0], [0], [0, 0, 1, 0], [], []>} : vector<1x512xf32>, vector<128x512xf32>, vector<1x128xf32> -> vector<1x128xf32>
    %39 = arith.addf %31, %38 : vector<1x128xf32>
    %c2 = arith.constant 2 : index
    %c0_25 = arith.constant 0 : index
    %c0_26 = arith.constant 0 : index
    %40 = vector.load %arg4[%c2, %c0_25, %c0_26] : memref<10x128x512xf32, #tpu.memory_space<vmem>>, vector<1x128x512xf32>
    %41 = vector.shape_cast %40 : vector<1x128x512xf32> to vector<128x512xf32>
    %42 = vector.extract_strided_slice %11 {offsets = [2, 0], sizes = [1, 512], strides = [1, 1]} : vector<10x512xf32> to vector<1x512xf32>
    %cst_27 = arith.constant dense<0.000000e+00> : vector<1x128xf32>
    %43 = tpu.matmul %42, %41, %cst_27 {dimension_numbers = #tpu.dot_dimension_numbers<[1], [1], [0], [0], [0, 0, 1, 0], [], []>} : vector<1x512xf32>, vector<128x512xf32>, vector<1x128xf32> -> vector<1x128xf32>
    %44 = arith.addf %36, %43 : vector<1x128xf32>
    %45 = vector.extract_strided_slice %21 {offsets = [2, 0], sizes = [1, 512], strides = [1, 1]} : vector<10x512xf32> to vector<1x512xf32>
    %cst_28 = arith.constant dense<0.000000e+00> : vector<1x128xf32>
    %46 = tpu.matmul %45, %41, %cst_28 {dimension_numbers = #tpu.dot_dimension_numbers<[1], [1], [0], [0], [0, 0, 1, 0], [], []>} : vector<1x512xf32>, vector<128x512xf32>, vector<1x128xf32> -> vector<1x128xf32>
    %47 = arith.addf %39, %46 : vector<1x128xf32>
    %c3 = arith.constant 3 : index
    %c0_29 = arith.constant 0 : index
    %c0_30 = arith.constant 0 : index
    %48 = vector.load %arg4[%c3, %c0_29, %c0_30] : memref<10x128x512xf32, #tpu.memory_space<vmem>>, vector<1x128x512xf32>
    %49 = vector.shape_cast %48 : vector<1x128x512xf32> to vector<128x512xf32>
    %50 = vector.extract_strided_slice %11 {offsets = [3, 0], sizes = [1, 512], strides = [1, 1]} : vector<10x512xf32> to vector<1x512xf32>
    %cst_31 = arith.constant dense<0.000000e+00> : vector<1x128xf32>
    %51 = tpu.matmul %50, %49, %cst_31 {dimension_numbers = #tpu.dot_dimension_numbers<[1], [1], [0], [0], [0, 0, 1, 0], [], []>} : vector<1x512xf32>, vector<128x512xf32>, vector<1x128xf32> -> vector<1x128xf32>
    %52 = arith.addf %44, %51 : vector<1x128xf32>
    %53 = vector.extract_strided_slice %21 {offsets = [3, 0], sizes = [1, 512], strides = [1, 1]} : vector<10x512xf32> to vector<1x512xf32>
    %cst_32 = arith.constant dense<0.000000e+00> : vector<1x128xf32>
    %54 = tpu.matmul %53, %49, %cst_32 {dimension_numbers = #tpu.dot_dimension_numbers<[1], [1], [0], [0], [0, 0, 1, 0], [], []>} : vector<1x512xf32>, vector<128x512xf32>, vector<1x128xf32> -> vector<1x128xf32>
    %55 = arith.addf %47, %54 : vector<1x128xf32>
    %c4 = arith.constant 4 : index
    %c0_33 = arith.constant 0 : index
    %c0_34 = arith.constant 0 : index
    %56 = vector.load %arg4[%c4, %c0_33, %c0_34] : memref<10x128x512xf32, #tpu.memory_space<vmem>>, vector<1x128x512xf32>
    %57 = vector.shape_cast %56 : vector<1x128x512xf32> to vector<128x512xf32>
    %58 = vector.extract_strided_slice %11 {offsets = [4, 0], sizes = [1, 512], strides = [1, 1]} : vector<10x512xf32> to vector<1x512xf32>
    %cst_35 = arith.constant dense<0.000000e+00> : vector<1x128xf32>
    %59 = tpu.matmul %58, %57, %cst_35 {dimension_numbers = #tpu.dot_dimension_numbers<[1], [1], [0], [0], [0, 0, 1, 0], [], []>} : vector<1x512xf32>, vector<128x512xf32>, vector<1x128xf32> -> vector<1x128xf32>
    %60 = arith.addf %52, %59 : vector<1x128xf32>
    %61 = vector.extract_strided_slice %21 {offsets = [4, 0], sizes = [1, 512], strides = [1, 1]} : vector<10x512xf32> to vector<1x512xf32>
    %cst_36 = arith.constant dense<0.000000e+00> : vector<1x128xf32>
    %62 = tpu.matmul %61, %57, %cst_36 {dimension_numbers = #tpu.dot_dimension_numbers<[1], [1], [0], [0], [0, 0, 1, 0], [], []>} : vector<1x512xf32>, vector<128x512xf32>, vector<1x128xf32> -> vector<1x128xf32>
    %63 = arith.addf %55, %62 : vector<1x128xf32>
    %c5 = arith.constant 5 : index
    %c0_37 = arith.constant 0 : index
    %c0_38 = arith.constant 0 : index
    %64 = vector.load %arg4[%c5, %c0_37, %c0_38] : memref<10x128x512xf32, #tpu.memory_space<vmem>>, vector<1x128x512xf32>
    %65 = vector.shape_cast %64 : vector<1x128x512xf32> to vector<128x512xf32>
    %66 = vector.extract_strided_slice %11 {offsets = [5, 0], sizes = [1, 512], strides = [1, 1]} : vector<10x512xf32> to vector<1x512xf32>
    %cst_39 = arith.constant dense<0.000000e+00> : vector<1x128xf32>
    %67 = tpu.matmul %66, %65, %cst_39 {dimension_numbers = #tpu.dot_dimension_numbers<[1], [1], [0], [0], [0, 0, 1, 0], [], []>} : vector<1x512xf32>, vector<128x512xf32>, vector<1x128xf32> -> vector<1x128xf32>
    %68 = arith.addf %60, %67 : vector<1x128xf32>
    %69 = vector.extract_strided_slice %21 {offsets = [5, 0], sizes = [1, 512], strides = [1, 1]} : vector<10x512xf32> to vector<1x512xf32>
    %cst_40 = arith.constant dense<0.000000e+00> : vector<1x128xf32>
    %70 = tpu.matmul %69, %65, %cst_40 {dimension_numbers = #tpu.dot_dimension_numbers<[1], [1], [0], [0], [0, 0, 1, 0], [], []>} : vector<1x512xf32>, vector<128x512xf32>, vector<1x128xf32> -> vector<1x128xf32>
    %71 = arith.addf %63, %70 : vector<1x128xf32>
    %c6 = arith.constant 6 : index
    %c0_41 = arith.constant 0 : index
    %c0_42 = arith.constant 0 : index
    %72 = vector.load %arg4[%c6, %c0_41, %c0_42] : memref<10x128x512xf32, #tpu.memory_space<vmem>>, vector<1x128x512xf32>
    %73 = vector.shape_cast %72 : vector<1x128x512xf32> to vector<128x512xf32>
    %74 = vector.extract_strided_slice %11 {offsets = [6, 0], sizes = [1, 512], strides = [1, 1]} : vector<10x512xf32> to vector<1x512xf32>
    %cst_43 = arith.constant dense<0.000000e+00> : vector<1x128xf32>
    %75 = tpu.matmul %74, %73, %cst_43 {dimension_numbers = #tpu.dot_dimension_numbers<[1], [1], [0], [0], [0, 0, 1, 0], [], []>} : vector<1x512xf32>, vector<128x512xf32>, vector<1x128xf32> -> vector<1x128xf32>
    %76 = arith.addf %68, %75 : vector<1x128xf32>
    %77 = vector.extract_strided_slice %21 {offsets = [6, 0], sizes = [1, 512], strides = [1, 1]} : vector<10x512xf32> to vector<1x512xf32>
    %cst_44 = arith.constant dense<0.000000e+00> : vector<1x128xf32>
    %78 = tpu.matmul %77, %73, %cst_44 {dimension_numbers = #tpu.dot_dimension_numbers<[1], [1], [0], [0], [0, 0, 1, 0], [], []>} : vector<1x512xf32>, vector<128x512xf32>, vector<1x128xf32> -> vector<1x128xf32>
    %79 = arith.addf %71, %78 : vector<1x128xf32>
    %c7 = arith.constant 7 : index
    %c0_45 = arith.constant 0 : index
    %c0_46 = arith.constant 0 : index
    %80 = vector.load %arg4[%c7, %c0_45, %c0_46] : memref<10x128x512xf32, #tpu.memory_space<vmem>>, vector<1x128x512xf32>
    %81 = vector.shape_cast %80 : vector<1x128x512xf32> to vector<128x512xf32>
    %82 = vector.extract_strided_slice %11 {offsets = [7, 0], sizes = [1, 512], strides = [1, 1]} : vector<10x512xf32> to vector<1x512xf32>
    %cst_47 = arith.constant dense<0.000000e+00> : vector<1x128xf32>
    %83 = tpu.matmul %82, %81, %cst_47 {dimension_numbers = #tpu.dot_dimension_numbers<[1], [1], [0], [0], [0, 0, 1, 0], [], []>} : vector<1x512xf32>, vector<128x512xf32>, vector<1x128xf32> -> vector<1x128xf32>
    %84 = arith.addf %76, %83 : vector<1x128xf32>
    %85 = vector.extract_strided_slice %21 {offsets = [7, 0], sizes = [1, 512], strides = [1, 1]} : vector<10x512xf32> to vector<1x512xf32>
    %cst_48 = arith.constant dense<0.000000e+00> : vector<1x128xf32>
    %86 = tpu.matmul %85, %81, %cst_48 {dimension_numbers = #tpu.dot_dimension_numbers<[1], [1], [0], [0], [0, 0, 1, 0], [], []>} : vector<1x512xf32>, vector<128x512xf32>, vector<1x128xf32> -> vector<1x128xf32>
    %87 = arith.addf %79, %86 : vector<1x128xf32>
    %c8 = arith.constant 8 : index
    %c0_49 = arith.constant 0 : index
    %c0_50 = arith.constant 0 : index
    %88 = vector.load %arg4[%c8, %c0_49, %c0_50] : memref<10x128x512xf32, #tpu.memory_space<vmem>>, vector<1x128x512xf32>
    %89 = vector.shape_cast %88 : vector<1x128x512xf32> to vector<128x512xf32>
    %90 = vector.extract_strided_slice %11 {offsets = [8, 0], sizes = [1, 512], strides = [1, 1]} : vector<10x512xf32> to vector<1x512xf32>
    %cst_51 = arith.constant dense<0.000000e+00> : vector<1x128xf32>
    %91 = tpu.matmul %90, %89, %cst_51 {dimension_numbers = #tpu.dot_dimension_numbers<[1], [1], [0], [0], [0, 0, 1, 0], [], []>} : vector<1x512xf32>, vector<128x512xf32>, vector<1x128xf32> -> vector<1x128xf32>
    %92 = arith.addf %84, %91 : vector<1x128xf32>
    %93 = vector.extract_strided_slice %21 {offsets = [8, 0], sizes = [1, 512], strides = [1, 1]} : vector<10x512xf32> to vector<1x512xf32>
    %cst_52 = arith.constant dense<0.000000e+00> : vector<1x128xf32>
    %94 = tpu.matmul %93, %89, %cst_52 {dimension_numbers = #tpu.dot_dimension_numbers<[1], [1], [0], [0], [0, 0, 1, 0], [], []>} : vector<1x512xf32>, vector<128x512xf32>, vector<1x128xf32> -> vector<1x128xf32>
    %95 = arith.addf %87, %94 : vector<1x128xf32>
    %c9 = arith.constant 9 : index
    %c0_53 = arith.constant 0 : index
    %c0_54 = arith.constant 0 : index
    %96 = vector.load %arg4[%c9, %c0_53, %c0_54] : memref<10x128x512xf32, #tpu.memory_space<vmem>>, vector<1x128x512xf32>
    %97 = vector.shape_cast %96 : vector<1x128x512xf32> to vector<128x512xf32>
    %98 = vector.extract_strided_slice %11 {offsets = [9, 0], sizes = [1, 512], strides = [1, 1]} : vector<10x512xf32> to vector<1x512xf32>
    %cst_55 = arith.constant dense<0.000000e+00> : vector<1x128xf32>
    %99 = tpu.matmul %98, %97, %cst_55 {dimension_numbers = #tpu.dot_dimension_numbers<[1], [1], [0], [0], [0, 0, 1, 0], [], []>} : vector<1x512xf32>, vector<128x512xf32>, vector<1x128xf32> -> vector<1x128xf32>
    %100 = arith.addf %92, %99 : vector<1x128xf32>
    %101 = vector.extract_strided_slice %21 {offsets = [9, 0], sizes = [1, 512], strides = [1, 1]} : vector<10x512xf32> to vector<1x512xf32>
    %cst_56 = arith.constant dense<0.000000e+00> : vector<1x128xf32>
    %102 = tpu.matmul %101, %97, %cst_56 {dimension_numbers = #tpu.dot_dimension_numbers<[1], [1], [0], [0], [0, 0, 1, 0], [], []>} : vector<1x512xf32>, vector<128x512xf32>, vector<1x128xf32> -> vector<1x128xf32>
    %103 = arith.addf %95, %102 : vector<1x128xf32>
    %c0_57 = arith.constant 0 : index
    %c0_58 = arith.constant 0 : index
    %104 = vector.load %arg5[%c0_57, %c0_58] : memref<1x128xf32, #tpu.memory_space<vmem>>, vector<1x128xf32>
    %105 = arith.addf %100, %104 : vector<1x128xf32>
    %c0_59 = arith.constant 0 : index
    %c0_60 = arith.constant 0 : index
    %106 = vector.load %arg6[%c0_59, %c0_60] : memref<2x128xf32, #tpu.memory_space<vmem>>, vector<1x128xf32>
    tpu.vector_store %arg6[%c0_59, %c0_60], %105 {strides = array<i32>} : memref<2x128xf32, #tpu.memory_space<vmem>>, vector<1x128xf32>,
    %107 = arith.addf %103, %104 : vector<1x128xf32>
    %c1_61 = arith.constant 1 : index
    %c0_62 = arith.constant 0 : index
    %108 = vector.load %arg6[%c1_61, %c0_62] : memref<2x128xf32, #tpu.memory_space<vmem>>, vector<1x128xf32>
    tpu.vector_store %arg6[%c1_61, %c0_62], %107 {strides = array<i32>} : memref<2x128xf32, #tpu.memory_space<vmem>>, vector<1x128xf32>,
    return
  }
  func.func @transform_0(%arg0: i32) -> (i32, i32, i32) {
    %c0_i32 = arith.constant 0 : i32
    %c0_i32_0 = arith.constant 0 : i32
    %c0_i32_1 = arith.constant 0 : i32
    %c0_i32_2 = arith.constant 0 : i32
    return %c0_i32, %c0_i32_0, %c0_i32_1 : i32, i32, i32
  }
  func.func @transform_1(%arg0: i32) -> (i32, i32) {
    %c0_i32 = arith.constant 0 : i32
    %c0_i32_0 = arith.constant 0 : i32
    %c0_i32_1 = arith.constant 0 : i32
    return %c0_i32, %c0_i32_0 : i32, i32
  }
  func.func @transform_2(%arg0: i32) -> (i32, i32) {
    %c0_i32 = arith.constant 0 : i32
    %c0_i32_0 = arith.constant 0 : i32
    %c0_i32_1 = arith.constant 0 : i32
    return %c0_i32, %c0_i32_0 : i32, i32
  }
  func.func @transform_3(%arg0: i32) -> (i32, i32, i32) {
    %c0_i32 = arith.constant 0 : i32
    %c0_i32_0 = arith.constant 0 : i32
    %c0_i32_1 = arith.constant 0 : i32
    return %c0_i32, %arg0, %c0_i32_0 : i32, i32, i32
  }
  func.func @transform_4(%arg0: i32) -> (i32, i32) {
    %c0_i32 = arith.constant 0 : i32
    %c0_i32_0 = arith.constant 0 : i32
    return %c0_i32, %arg0 : i32, i32
  }
  func.func @transform_5(%arg0: i32) -> (i32, i32) {
    %c0_i32 = arith.constant 0 : i32
    %c0_i32_0 = arith.constant 0 : i32
    return %c0_i32, %arg0 : i32, i32
  }
}

</mosaic_0001>

<bundles_post_ra>
// kernel: mlp_encoder.1
= control target key start
LH: loop header
LB: loop body
LE: loop exit
PB: predicated region body
PF: predicated region fallthrough
CT: control target
= control target key end

     0   :  { %10 = vsyncpa [#allocation3], 0  ;;  %s8997_s0 = inlined_call_operand.vmem [shape: f32[2,50,512], index: 0, kind: input, shape index: {}]   ;;  %s8998_s1 = inlined_call_operand.hbm [shape: f32[10,50], index: 1, kind: input, shape index: {}]   ;;  %s8999_s2 = inlined_call_operand.vmem [shape: f32[10,1], index: 2, kind: input, shape index: {}]   ;;  %s9000_s3 = inlined_call_operand.hbm [shape: f32[10,1024,512], index: 3, kind: input, shape index: {}]   ;;  %s9001_s4 = inlined_call_operand.hbm [shape: f32[1,1024], index: 4, kind: input, shape index: {}]   ;;  %s9002_s5 = inlined_call_operand.vmem [shape: f32[2,1024], index: 5, kind: output, shape index: {}]  }
   0x1   :  { %11 = vsyncpa [#allocation5], 0 }
   0x2   :  { %13 = vsyncpa [#allocation5 + $0x1], 0  ;;  %s6653_s18 = smov 0   ;;  %s6655_s19 = smov 0  }
   0x3   :  { %s6657_s20 = smov 0   ;;  %s6659_s21 = smov 0  }
   0x4 LB: > { %s6672_s22 = sadd.s32 4294967295, %s6609_s21   ;;  %s6675_s23 = sadd.s32 1, %s6609_s21   ;;  %s6609_s21 = sphi %s6659_s21, %s9102_s21   ;;  %s6605_s20 = sphi %s6657_s20, %s9101_s20   ;;  %s6601_s19 = sphi %s6655_s19, %s9100_s19   ;;  %s6597_s18 = sphi %s6653_s18, %s9099_s18  }
   0x5   : > { %s86_s24 = ssub.s32 %s6609_s21, %s6675_s23  ;;  %s89_s25 = sadd.s32 1, %s6605_s20 }
   0x6   : > { %p87_p0 = scmp.eq.s32.totalorder %s86_s24, 0  ;;  %p96_p1 = scmp.ne.s32.totalorder %s6605_s20, %s6601_s19 }
   0x7   : > { %p97_p2 = scmp.eq.s32.totalorder %s6609_s21, 0  ;;  %p102_p3 = scmp.ne.s32.totalorder %s6601_s19, %s6597_s18 }
   0x8   : > { %s6685_s26 = scalar_select %p87_p0, %s6605_s20, %s89_s25  }
   0x9   : > { %p6687_p4 = por %p97_p2, %p96_p1  ;;  %p9003_p5 = scmp.eq.s32.totalorder %s6672_s22, 0 }
   0xa   : > { %p4484_p6 = scmp.ge.s32.totalorder %s6609_s21, 1  ;;  %p165_p7 = scmp.lt.s32.totalorder %s6609_s21, 9 }
   0xb   : > { %s9034_s27 = scalar_select %p6687_p4, 1, 0 }
   0xc   : > { %p6696_p8 = por %p9003_p5, %p102_p3  ;;  %p6700_p9 = pnand %p4484_p6, %p165_p7 }
   0xd   : > { %s6611_s30 = smov [#allocation2]   ;;  %s6515_s10 = scalar_lea.hbm %s8998_s1, 256 }
   0xe   : > { %s9035_s28 = scalar_select %p6696_p8, 1, 0 }
   0xf   : > { %s9036_s29 = scalar_select %p6700_p9, 1, 0 }
  0x10   : > { %s180_s6 = sshll.u32 %s6611_s30, 4  ;;  %p6465_p10 = pneg %p6700_p9  ;;  %s181_s6 = int_to_ptr.vmem [resolvable:$true] %s180_s6 }
  0x11   : > { %p6516_p12 = scmp.ne.s32.totalorder %s8998_s1, %s6515_s10  ;;  %p6522_p2 = scmp.lt.u32.totalorder %s6515_s10, %s8998_s1 }
  0x12   : > { %p6708_p11 = pnand %p6465_p10, %p9003_p5 }
  0x14   : > { %p6517_p13 = pneg %p6708_p11 }
  0x16   : > { %p6518_p0 = pnand %p6517_p13, %p6516_p12 }
  0x18   : > { %p6519_p1 = pneg %p6518_p0 }
  0x1a   : > { %p6524_p3 = pnand %p6522_p2, %p6519_p1 }
  0x1c   : > { %6527 = shalt.err (!%p6524_p3)
}
  0x1d   : > { %s6528_s15 = scalar_lea.vmem %s181_s6, 256  ;;  %p6536_p5 = scmp.lt.s32.totalorder %s181_s6, %s181_s6 }
  0x1e   : > { %p6529_p6 = scmp.ne.s32.totalorder %s181_s6, %s6528_s15  ;;  %p6537_p8 = scmp.lt.s32.totalorder %s6528_s15, %s6528_s15 }
  0x20   : > { %p6531_p7 = pnand %p6529_p6, %p6517_p13  ;;  %p6538_p9 = por %p6537_p8, %p6536_p5 }
  0x22   : > { %p6532_p10 = pneg %p6531_p7 }
  0x24   : > { %p6539_p4 = pnand %p6538_p9, %p6532_p10 }
  0x26   : > { %6542 = shalt.err (!%p6539_p4)
}
  0x27   : > { %s6612_s16 = smov 128   ;;  %s6613_s17 = smov 8  }
  0x28   : > { %6468 = dma.hbm_to_vmem [thread:$0]  (!%p6708_p11), %s8998_s1, 256, %s181_s6, [#allocation3], %s6612_s16, %s6612_s16, %s6613_s17  }
  0x29   : > { %p4486_p12 = scmp.ge.s32.totalorder %s6609_s21, 8 }
  0x2b   : > { %193 = sbr.rel (%p4486_p12) target bundleno = 88 (0x58), region = 28 }
  0x32   : > { %s197_s25 = sand.u32 1, %s6609_s21   ;;  %s199_s30 = sand.u32 1, %s6605_s20  }
  0x33   : > { %s6448_s8 = smul.u32 5120, %s199_s30  ;;  %s5119_s7 = sshll.u32 %s6609_s21, 13 }
  0x34   : > { %p9038_p4 = scmp.ne.s32.totalorder %s9034_s27, 0  ;;  %s208_s11 = scalar_lea.hbm %s9000_s3, %s5119_s7 }
  0x35   : > { %s6614_s12 = smov 65536   ;;  %s201_s14 = scalar_lea.vmem [#allocation4], %s6448_s8 }
  0x36   : > { %s6452_s9 = scalar_select %p9038_p4, [#allocation0], [#allocation9] }
  0x37   : > { %6453 = sst [smem:[#allocation8]] (%p9038_p4), %s6614_s12  ;;  %s221_s15 = sshll.u32 %s201_s14, 4  ;;  %s222_s15 = int_to_ptr.vmem [resolvable:$true] %s221_s15 }
  0x38   : > { %s213_s13 = sld [smem:[%s6452_s9]]   ;;  %s6615_s16 = smov 8192  }
  0x39   : > { %6454 = sst [smem:[#allocation8 + $0x1]] (%p9038_p4), %s6615_s16  ;;  %s6616_s17 = smov 16  }
  0x3a   : > { %6455 = sst [smem:[#allocation8 + $0x2]] (%p9038_p4), %s6616_s17  ;;  %s6617_s18 = smov 512  }
  0x3b   : > { %6456 = sst [smem:[#allocation8 + $0x3]] (%p9038_p4), %s6617_s18  ;;  %s6618_s7 = smov 32  }
  0x3c   : > { %6457 = sst [smem:[#allocation8 + $0x4]] (%p9038_p4), %s6617_s18  ;;  %s6749_s8 = scalar_lea.sflag [#allocation5], %s197_s25 }
  0x3d   : > { %6458 = sst [smem:[#allocation8 + $0x5]] (%p9038_p4), %s6618_s7  ;;  %s6619_s10 = smov [#allocation7]  }
  0x3e   : > { %s4490_s24 = sshll.u32 %s213_s13, 26  ;;  %s4492_s6 = sshll.u32 %s6609_s21, 4 }
  0x3f   : > { %s4491_s9 = sadd.s32 134217728, %s4490_s24  ;;  %s6758_s16 = scalar_lea.hbm %s9001_s4, %s4492_s6 }
  0x40   : > { %6459 = dma.general (%p9038_p4), %s208_s11, 81920, %s222_s15, %s6749_s8, %s6619_s10, [#allocation8], %s4491_s9, 0  }
  0x41   : > { %s247_s13 = scalar_lea.vmem [#allocation6], %s199_s30  ;;  %s6543_s25 = scalar_lea.hbm %s6758_s16, 16 }
  0x42   : > { %s254_s17 = sshll.u32 %s247_s13, 4  ;;  %p6544_p5 = scmp.ne.s32.totalorder %s6758_s16, %s6543_s25  ;;  %s255_s17 = int_to_ptr.vmem [resolvable:$true] %s254_s17 }
  0x43   : > { %s6547_s21 = scalar_lea.hbm %s9001_s4, 128  ;;  %p6548_p11 = scmp.lt.u32.totalorder %s6758_s16, %s9001_s4 }
  0x44   : > { %p6545_p8 = pnand %p6544_p5, %p9038_p4  ;;  %p6549_p13 = scmp.lt.u32.totalorder %s6547_s21, %s6543_s25 }
  0x45   : > { %p6551_p1 = scmp.lt.u32.totalorder %s6543_s25, %s6758_s16 }
  0x46   : > { %p6546_p9 = pneg %p6545_p8  ;;  %p6550_p0 = por %p6549_p13, %p6548_p11 }
  0x48   : > { %p6552_p2 = por %p6551_p1, %p6550_p0 }
  0x4a   : > { %p6553_p3 = pnand %p6552_p2, %p6546_p9 }
  0x4c   : > { %6556 = shalt.err (!%p6553_p3)
}
  0x4d   : > { %s6557_s30 = scalar_lea.vmem %s255_s17, 16  ;;  %s6620_s7 = smov [#allocation6]  }
  0x4e   : > { %p6558_p6 = scmp.ne.s32.totalorder %s255_s17, %s6557_s30  ;;  %s6561_s9 = sshll.u32 %s6620_s7, 4  ;;  %s6562_s9 = int_to_ptr.vmem [resolvable:$false] %s6561_s9 }
  0x4f   : > { %s6563_s10 = scalar_lea.vmem %s6562_s9, 32  ;;  %p6564_p12 = scmp.lt.s32.totalorder %s255_s17, %s6562_s9 }
  0x50   : > { %p6559_p7 = pnand %p6558_p6, %p9038_p4  ;;  %p6565_p5 = scmp.lt.s32.totalorder %s6563_s10, %s6557_s30 }
  0x52   : > { %p6560_p10 = pneg %p6559_p7  ;;  %p6566_p8 = por %p6565_p5, %p6564_p12 }
  0x54   : > { %p6567_p11 = pnand %p6566_p8, %p6560_p10 }
  0x56   : > { %6570 = shalt.err (!%p6567_p11)
}
  0x57   : > { %6460 = dma.hbm_to_vmem [thread:$0]  (%p9038_p4), %s6758_s16, 16, %s255_s17, %s6749_s8  }
  0x58 PF: > { %p9039_p9 = scmp.ne.s32.totalorder %s9036_s29, 0 }
  0x5a   : > { %263 = sbr.rel (%p9039_p9) target bundleno = 1780 (0x6f4), region = 40 }
  0x61   : > { %p9040_p13 = scmp.eq.s32.totalorder %s6672_s22, 0 }
  0x63   : > { %6588 = dma.done.wait (%p9040_p13), [#allocation3], 256   ;;  %p9041_p0 = pmov %p9040_p13 }
  0x64   : > { %s269_s6 = sand.u32 1, %s6672_s22   ;;  %s271_s12 = sand.u32 1, %s6601_s19  }
  0x65   : > { %6590 = vsyncadd (%p9041_p0), [#allocation3], 4294967040  ;;  %s6449_s27 = smul.u32 5120, %s271_s12  ;;  %s270_s14 = scalar_lea.sflag [#allocation5], %s269_s6 }
  0x66   : > { %p9042_p4 = scmp.ne.s32.totalorder %s9035_s28, 0 }
  0x67   : > { %s6788_s8 = scalar_lea.vmem [#allocation4], %s6449_s27 }
  0x68   : > { %6592 = dma.done.wait (%p9042_p4), %s270_s14, 81936  }
  0x69   : > { %6594 = vsyncadd (%p9042_p4), %s270_s14, 4294885360  ;;  %v6621_v0 = vmov 0.0   ;;  %v6622_v1 = vmov 0   ;;  %v321_v2 = vld [vmem:[%s8997_s0 + $0x8] sm:$0xff]  ;;  %v323_v4 = vld [vmem:[%s8997_s0 + $0x18] sm:$0xff]  ;;  %vm365_vm0 = vcmask 1041408  }
  0x6a   : > { %442 = vmatprep.mubr.f32.mxu0 %v6621_v0  ;;  %519 = vmatprep.mubr.f32.mxu1 %v6621_v0  ;;  %v325_v3 = vld [vmem:[%s8997_s0 + $0x28] sm:$0xff]  ;;  %v327_v6 = vld [vmem:[%s8997_s0 + $0x38] sm:$0xff]  ;;  %v320_v7 = vld [vmem:[%s8997_s0] sm:$0xff]  ;;  %vm358_vm1 = vcmask 408576   ;;  %p312_p1 = scmp.lt.s32.totalorder %s6672_s22, 7  ;;  %s281_s21 = scalar_lea.vmem [#allocation6], %s271_s12 }
  0x6b   : > { %6514 = vset.pattern.permute.xlu0 %v6622_v1  ;;  %v5120_v5 = vpack.c.bf16 %v325_v3, %v321_v2  ;;  %v324_v8 = vld [vmem:[%s8997_s0 + $0x20] sm:$0xff]  ;;  %v5132_v9 = vpack.c.bf16 %v327_v6, %v323_v4  ;;  %v322_v11 = vld [vmem:[%s8997_s0 + $0x10] sm:$0xff]  ;;  %v329_v13 = vld [vmem:[%s8997_s0 + $0x48] sm:$0xff] }
  0x6c   : > { %v5122_v10 = vpack.c.bf16 %v324_v8, %v320_v7  ;;  %v326_v12 = vld [vmem:[%s8997_s0 + $0x30] sm:$0xff]  ;;  %v333_v15 = vld [vmem:[%s8997_s0 + $0x68] sm:$0xff]  ;;  %v331_v16 = vld [vmem:[%s8997_s0 + $0x58] sm:$0xff]  ;;  %s9104_s22 = smov (!%p312_p1, %s6672_s22), 7 }
  0x6d   : > { %5121 = vmatprep.subr.bf16.mxu0 %v5120_v5  ;;  %v5134_v14 = vpack.c.bf16 %v326_v12, %v322_v11  ;;  %v335_v17 = vld [vmem:[%s8997_s0 + $0x78] sm:$0xff]  ;;  %5133 = vmatprep.subr.bf16.mxu1 %v5132_v9  ;;  %v5124_v18 = vpack.c.bf16 %v333_v15, %v329_v13  ;;  %v328_v20 = vld [vmem:[%s8997_s0 + $0x40] sm:$0xff]  ;;  %v330_v22 = vld [vmem:[%s8997_s0 + $0x50] sm:$0xff] }
  0x6e   : > { %5123 = vmatpush1.bf16.msra.mxu0 %v5122_v10  ;;  %v5136_v19 = vpack.c.bf16 %v335_v17, %v331_v16  ;;  %v332_v21 = vld [vmem:[%s8997_s0 + $0x60] sm:$0xff]  ;;  %v334_v24 = vld [vmem:[%s8997_s0 + $0x70] sm:$0xff]  ;;  %v337_v25 = vld [vmem:[%s8997_s0 + $0x88] sm:$0xff] }
  0x6f   : > { %5135 = vmatpush1.bf16.msra.mxu1 %v5134_v14  ;;  %v5126_v23 = vpack.c.bf16 %v332_v21, %v328_v20  ;;  %v341_v26 = vld [vmem:[%s8997_s0 + $0xa8] sm:$0xff]  ;;  %5125 = vmatprep.subr.bf16.mxu0 %v5124_v18  ;;  %v5138_v27 = vpack.c.bf16 %v334_v24, %v330_v22  ;;  %v339_v29 = vld [vmem:[%s8997_s0 + $0x98] sm:$0xff]  ;;  %v336_v31 = vld [vmem:[%s8997_s0 + $0x80] sm:$0xff] }
  0x70   : > { %5137 = vmatprep.subr.bf16.mxu1 %v5136_v19  ;;  %v5128_v28 = vpack.c.bf16 %v341_v26, %v337_v25  ;;  %v343_v30 = vld [vmem:[%s8997_s0 + $0xb8] sm:$0xff]  ;;  %v340_v33 = vld [vmem:[%s8997_s0 + $0xa0] sm:$0xff]  ;;  %v338_v34 = vld [vmem:[%s8997_s0 + $0x90] sm:$0xff] }
  0x71   : > { %v5140_v32 = vpack.c.bf16 %v343_v30, %v339_v29  ;;  %v342_v35 = vld [vmem:[%s8997_s0 + $0xb0] sm:$0xff]  ;;  %v5130_v36 = vpack.c.bf16 %v340_v33, %v336_v31  ;;  %v345_v38 = vld [vmem:[%s8997_s0 + $0xc8] sm:$0x3]  ;;  %v347_v39 = vld [vmem:[%s8997_s0 + $0xd8] sm:$0x3] }
  0x72   : > { %5127 = vmatpush1.bf16.msra.mxu0 %v5126_v23  ;;  %v5142_v37 = vpack.c.bf16 %v342_v35, %v338_v34  ;;  %v4505_v40 = vld [vmem:[%s8997_s0 + $0xe8] sm:$0xff]  ;;  %v4507_v42 = vld [vmem:[%s8997_s0 + $0xf8] sm:$0xff]  ;;  %v4504_v44 = vld [vmem:[%s8997_s0 + $0xe0] sm:$0xff] }
  0x73   : > { %5139 = vmatpush1.bf16.msra.mxu1 %v5138_v27  ;;  %5129 = vmatprep.subr.bf16.mxu0 %v5128_v28  ;;  %v4509_v41 = vld [vmem:[%s8997_s0 + $0x108] sm:$0xff]  ;;  %v4511_v43 = vld [vmem:[%s8997_s0 + $0x118] sm:$0xff]  ;;  %v4508_v45 = vld [vmem:[%s8997_s0 + $0x100] sm:$0xff] }
  0x74   : > { %5141 = vmatprep.subr.bf16.mxu1 %v5140_v32  ;;  %v344_v46 = vld [vmem:[%s8997_s0 + $0xc0] sm:$0x3]  ;;  %v4506_v47 = vld [vmem:[%s8997_s0 + $0xf0] sm:$0xff]  ;;  %v5144_v51 = vpack.c.bf16 %v4509_v41, %v4505_v40  ;;  %v4513_v52 = vld [vmem:[%s8997_s0 + $0x128] sm:$0xff]  ;;  %v5156_v53 = vpack.c.bf16 %v4511_v43, %v4507_v42  ;;  %v5146_v54 = vpack.c.bf16 %v4508_v45, %v4504_v44 }
  0x75   : > { %v4510_v48 = vld [vmem:[%s8997_s0 + $0x110] sm:$0xff]  ;;  %v6906_v50 = vld [vmem:[#allocation2] sm:$0xff]  ;;  %v4517_v55 = vld [vmem:[%s8997_s0 + $0x148] sm:$0xff] }
  0x76   : > { %5131 = vmatpush1.bf16.msra.mxu0 %v5130_v36  ;;  %v346_v49 = vld [vmem:[%s8997_s0 + $0xd0] sm:$0x3]  ;;  %v4515_v56 = vld [vmem:[%s8997_s0 + $0x138] sm:$0xff]  ;;  %v5158_v58 = vpack.c.bf16 %v4510_v48, %v4506_v47  ;;  %v4512_v59 = vld [vmem:[%s8997_s0 + $0x120] sm:$0xff]  ;;  %v5148_v3 = vpack.c.bf16 %v4517_v55, %v4513_v52 }
  0x77   : > { %5143 = vmatpush1.bf16.msra.mxu1 %v5142_v37  ;;  %4496 = vmatprep.subr.msk.mxu0 %vm365_vm0, %v345_v38  ;;  %v4519_v57 = vld [vmem:[%s8997_s0 + $0x158] sm:$0xff]  ;;  %v4516_v60 = vld [vmem:[%s8997_s0 + $0x140] sm:$0xff]  ;;  %v4514_v61 = vld [vmem:[%s8997_s0 + $0x130] sm:$0xff] }
  0x78   : > { %4500 = vmatprep.subr.msk.mxu1 %vm365_vm0, %v347_v39  ;;  %v4518_v62 = vld [vmem:[%s8997_s0 + $0x150] sm:$0xff]  ;;  %v4521_v63 = vld [vmem:[%s8997_s0 + $0x168] sm:$0xff]  ;;  %v4523_v4 = vld [vmem:[%s8997_s0 + $0x178] sm:$0xff]  ;;  %v5160_v6 = vpack.c.bf16 %v4519_v57, %v4515_v56  ;;  %v5150_v7 = vpack.c.bf16 %v4516_v60, %v4512_v59 }
  0x79   : > { %v4525_v1 = vld [vmem:[%s8997_s0 + $0x188] sm:$0xff]  ;;  %v4527_v5 = vld [vmem:[%s8997_s0 + $0x198] sm:$0xff]  ;;  %v5162_v8 = vpack.c.bf16 %v4518_v62, %v4514_v61  ;;  %v4520_v10 = vld [vmem:[%s8997_s0 + $0x160] sm:$0xff] }
  0x7a   : > { %4497 = vmatpush1.msk.msra.mxu0 %vm365_vm0, %v344_v46  ;;  %v6944_v2 = vld [vmem:[#allocation2 + $0x8] sm:$0x3]  ;;  %v5152_v9 = vpack.c.bf16 %v4525_v1, %v4521_v63  ;;  %v4524_v11 = vld [vmem:[%s8997_s0 + $0x180] sm:$0xff]  ;;  %v5164_v12 = vpack.c.bf16 %v4527_v5, %v4523_v4  ;;  %v4522_v13 = vld [vmem:[%s8997_s0 + $0x170] sm:$0xff] }
  0x7b   : > { %4501 = vmatpush1.msk.msra.mxu1 %vm365_vm0, %v346_v49  ;;  %4498 = vmatmul.mubr.msk.f32.vlgmr.msra.gmra.mrb[0].mxu0 %vm358_vm1, %v6906_v50  ;;  %v4526_v14 = vld [vmem:[%s8997_s0 + $0x190] sm:$0xff]  ;;  %v5154_v15 = vpack.c.bf16 %v4524_v11, %v4520_v10  ;;  %v318_v16 = vld [vmem:[%s8999_s2] sm:$0xff]  ;;  %v4529_v18 = vld [vmem:[%s8997_s0 + $0x1a8] sm:$0x3] }
  0x7c   : > { %4502 = vmatmul.mubr.msk.f32.vlgmr.msra.gmra.mrb[0].mxu1 %vm358_vm1, %v6906_v50  ;;  %5145 = vmatprep.subr.bf16.mxu0 %v5144_v51  ;;  %v5166_v17 = vpack.c.bf16 %v4526_v14, %v4522_v13  ;;  %v4531_v19 = vld [vmem:[%s8997_s0 + $0x1b8] sm:$0x3]  ;;  %v319_v20 = vld [vmem:[%s8999_s2 + $0x8] sm:$0x3]  ;;  %v4528_v23 = vld [vmem:[%s8997_s0 + $0x1a0] sm:$0x3] }
  0x7d   : > { %5157 = vmatprep.subr.bf16.mxu1 %v5156_v53  ;;  %5147 = vmatpush1.bf16.msra.mxu0 %v5146_v54  ;;  %v4541_v21 = vld [vmem:[%s6788_s8 + $0x208] sm:$0xff]  ;;  %v4543_v24 = vld [vmem:[%s6788_s8 + $0x218] sm:$0xff]  ;;  %v4530_v26 = vld [vmem:[%s8997_s0 + $0x1b0] sm:$0x3] }
  0x7e   : > { %5159 = vmatpush1.bf16.msra.mxu1 %v5158_v58  ;;  %448 = vmatprep.mubr.f32.mxu0 %v6621_v0  ;;  %v4545_v22 = vld [vmem:[%s6788_s8 + $0x228] sm:$0xff]  ;;  %v4547_v25 = vld [vmem:[%s6788_s8 + $0x238] sm:$0xff]  ;;  %v4540_v29 = vld [vmem:[%s6788_s8 + $0x200] sm:$0xff] }
  0x7f   : > { %525 = vmatprep.mubr.f32.mxu1 %v6621_v0  ;;  %4499 = vmatmul.mubr.msk.f32.gmra.mrb[2].mxu0 %vm358_vm1, %v6944_v2  ;;  %v6996_v27 = vpack.c.bf16 %v4545_v22, %v4541_v21  ;;  %v6999_v28 = vpack.c.bf16 %v4547_v25, %v4543_v24  ;;  %v4544_v30 = vld [vmem:[%s6788_s8 + $0x220] sm:$0xff]  ;;  %v4542_v31 = vld [vmem:[%s6788_s8 + $0x210] sm:$0xff]  ;;  %v4549_v33 = vld [vmem:[%s6788_s8 + $0x248] sm:$0xff] }
  0x80   : > { %4503 = vmatmul.mubr.msk.f32.gmra.mrb[2].mxu1 %vm358_vm1, %v6944_v2  ;;  %5149 = vmatprep.subr.bf16.mxu0 %v5148_v3  ;;  %v4546_v32 = vld [vmem:[%s6788_s8 + $0x230] sm:$0xff]  ;;  %v4553_v34 = vld [vmem:[%s6788_s8 + $0x268] sm:$0xff]  ;;  %v4551_v35 = vld [vmem:[%s6788_s8 + $0x258] sm:$0xff]  ;;  %v7017_v37 = vpack.c.bf16 %v4544_v30, %v4540_v29 }
  0x81   : > { %5161 = vmatprep.subr.bf16.mxu1 %v5160_v6  ;;  %5151 = vmatpush1.bf16.msra.mxu0 %v5150_v7  ;;  %v4555_v36 = vld [vmem:[%s6788_s8 + $0x278] sm:$0xff]  ;;  %v7020_v38 = vpack.c.bf16 %v4546_v32, %v4542_v31  ;;  %v7022_v39 = vpack.c.bf16 %v4553_v34, %v4549_v33  ;;  %v4552_v41 = vld [vmem:[%s6788_s8 + $0x260] sm:$0xff]  ;;  %v4550_v42 = vld [vmem:[%s6788_s8 + $0x250] sm:$0xff] }
  0x82   : > { %5163 = vmatpush1.bf16.msra.mxu1 %v5162_v8  ;;  %5153 = vmatprep.subr.bf16.mxu0 %v5152_v9  ;;  %v7026_v40 = vpack.c.bf16 %v4555_v36, %v4551_v35  ;;  %v4554_v43 = vld [vmem:[%s6788_s8 + $0x270] sm:$0xff]  ;;  %v4557_v44 = vld [vmem:[%s6788_s8 + $0x288] sm:$0xff]  ;;  %v4559_v46 = vld [vmem:[%s6788_s8 + $0x298] sm:$0xff] }
  0x83   : > { %5165 = vmatprep.subr.bf16.mxu1 %v5164_v12  ;;  %661 = vmatprep.mubr.f32.mxu0 %v6621_v0  ;;  %v4561_v45 = vld [vmem:[%s6788_s8 + $0x2a8] sm:$0xff]  ;;  %v4563_v47 = vld [vmem:[%s6788_s8 + $0x2b8] sm:$0xff]  ;;  %v7044_v49 = vpack.c.bf16 %v4554_v43, %v4550_v42  ;;  %v4556_v52 = vld [vmem:[%s6788_s8 + $0x280] sm:$0xff] }
  0x84   : > { %738 = vmatprep.mubr.f32.mxu1 %v6621_v0  ;;  %350 = vperm.xlu0 %6514, %v318_v16   ;;  %v7048_v51 = vpack.c.bf16 %v4563_v47, %v4559_v46  ;;  %v4560_v53 = vld [vmem:[%s6788_s8 + $0x2a0] sm:$0xff]  ;;  %v4558_v54 = vld [vmem:[%s6788_s8 + $0x290] sm:$0xff]  ;;  %v4565_v56 = vld [vmem:[%s6788_s8 + $0x2c8] sm:$0xff] }
  0x85   : > { %5155 = vmatpush1.bf16.msra.mxu0 %v5154_v15  ;;  %v4562_v55 = vld [vmem:[%s6788_s8 + $0x2b0] sm:$0xff]  ;;  %v4569_v57 = vld [vmem:[%s6788_s8 + $0x2e8] sm:$0xff]  ;;  %v4567_v58 = vld [vmem:[%s6788_s8 + $0x2d8] sm:$0xff]  ;;  %v7062_v60 = vpack.c.bf16 %v4560_v53, %v4556_v52 }
  0x86   : > { %5167 = vmatpush1.bf16.msra.mxu1 %v5166_v17  ;;  %4532 = vmatprep.subr.msk.mxu0 %vm365_vm0, %v4529_v18  ;;  %v4571_v59 = vld [vmem:[%s6788_s8 + $0x2f8] sm:$0xff]  ;;  %v7064_v61 = vpack.c.bf16 %v4562_v55, %v4558_v54  ;;  %v7066_v62 = vpack.c.bf16 %v4569_v57, %v4565_v56  ;;  %v4564_v1 = vld [vmem:[%s6788_s8 + $0x2c0] sm:$0xff]  ;;  %v4566_v3 = vld [vmem:[%s6788_s8 + $0x2d0] sm:$0xff] }
  0x87   : > { %4536 = vmatprep.subr.msk.mxu1 %vm365_vm0, %v4531_v19  ;;  %v7068_v63 = vpack.c.bf16 %v4571_v59, %v4567_v58  ;;  %v4570_v4 = vld [vmem:[%s6788_s8 + $0x2f0] sm:$0xff]  ;;  %v4573_v5 = vld [vmem:[%s6788_s8 + $0x308] sm:$0xff]  ;;  %v4575_v7 = vld [vmem:[%s6788_s8 + $0x318] sm:$0xff] }
  0x88   : > { %355 = vperm.xlu0 %6514, %v319_v20   ;;  %v4577_v6 = vld [vmem:[%s6788_s8 + $0x328] sm:$0xff]  ;;  %v4579_v8 = vld [vmem:[%s6788_s8 + $0x338] sm:$0xff]  ;;  %v7084_v10 = vpack.c.bf16 %v4570_v4, %v4566_v3  ;;  %v4572_v13 = vld [vmem:[%s6788_s8 + $0x300] sm:$0xff] }
  0x89   : > { %4533 = vmatpush1.msk.msra.mxu0 %vm365_vm0, %v4528_v23  ;;  %v7086_v11 = vpack.c.bf16 %v4577_v6, %v4573_v5  ;;  %v7088_v12 = vpack.c.bf16 %v4579_v8, %v4575_v7  ;;  %v4576_v14 = vld [vmem:[%s6788_s8 + $0x320] sm:$0xff]  ;;  %v4574_v15 = vld [vmem:[%s6788_s8 + $0x310] sm:$0xff]  ;;  %v4581_v17 = vld [vmem:[%s6788_s8 + $0x348] sm:$0xff] }
  0x8a   : > { %4537 = vmatpush1.msk.msra.mxu1 %vm365_vm0, %v4530_v26  ;;  %4534 = vmatmul.mubr.msk.f32.vlgmr.msra.gmra.mrb[4].mxu0 %vm358_vm1, %v6906_v50  ;;  %v4578_v16 = vld [vmem:[%s6788_s8 + $0x330] sm:$0xff]  ;;  %v4585_v18 = vld [vmem:[%s6788_s8 + $0x368] sm:$0xff]  ;;  %v4583_v19 = vld [vmem:[%s6788_s8 + $0x358] sm:$0xff]  ;;  %v7102_v21 = vpack.c.bf16 %v4576_v14, %v4572_v13 }
  0x8b   : > { %4538 = vmatmul.mubr.msk.f32.vlgmr.msra.gmra.mrb[4].mxu1 %vm358_vm1, %v6906_v50  ;;  %667 = vmatprep.mubr.f32.mxu0 %v6621_v0  ;;  %v7046_v50 = vpack.c.bf16 %v4561_v45, %v4557_v44  ;;  %v4587_v20 = vld [vmem:[%s6788_s8 + $0x378] sm:$0xff]  ;;  %v7104_v22 = vpack.c.bf16 %v4578_v16, %v4574_v15  ;;  %v7106_v23 = vpack.c.bf16 %v4585_v18, %v4581_v17  ;;  %v4580_v25 = vld [vmem:[%s6788_s8 + $0x340] sm:$0xff]  ;;  %v4582_v29 = vld [vmem:[%s6788_s8 + $0x350] sm:$0xff] }
  0x8c   : > { %744 = vmatprep.mubr.f32.mxu1 %v6621_v0  ;;  %5169 = vmatprep.subr.bf16.mxu0 %v6996_v27  ;;  %v4548_v0 = vld [vmem:[%s6788_s8 + $0x240] sm:$0xff]  ;;  %v7108_v24 = vpack.c.bf16 %v4587_v20, %v4583_v19  ;;  %v4586_v30 = vld [vmem:[%s6788_s8 + $0x370] sm:$0xff]  ;;  %v4589_v31 = vld [vmem:[%s6788_s8 + $0x388] sm:$0xff] }
  0x8d   : > { %5201 = vmatprep.subr.bf16.mxu1 %v6999_v28  ;;  %v7042_v48 = vpack.c.bf16 %v4552_v41, %v4548_v0  ;;  %v4584_v26 = vld [vmem:[%s6788_s8 + $0x360] sm:$0xff]  ;;  %v4593_v32 = vld [vmem:[%s6788_s8 + $0x3a8] sm:$0xff]  ;;  %v4591_v33 = vld [vmem:[%s6788_s8 + $0x398] sm:$0xff]  ;;  %v7124_v36 = vpack.c.bf16 %v4586_v30, %v4582_v29 }
  0x8e   : > { %4535 = vmatmul.mubr.msk.f32.gmra.mrb[6].mxu0 %vm358_vm1, %v6944_v2  ;;  %v4595_v34 = vld [vmem:[%s6788_s8 + $0x3b8] sm:$0xff]  ;;  %v7122_v35 = vpack.c.bf16 %v4584_v26, %v4580_v25  ;;  %v7126_v0 = vpack.c.bf16 %v4593_v32, %v4589_v31  ;;  %v4588_v42 = vld [vmem:[%s6788_s8 + $0x380] sm:$0xff]  ;;  %v4590_v44 = vld [vmem:[%s6788_s8 + $0x390] sm:$0xff] }
  0x8f   : > { %4539 = vmatmul.mubr.msk.f32.gmra.mrb[6].mxu1 %vm358_vm1, %v6944_v2  ;;  %v4568_v2 = vld [vmem:[%s6788_s8 + $0x2e0] sm:$0xff]  ;;  %v7128_v41 = vpack.c.bf16 %v4595_v34, %v4591_v33  ;;  %v4594_v45 = vld [vmem:[%s6788_s8 + $0x3b0] sm:$0xff]  ;;  %v4597_v52 = vld [vmem:[%s6788_s8 + $0x3c8] sm:$0xff] }
  0x90   : > { %5171 = vmatpush1.bf16.xpose.msra.mxu0 %v7017_v37  ;;  %v7082_v9 = vpack.c.bf16 %v4568_v2, %v4564_v1  ;;  %v4592_v43 = vld [vmem:[%s6788_s8 + $0x3a0] sm:$0xff]  ;;  %v7140_v47 = vpack.c.bf16 %v4594_v45, %v4590_v44  ;;  %v4601_v53 = vld [vmem:[%s6788_s8 + $0x3e8] sm:$0xff]  ;;  %v4599_v54 = vld [vmem:[%s6788_s8 + $0x3d8] sm:$0xff] }
  0x91   : > { %5203 = vmatpush1.bf16.xpose.msra.mxu1 %v7020_v38  ;;  %5173 = vmatprep.subr.bf16.mxu0 %v7022_v39  ;;  %v7138_v46 = vpack.c.bf16 %v4592_v43, %v4588_v42  ;;  %v7147_v55 = vpack.c.bf16 %v4601_v53, %v4597_v52  ;;  %v4603_v56 = vld [vmem:[%s6788_s8 + $0x3f8] sm:$0xff]  ;;  %v4596_v57 = vld [vmem:[%s6788_s8 + $0x3c0] sm:$0xff]  ;;  %v4598_v2 = vld [vmem:[%s6788_s8 + $0x3d0] sm:$0xff] }
  0x92   : > { %5205 = vmatprep.subr.bf16.mxu1 %v7026_v40  ;;  %v4600_v58 = vld [vmem:[%s6788_s8 + $0x3e0] sm:$0xff]  ;;  %v7152_v59 = vpack.c.bf16 %v4603_v56, %v4599_v54  ;;  %v4602_v3 = vld [vmem:[%s6788_s8 + $0x3f0] sm:$0xff]  ;;  %v776_v5 = vld [vmem:[%s6788_s8 + $0x8] sm:$0xff] }
  0x93   : > { %v7154_v1 = vpack.c.bf16 %v4600_v58, %v4596_v57  ;;  %v7159_v4 = vpack.c.bf16 %v4602_v3, %v4598_v2  ;;  %v780_v6 = vld [vmem:[%s6788_s8 + $0x28] sm:$0xff]  ;;  %v778_v7 = vld [vmem:[%s6788_s8 + $0x18] sm:$0xff]  ;;  %v775_v31 = vld [vmem:[%s6788_s8] sm:$0xff] }
  0x94   : > { %v7167_v8 = vpack.c.bf16 %v780_v6, %v776_v5  ;;  %v782_v13 = vld [vmem:[%s6788_s8 + $0x38] sm:$0xff]  ;;  %v779_v44 = vld [vmem:[%s6788_s8 + $0x20] sm:$0xff]  ;;  %v777_v56 = vld [vmem:[%s6788_s8 + $0x10] sm:$0xff] }
  0x95   : > { %v7170_v14 = vpack.c.bf16 %v782_v13, %v778_v7  ;;  %v781_v57 = vld [vmem:[%s6788_s8 + $0x30] sm:$0xff]  ;;  %v784_v5 = vld [vmem:[%s6788_s8 + $0x48] sm:$0xff]  ;;  %v7203_v7 = vpack.c.bf16 %v779_v44, %v775_v31  ;;  %v786_v13 = vld [vmem:[%s6788_s8 + $0x58] sm:$0xff] }
  0x96   : > { %v788_v6 = vld [vmem:[%s6788_s8 + $0x68] sm:$0xff]  ;;  %v785_v31 = vld [vmem:[%s6788_s8 + $0x50] sm:$0xff] }
  0x97   : > { %v796_v44 = vld [vmem:[%s6788_s8 + $0xa8] sm:$0xff] }
  0x98   : > { %5175 = vmatpush1.bf16.xpose.msra.mxu0 %v7042_v48 }
  0x99   : > { %5207 = vmatpush1.bf16.xpose.msra.mxu1 %v7044_v49  ;;  %5177 = vmatprep.subr.bf16.mxu0 %v7046_v50 }
  0x9a   : > { %5209 = vmatprep.subr.bf16.mxu1 %v7048_v51 }
  0xa0   : > { %5179 = vmatpush1.bf16.xpose.msra.mxu0 %v7062_v60 }
  0xa1   : > { %5211 = vmatpush1.bf16.xpose.msra.mxu1 %v7064_v61  ;;  %5181 = vmatprep.subr.bf16.mxu0 %v7066_v62 }
  0xa2   : > { %5213 = vmatprep.subr.bf16.mxu1 %v7068_v63 }
  0xa8   : > { %5183 = vmatpush1.bf16.xpose.msra.mxu0 %v7082_v9 }
  0xa9   : > { %5215 = vmatpush1.bf16.xpose.msra.mxu1 %v7084_v10  ;;  %5185 = vmatprep.subr.bf16.mxu0 %v7086_v11 }
  0xaa   : > { %5217 = vmatprep.subr.bf16.mxu1 %v7088_v12 }
  0xb0   : > { %5187 = vmatpush1.bf16.xpose.msra.mxu0 %v7102_v21 }
  0xb1   : > { %5219 = vmatpush1.bf16.xpose.msra.mxu1 %v7104_v22  ;;  %5189 = vmatprep.subr.bf16.mxu0 %v7106_v23 }
  0xb2   : > { %5221 = vmatprep.subr.bf16.mxu1 %v7108_v24 }
  0xb8   : > { %5191 = vmatpush1.bf16.xpose.msra.mxu0 %v7122_v35 }
  0xb9   : > { %5223 = vmatpush1.bf16.xpose.msra.mxu1 %v7124_v36  ;;  %5193 = vmatprep.subr.bf16.mxu0 %v7126_v0 }
  0xba   : > { %5225 = vmatprep.subr.bf16.mxu1 %v7128_v41 }
  0xc0   : > { %5195 = vmatpush1.bf16.xpose.msra.mxu0 %v7138_v46 }
  0xc1   : > { %5227 = vmatpush1.bf16.xpose.msra.mxu1 %v7140_v47  ;;  %5197 = vmatprep.subr.bf16.mxu0 %v7147_v55 }
  0xc2   : > { %5229 = vmatprep.subr.bf16.mxu1 %v7152_v59 }
  0xc8   : > { %5199 = vmatpush1.bf16.xpose.msra.mxu0 %v7154_v1 }
  0xc9   : > { %5231 = vmatpush1.bf16.xpose.msra.mxu1 %v7159_v4  ;;  %5233 = vmatprep.subr.bf16.mxu0 %v7167_v8 }
  0xca   : > { %5265 = vmatprep.subr.bf16.mxu1 %v7170_v14 }
 0x103   : > { %v7174_v15 = vpop.permute.xlu0 %350 }
 0x14e   : > { %v444_v16 = vpop.f32.mrb[0].mxu0 }
 0x14f   : > { %v445_v17 = vadd.f32 %v444_v16, %v7174_v15  ;;  %v521_v18 = vpop.f32.mrb[0].mxu1  ;;  %v446_v19 = vpop.f32.mrb[1].mxu0  ;;  %v790_v16 = vld [vmem:[%s6788_s8 + $0x78] sm:$0xff] }
 0x150   : > { %v522_v20 = vadd.f32 %v521_v18, %v7174_v15  ;;  %v447_v25 = vadd.f32 %v446_v19, %v7174_v15  ;;  %v523_v26 = vpop.f32.mrb[1].mxu1  ;;  %v7209_v19 = vpack.c.bf16 %v781_v57, %v777_v56  ;;  %v794_v56 = vld [vmem:[%s6788_s8 + $0x98] sm:$0xff] }
 0x151   : > { %vm532_vm2 = vcmp.gt.f32.partialorder %v445_v17, 0.0  ;;  %v540_v29 = vmul.f32 0.01, %v445_v17  ;;  %v524_v30 = vadd.f32 %v523_v26, %v7174_v15  ;;  %v7214_v26 = vpack.c.bf16 %v790_v16, %v786_v13  ;;  %v798_v57 = vld [vmem:[%s6788_s8 + $0xb8] sm:$0xff] }
 0x152   : > { %vm534_vm3 = vcmp.gt.f32.partialorder %v522_v20, 0.0  ;;  %v542_v32 = vmul.f32 0.01, %v522_v20  ;;  %vm533_vm4 = vcmp.gt.f32.partialorder %v447_v25, 0.0  ;;  %v541_v33 = vmul.f32 0.01, %v447_v25 }
 0x153   : > { %vm535_vm5 = vcmp.gt.f32.partialorder %v524_v30, 0.0  ;;  %v543_v34 = vmul.f32 0.01, %v524_v30  ;;  %v7181_v42 = vpop.f32.mrb[2].mxu0  ;;  %v7183_v43 = vpop.f32.mrb[2].mxu1  ;;  %v7186_v45 = vsel %vm532_vm2, %v445_v17, %v540_v29  ;;  %v783_v29 = vld [vmem:[%s6788_s8 + $0x40] sm:$0xff] }
 0x154   : > { %9043 = vst [vmem:[#allocation12_spill] sm:$0xff] %v7181_v42  ;;  %9044 = vst [vmem:[#allocation13_spill] sm:$0xff] %v7183_v43  ;;  %v7188_v52 = vsel %vm533_vm4, %v447_v25, %v541_v33  ;;  %v7190_v53 = vpop.f32.mrb[3].mxu0  ;;  %v7192_v54 = vpop.f32.mrb[3].mxu1  ;;  %v7196_v58 = vsel %vm534_vm3, %v522_v20, %v542_v32  ;;  %v908_v18 = vrot.slane %v7186_v45, 1  ;;  %v7212_v25 = vpack.c.bf16 %v788_v6, %v784_v5  ;;  %v789_v32 = vld [vmem:[%s6788_s8 + $0x70] sm:$0xff] }
 0x155   : > { %9045 = vst [vmem:[#allocation14_spill] sm:$0xff] %v7188_v52  ;;  %9046 = vst [vmem:[#allocation15_spill] sm:$0xff] %v7190_v53  ;;  %v7198_v2 = vsel %vm535_vm5, %v524_v30, %v543_v34  ;;  %v909_v3 = vrot.slane %v7188_v52, 1  ;;  %v910_v20 = vrot.slane %v7196_v58, 1  ;;  %v787_v30 = vld [vmem:[%s6788_s8 + $0x60] sm:$0xff]  ;;  %v792_v33 = vld [vmem:[%s6788_s8 + $0x88] sm:$0xff]  ;;  %v7240_v16 = vpack.c.bf16 %v789_v32, %v785_v31 }
 0x156   : > { %9047 = vst [vmem:[#allocation16_spill] sm:$0xff] %v7192_v54  ;;  %9048 = vst [vmem:[#allocation17_spill] sm:$0xff] %v7198_v2  ;;  %v911_v17 = vrot.slane %v7198_v2, 1  ;;  %v7236_v6 = vpack.c.bf16 %v787_v30, %v783_v29 }
 0x157   : > { %980 = vmatprep.mubr.f32.mxu0 %v909_v3 }
 0x158   : > { %1050 = vmatprep.mubr.f32.mxu1 %v911_v17  ;;  %981 = vmatmul.mubr.f32.vlgmr.msra.gmra.mrb[8].mxu0 %v908_v18  ;;  %v7242_v17 = vpack.c.bf16 %v796_v44, %v792_v33  ;;  %v7244_v18 = vpack.c.bf16 %v798_v57, %v794_v56  ;;  %v791_v33 = vld [vmem:[%s6788_s8 + $0x80] sm:$0xff]  ;;  %v793_v56 = vld [vmem:[%s6788_s8 + $0x90] sm:$0xff] }
 0x159   : > { %1051 = vmatmul.mubr.f32.vlgmr.msra.gmra.mrb[8].mxu1 %v910_v20  ;;  %5235 = vmatpush1.bf16.xpose.msra.mxu0 %v7203_v7  ;;  %v7246_v20 = vpop.permute.xlu0 %355  ;;  %v795_v44 = vld [vmem:[%s6788_s8 + $0xa0] sm:$0xff] }
 0x15a   : > { %5267 = vmatpush1.bf16.xpose.msra.mxu1 %v7209_v19  ;;  %1120 = vmatprep.mubr.f32.mxu0 %v7188_v52  ;;  %9049 = vst [vmem:[#allocation18_spill] sm:$0xff] %v7244_v18  ;;  %9050 = vst [vmem:[#allocation19_spill] sm:$0xff] %v7246_v20  ;;  %v801_v52 = vld [vmem:[%s6788_s8 + $0xd0] sm:$0xff] }
 0x15b   : > { %1190 = vmatprep.mubr.f32.mxu1 %v7198_v2  ;;  %5237 = vmatprep.subr.bf16.mxu0 %v7212_v25  ;;  %v803_v2 = vld [vmem:[%s6788_s8 + $0xe0] sm:$0xff] }
 0x15c   : > { %5269 = vmatprep.subr.bf16.mxu1 %v7214_v26 }
 0x15d   : > { %v7226_v34 = vpop.f32.mrb[4].mxu0 }
 0x15e   : > { %v7232_v3 = vpop.f32.mrb[4].mxu1  ;;  %v7234_v5 = vpop.f32.mrb[5].mxu0 }
 0x15f   : > { %v7238_v13 = vpop.f32.mrb[5].mxu1 }
 0x161   : > { %v669_v43 = vpop.f32.mrb[6].mxu0  ;;  %5239 = vmatpush1.bf16.xpose.msra.mxu0 %v7236_v6 }
 0x162   : > { %v746_v42 = vpop.f32.mrb[6].mxu1  ;;  %v7250_v29 = vadd.f32 %v669_v43, %v7246_v20  ;;  %5271 = vmatpush1.bf16.xpose.msra.mxu1 %v7240_v16  ;;  %v671_v31 = vpop.f32.mrb[7].mxu0  ;;  %5241 = vmatprep.subr.bf16.mxu0 %v7242_v17  ;;  %v800_v43 = vld [vmem:[%s6788_s8 + $0xc8] sm:$0xff] }
 0x163   : > { %v7253_v30 = vadd.f32 %v746_v42, %v7246_v20  ;;  %v748_v32 = vpop.f32.mrb[7].mxu1  ;;  %v7260_v57 = vadd.f32 %v671_v31, %v7246_v20  ;;  %5273 = vmatprep.subr.bf16.mxu1 %v7244_v18  ;;  %v797_v42 = vld [vmem:[%s6788_s8 + $0xb0] sm:$0xff]  ;;  %v806_v31 = vld [vmem:[%s6788_s8 + $0xf8] sm:$0xff] }
 0x164   : > { %9051 = vst [vmem:[#allocation20_spill] sm:$0xff] %v7250_v29  ;;  %v7263_v54 = vadd.f32 %v748_v32, %v7246_v20  ;;  %v802_v29 = vld [vmem:[%s6788_s8 + $0xd8] sm:$0xff]  ;;  %v7274_v32 = vpack.c.bf16 %v797_v42, %v793_v56  ;;  %v799_v20 = vld [vmem:[%s6788_s8 + $0xc0] sm:$0xff]  ;;  %v837_v18 = vld [vmem:[%s6788_s8 + $0x1f0] sm:$0xff] }
 0x165   : > { %9052 = vst [vmem:[#allocation21_spill] sm:$0xff] %v7253_v30  ;;  %9053 = vst [vmem:[#allocation22_spill] sm:$0xff] %v7260_v57  ;;  %v804_v30 = vld [vmem:[%s6788_s8 + $0xe8] sm:$0xff]  ;;  %v7272_v57 = vpack.c.bf16 %v795_v44, %v791_v33  ;;  %v7278_v53 = vpack.c.bf16 %v806_v31, %v802_v29  ;;  %v805_v33 = vld [vmem:[%s6788_s8 + $0xf0] sm:$0xff]  ;;  %v7292_v42 = vpack.c.bf16 %v803_v2, %v799_v20 }
 0x166   : > { %9054 = vst [vmem:[#allocation23_spill] sm:$0xff] %v7263_v54  ;;  %9056 = vst [vmem:[#allocation25_spill] sm:$0xff] %v7274_v32  ;;  %v7276_v54 = vpack.c.bf16 %v804_v30, %v800_v43  ;;  %v808_v30 = vld [vmem:[%s6788_s8 + $0x108] sm:$0xff]  ;;  %v810_v44 = vld [vmem:[%s6788_s8 + $0x118] sm:$0xff]  ;;  %v7294_v43 = vpack.c.bf16 %v805_v33, %v801_v52 }
 0x167   : > { %9055 = vst [vmem:[#allocation24_spill] sm:$0xff] %v7272_v57  ;;  %9058 = vst [vmem:[#allocation27_spill] sm:$0xff] %v7278_v53  ;;  %v812_v29 = vld [vmem:[%s6788_s8 + $0x128] sm:$0xff]  ;;  %v814_v56 = vld [vmem:[%s6788_s8 + $0x138] sm:$0xff] }
 0x168   : > { %9057 = vst [vmem:[#allocation26_spill] sm:$0xff] %v7276_v54  ;;  %9059 = vst [vmem:[#allocation28_spill] sm:$0xff] %v7292_v42  ;;  %v7296_v31 = vpack.c.bf16 %v812_v29, %v808_v30  ;;  %v813_v52 = vld [vmem:[%s6788_s8 + $0x130] sm:$0xff]  ;;  %v816_v2 = vld [vmem:[%s6788_s8 + $0x148] sm:$0xff] }
 0x169   : > { %5243 = vmatpush1.bf16.xpose.msra.mxu0 %v7272_v57  ;;  %9060 = vst [vmem:[#allocation29_spill] sm:$0xff] %v7294_v43  ;;  %v809_v57 = vld [vmem:[%s6788_s8 + $0x110] sm:$0xff]  ;;  %v820_v20 = vld [vmem:[%s6788_s8 + $0x168] sm:$0xff]  ;;  %v818_v33 = vld [vmem:[%s6788_s8 + $0x158] sm:$0xff] }
 0x16a   : > { %5275 = vmatpush1.bf16.xpose.msra.mxu1 %v7274_v32  ;;  %5245 = vmatprep.subr.bf16.mxu0 %v7276_v54  ;;  %9061 = vst [vmem:[#allocation30_spill] sm:$0xff] %v7296_v31  ;;  %v7298_v54 = vpack.c.bf16 %v814_v56, %v810_v44  ;;  %v811_v32 = vld [vmem:[%s6788_s8 + $0x120] sm:$0xff]  ;;  %v822_v30 = vld [vmem:[%s6788_s8 + $0x178] sm:$0xff]  ;;  %v7314_v44 = vpack.c.bf16 %v813_v52, %v809_v57  ;;  %v824_v57 = vld [vmem:[%s6788_s8 + $0x188] sm:$0xff] }
 0x16b   : > { %5277 = vmatprep.subr.bf16.mxu1 %v7278_v53  ;;  %v807_v53 = vld [vmem:[%s6788_s8 + $0x100] sm:$0xff]  ;;  %v7316_v56 = vpack.c.bf16 %v820_v20, %v816_v2  ;;  %v826_v52 = vld [vmem:[%s6788_s8 + $0x198] sm:$0xff] }
 0x16c   : > { %9062 = vst [vmem:[#allocation31_spill] sm:$0xff] %v7298_v54  ;;  %v7312_v29 = vpack.c.bf16 %v811_v32, %v807_v53  ;;  %9064 = vst [vmem:[#allocation33_spill] sm:$0xff] %v7314_v44  ;;  %v821_v53 = vld [vmem:[%s6788_s8 + $0x170] sm:$0xff]  ;;  %v828_v32 = vld [vmem:[%s6788_s8 + $0x1a8] sm:$0xff] }
 0x16d   : > { %9065 = vst [vmem:[#allocation34_spill] sm:$0xff] %v7316_v56  ;;  %v830_v2 = vld [vmem:[%s6788_s8 + $0x1b8] sm:$0xff] }
 0x16e   : > { %9063 = vst [vmem:[#allocation32_spill] sm:$0xff] %v7312_v29 }
 0x171   : > { %5247 = vmatpush1.bf16.xpose.msra.mxu0 %v7292_v42  ;;  %v817_v42 = vld [vmem:[%s6788_s8 + $0x150] sm:$0xff] }
 0x172   : > { %5279 = vmatpush1.bf16.xpose.msra.mxu1 %v7294_v43  ;;  %5249 = vmatprep.subr.bf16.mxu0 %v7296_v31  ;;  %v7318_v31 = vpack.c.bf16 %v822_v30, %v818_v33  ;;  %v819_v43 = vld [vmem:[%s6788_s8 + $0x160] sm:$0xff]  ;;  %v7334_v33 = vpack.c.bf16 %v821_v53, %v817_v42  ;;  %v7336_v30 = vpack.c.bf16 %v828_v32, %v824_v57  ;;  %v832_v42 = vld [vmem:[%s6788_s8 + $0x1c8] sm:$0xff]  ;;  %v834_v53 = vld [vmem:[%s6788_s8 + $0x1d8] sm:$0xff] }
 0x173   : > { %5281 = vmatprep.subr.bf16.mxu1 %v7298_v54  ;;  %v815_v54 = vld [vmem:[%s6788_s8 + $0x140] sm:$0xff]  ;;  %v838_v57 = vld [vmem:[%s6788_s8 + $0x1f8] sm:$0xff] }
 0x174   : > { %9066 = vst [vmem:[#allocation35_spill] sm:$0xff] %v7318_v31  ;;  %v7332_v20 = vpack.c.bf16 %v819_v43, %v815_v54  ;;  %9068 = vst [vmem:[#allocation37_spill] sm:$0xff] %v7334_v33  ;;  %v829_v54 = vld [vmem:[%s6788_s8 + $0x1b0] sm:$0xff]  ;;  %v836_v43 = vld [vmem:[%s6788_s8 + $0x1e8] sm:$0xff] }
 0x175   : > { %9069 = vst [vmem:[#allocation38_spill] sm:$0xff] %v7336_v30 }
 0x176   : > { %9067 = vst [vmem:[#allocation36_spill] sm:$0xff] %v7332_v20 }
 0x179   : > { %5251 = vmatpush1.bf16.xpose.msra.mxu0 %v7312_v29  ;;  %v825_v29 = vld [vmem:[%s6788_s8 + $0x190] sm:$0xff] }
 0x17a   : > { %5283 = vmatpush1.bf16.xpose.msra.mxu1 %v7314_v44  ;;  %5253 = vmatprep.subr.bf16.mxu0 %v7316_v56  ;;  %v7338_v56 = vpack.c.bf16 %v830_v2, %v826_v52  ;;  %v827_v44 = vld [vmem:[%s6788_s8 + $0x1a0] sm:$0xff]  ;;  %v7354_v52 = vpack.c.bf16 %v829_v54, %v825_v29  ;;  %v7356_v2 = vpack.c.bf16 %v836_v43, %v832_v42 }
 0x17b   : > { %5285 = vmatprep.subr.bf16.mxu1 %v7318_v31  ;;  %v823_v31 = vld [vmem:[%s6788_s8 + $0x180] sm:$0xff] }
 0x17c   : > { %9070 = vst [vmem:[#allocation39_spill] sm:$0xff] %v7338_v56  ;;  %v7352_v32 = vpack.c.bf16 %v827_v44, %v823_v31  ;;  %v666_v31 = vadd.f32 %v7234_v5, %v7174_v15  ;;  %v743_v44 = vadd.f32 %v7238_v13, %v7174_v15 }
 0x17e   : > { %v760_v42 = vmul.f32 0.01, %v666_v31  ;;  %vm752_vm6 = vcmp.gt.f32.partialorder %v666_v31, 0.0  ;;  %v762_v43 = vmul.f32 0.01, %v743_v44  ;;  %vm754_vm7 = vcmp.gt.f32.partialorder %v743_v44, 0.0 }
 0x180   : > { %v7380_v5 = vsel %vm752_vm6, %v666_v31, %v760_v42  ;;  %v4625_v31 = vld [vmem:[%s6788_s8 + $0x4a8] sm:$0xff] }
 0x181   : > { %5255 = vmatpush1.bf16.xpose.msra.mxu0 %v7332_v20  ;;  %v833_v20 = vld [vmem:[%s6788_s8 + $0x1d0] sm:$0xff]  ;;  %v1201_v13 = vrot.slane %v7380_v5, 1 }
 0x182   : > { %5287 = vmatpush1.bf16.xpose.msra.mxu1 %v7334_v33  ;;  %5257 = vmatprep.subr.bf16.mxu0 %v7336_v30  ;;  %v7358_v30 = vpack.c.bf16 %v838_v57, %v834_v53  ;;  %v835_v33 = vld [vmem:[%s6788_s8 + $0x1e0] sm:$0xff]  ;;  %v7374_v54 = vpack.c.bf16 %v837_v18, %v833_v20 }
 0x183   : > { %5289 = vmatprep.subr.bf16.mxu1 %v7338_v56  ;;  %v831_v56 = vld [vmem:[%s6788_s8 + $0x1c0] sm:$0xff] }
 0x184   : > { %v7370_v29 = vpack.c.bf16 %v835_v33, %v831_v56  ;;  %v7382_v56 = vsel %vm754_vm7, %v743_v44, %v762_v43  ;;  %v9089_v33 = vld [vmem:[#allocation17_spill] sm:$0xff]  ;;  %v4612_v53 = vld [vmem:[%s6788_s8 + $0x440] sm:$0xff]  ;;  %v4627_v44 = vld [vmem:[%s6788_s8 + $0x4b8] sm:$0xff] }
 0x185   : > { %v1203_v18 = vrot.slane %v7382_v56, 1  ;;  %v4616_v57 = vld [vmem:[%s6788_s8 + $0x460] sm:$0xff] }
 0x189   : > { %5259 = vmatpush1.bf16.xpose.msra.mxu0 %v7352_v32 }
 0x18a   : > { %5291 = vmatpush1.bf16.xpose.msra.mxu1 %v7354_v52  ;;  %5261 = vmatprep.subr.bf16.mxu0 %v7356_v2 }
 0x18b   : > { %5293 = vmatprep.subr.bf16.mxu1 %v7358_v30 }
 0x191   : > { %5263 = vmatpush1.bf16.xpose.msra.mxu0 %v7370_v29 }
 0x192   : > { %5295 = vmatpush1.bf16.xpose.msra.mxu1 %v7374_v54  ;;  %5297 = vmatprep.subr.bf16.mxu0 %v6996_v27  ;;  %v664_v27 = vadd.f32 %v7226_v34, %v7174_v15  ;;  %v4619_v34 = vld [vmem:[%s6788_s8 + $0x478] sm:$0xff] }
 0x193   : > { %5329 = vmatprep.subr.bf16.mxu1 %v6999_v28  ;;  %v741_v28 = vadd.f32 %v7232_v3, %v7174_v15  ;;  %v4610_v15 = vld [vmem:[%s6788_s8 + $0x430] sm:$0xff] }
 0x194   : > { %vm751_vm8 = vcmp.gt.f32.partialorder %v664_v27, 0.0 }
 0x195   : > { %vm753_vm9 = vcmp.gt.f32.partialorder %v741_v28, 0.0 }
 0x198   : > { %1121 = vmatmul.mubr.f32.vlgmr.msra.gmra.mrb[10].mxu0 %v7186_v45 }
 0x199   : > { %1191 = vmatmul.mubr.f32.vlgmr.msra.gmra.mrb[10].mxu1 %v7196_v58  ;;  %5299 = vmatpush1.bf16.xpose.msra.mxu0 %v7017_v37  ;;  %v759_v37 = vmul.f32 0.01, %v664_v27 }
 0x19a   : > { %1272 = vmatprep.mubr.f32.mxu0 %v1201_v13  ;;  %5331 = vmatpush1.bf16.xpose.msra.mxu1 %v7020_v38  ;;  %v761_v38 = vmul.f32 0.01, %v741_v28 }
 0x19b   : > { %1342 = vmatprep.mubr.f32.mxu1 %v1203_v18  ;;  %5301 = vmatprep.subr.bf16.mxu0 %v7022_v39  ;;  %v7423_v39 = vsel %vm751_vm8, %v664_v27, %v759_v37  ;;  %v4620_v18 = vld [vmem:[%s6788_s8 + $0x480] sm:$0xff]  ;;  %v4626_v37 = vld [vmem:[%s6788_s8 + $0x4b0] sm:$0xff] }
 0x19c   : > { %5333 = vmatprep.subr.bf16.mxu1 %v7026_v40  ;;  %v7426_v40 = vsel %vm753_vm9, %v741_v28, %v761_v38  ;;  %v4624_v27 = vld [vmem:[%s6788_s8 + $0x4a0] sm:$0xff]  ;;  %v4622_v28 = vld [vmem:[%s6788_s8 + $0x490] sm:$0xff]  ;;  %v4629_v38 = vld [vmem:[%s6788_s8 + $0x4c8] sm:$0xff] }
 0x1a1   : > { %5303 = vmatpush1.bf16.xpose.msra.mxu0 %v7042_v48  ;;  %v1200_v48 = vrot.slane %v7423_v39, 1 }
 0x1a2   : > { %5335 = vmatpush1.bf16.xpose.msra.mxu1 %v7044_v49  ;;  %5305 = vmatprep.subr.bf16.mxu0 %v7046_v50  ;;  %v1202_v49 = vrot.slane %v7426_v40, 1  ;;  %v9071_v50 = vld [vmem:[#allocation18_spill] sm:$0xff] }
 0x1a3   : > { %5337 = vmatprep.subr.bf16.mxu1 %v7048_v51  ;;  %v9072_v51 = vld [vmem:[#allocation24_spill] sm:$0xff] }
 0x1a9   : > { %5307 = vmatpush1.bf16.xpose.msra.mxu0 %v7062_v60  ;;  %v9073_v60 = vld [vmem:[#allocation25_spill] sm:$0xff] }
 0x1aa   : > { %5339 = vmatpush1.bf16.xpose.msra.mxu1 %v7064_v61  ;;  %5309 = vmatprep.subr.bf16.mxu0 %v7066_v62  ;;  %v9074_v61 = vld [vmem:[#allocation26_spill] sm:$0xff]  ;;  %v9075_v62 = vld [vmem:[#allocation27_spill] sm:$0xff] }
 0x1ab   : > { %5341 = vmatprep.subr.bf16.mxu1 %v7068_v63  ;;  %v9076_v63 = vld [vmem:[#allocation28_spill] sm:$0xff] }
 0x1b1   : > { %5311 = vmatpush1.bf16.xpose.msra.mxu0 %v7082_v9  ;;  %v9077_v9 = vld [vmem:[#allocation29_spill] sm:$0xff] }
 0x1b2   : > { %5343 = vmatpush1.bf16.xpose.msra.mxu1 %v7084_v10  ;;  %5313 = vmatprep.subr.bf16.mxu0 %v7086_v11  ;;  %v9078_v10 = vld [vmem:[#allocation30_spill] sm:$0xff]  ;;  %v9079_v11 = vld [vmem:[#allocation31_spill] sm:$0xff] }
 0x1b3   : > { %5345 = vmatprep.subr.bf16.mxu1 %v7088_v12  ;;  %v9080_v12 = vld [vmem:[#allocation32_spill] sm:$0xff] }
 0x1b9   : > { %5315 = vmatpush1.bf16.xpose.msra.mxu0 %v7102_v21  ;;  %v9081_v21 = vld [vmem:[#allocation33_spill] sm:$0xff] }
 0x1ba   : > { %5347 = vmatpush1.bf16.xpose.msra.mxu1 %v7104_v22  ;;  %5317 = vmatprep.subr.bf16.mxu0 %v7106_v23  ;;  %v9082_v22 = vld [vmem:[#allocation34_spill] sm:$0xff]  ;;  %v9083_v23 = vld [vmem:[#allocation35_spill] sm:$0xff] }
 0x1bb   : > { %5349 = vmatprep.subr.bf16.mxu1 %v7108_v24  ;;  %v9084_v24 = vld [vmem:[#allocation36_spill] sm:$0xff] }
 0x1c1   : > { %5319 = vmatpush1.bf16.xpose.msra.mxu0 %v7122_v35  ;;  %v9085_v35 = vld [vmem:[#allocation37_spill] sm:$0xff] }
 0x1c2   : > { %5351 = vmatpush1.bf16.xpose.msra.mxu1 %v7124_v36  ;;  %5321 = vmatprep.subr.bf16.mxu0 %v7126_v0  ;;  %v9086_v36 = vld [vmem:[#allocation38_spill] sm:$0xff]  ;;  %v9087_v0 = vld [vmem:[#allocation39_spill] sm:$0xff] }
 0x1c3   : > { %5353 = vmatprep.subr.bf16.mxu1 %v7128_v41  ;;  %v4605_v41 = vld [vmem:[%s6788_s8 + $0x408] sm:$0xff] }
 0x1c9   : > { %5323 = vmatpush1.bf16.xpose.msra.mxu0 %v7138_v46  ;;  %v4609_v46 = vld [vmem:[%s6788_s8 + $0x428] sm:$0xff] }
 0x1ca   : > { %5355 = vmatpush1.bf16.xpose.msra.mxu1 %v7140_v47  ;;  %5325 = vmatprep.subr.bf16.mxu0 %v7147_v55  ;;  %v4607_v47 = vld [vmem:[%s6788_s8 + $0x418] sm:$0xff] }
 0x1cb   : > { %5357 = vmatprep.subr.bf16.mxu1 %v7152_v59  ;;  %v4611_v55 = vld [vmem:[%s6788_s8 + $0x438] sm:$0xff]  ;;  %v7464_v59 = vpack.c.bf16 %v4609_v46, %v4605_v41 }
 0x1d1   : > { %5327 = vmatpush1.bf16.xpose.msra.mxu0 %v7154_v1  ;;  %v7466_v1 = vpack.c.bf16 %v4611_v55, %v4607_v47 }
 0x1d2   : > { %5359 = vmatpush1.bf16.xpose.msra.mxu1 %v7159_v4  ;;  %5361 = vmatprep.subr.bf16.mxu0 %v7167_v8  ;;  %v4604_v4 = vld [vmem:[%s6788_s8 + $0x400] sm:$0xff] }
 0x1d3   : > { %5393 = vmatprep.subr.bf16.mxu1 %v7170_v14  ;;  %v4608_v8 = vld [vmem:[%s6788_s8 + $0x420] sm:$0xff]  ;;  %v4606_v14 = vld [vmem:[%s6788_s8 + $0x410] sm:$0xff] }
 0x1d4   : > { %v7482_v3 = vpack.c.bf16 %v4610_v15, %v4606_v14  ;;  %v4640_v14 = vld [vmem:[%s6788_s8 + $0x520] sm:$0xff]  ;;  %v4638_v15 = vld [vmem:[%s6788_s8 + $0x510] sm:$0xff] }
 0x1d8   : > { %1273 = vmatmul.mubr.f32.vlgmr.msra.gmra.mrb[12].mxu0 %v1200_v48  ;;  %v4633_v48 = vld [vmem:[%s6788_s8 + $0x4e8] sm:$0xff] }
 0x1d9   : > { %1343 = vmatmul.mubr.f32.vlgmr.msra.gmra.mrb[12].mxu1 %v1202_v49  ;;  %5363 = vmatpush1.bf16.xpose.msra.mxu0 %v7203_v7  ;;  %v4613_v7 = vld [vmem:[%s6788_s8 + $0x448] sm:$0xff]  ;;  %v4631_v49 = vld [vmem:[%s6788_s8 + $0x4d8] sm:$0xff] }
 0x1da   : > { %1412 = vmatprep.mubr.f32.mxu0 %v7380_v5  ;;  %5395 = vmatpush1.bf16.xpose.msra.mxu1 %v7209_v19  ;;  %v4617_v19 = vld [vmem:[%s6788_s8 + $0x468] sm:$0xff] }
 0x1db   : > { %1482 = vmatprep.mubr.f32.mxu1 %v7382_v56  ;;  %5365 = vmatprep.subr.bf16.mxu0 %v7212_v25  ;;  %v7478_v25 = vpack.c.bf16 %v4608_v8, %v4604_v4  ;;  %v4636_v8 = vld [vmem:[%s6788_s8 + $0x500] sm:$0xff] }
 0x1dc   : > { %5397 = vmatprep.subr.bf16.mxu1 %v7214_v26  ;;  %v4615_v26 = vld [vmem:[%s6788_s8 + $0x458] sm:$0xff] }
 0x1dd   : > { %v7488_v20 = vpack.c.bf16 %v4619_v34, %v4615_v26  ;;  %v4649_v26 = vld [vmem:[%s6788_s8 + $0x568] sm:$0xff]  ;;  %v4647_v34 = vld [vmem:[%s6788_s8 + $0x558] sm:$0xff] }
 0x1e1   : > { %5367 = vmatpush1.bf16.xpose.msra.mxu0 %v7236_v6  ;;  %v7484_v6 = vpack.c.bf16 %v4617_v19, %v4613_v7  ;;  %v4642_v7 = vld [vmem:[%s6788_s8 + $0x530] sm:$0xff]  ;;  %v4645_v19 = vld [vmem:[%s6788_s8 + $0x548] sm:$0xff] }
 0x1e2   : > { %5399 = vmatpush1.bf16.xpose.msra.mxu1 %v7240_v16  ;;  %5369 = vmatprep.subr.bf16.mxu0 %v7242_v17  ;;  %v9088_v16 = vld [vmem:[#allocation14_spill] sm:$0xff] }
 0x1e3   : > { %5401 = vmatprep.subr.bf16.mxu1 %v9071_v50  ;;  %v1554_v17 = vrot.slane %v9088_v16, 2  ;;  %v4635_v50 = vld [vmem:[%s6788_s8 + $0x4f8] sm:$0xff] }
 0x1e9   : > { %5371 = vmatpush1.bf16.xpose.msra.mxu0 %v9072_v51  ;;  %v7524_v51 = vpack.c.bf16 %v4624_v27, %v4620_v18  ;;  %v4657_v18 = vld [vmem:[%s6788_s8 + $0x5a8] sm:$0xff]  ;;  %v4655_v27 = vld [vmem:[%s6788_s8 + $0x598] sm:$0xff] }
 0x1ea   : > { %5403 = vmatpush1.bf16.xpose.msra.mxu1 %v9073_v60  ;;  %5373 = vmatprep.subr.bf16.mxu0 %v9074_v61  ;;  %v7526_v60 = vpack.c.bf16 %v4626_v37, %v4622_v28  ;;  %v7528_v61 = vpack.c.bf16 %v4633_v48, %v4629_v38  ;;  %v4659_v28 = vld [vmem:[%s6788_s8 + $0x5b8] sm:$0xff] }
 0x1eb   : > { %5405 = vmatprep.subr.bf16.mxu1 %v9075_v62  ;;  %v7530_v62 = vpack.c.bf16 %v4635_v50, %v4631_v49  ;;  %v7592_v49 = vpack.c.bf16 %v4659_v28, %v4655_v27  ;;  %v4652_v50 = vld [vmem:[%s6788_s8 + $0x580] sm:$0xff] }
 0x1ec   : > { %v4676_v27 = vld [vmem:[%s6788_s8 + $0x640] sm:$0xff] }
 0x1ed   : > { %v4680_v28 = vld [vmem:[%s6788_s8 + $0x660] sm:$0xff] }
 0x1f1   : > { %5375 = vmatpush1.bf16.xpose.msra.mxu0 %v9076_v63  ;;  %v4628_v63 = vld [vmem:[%s6788_s8 + $0x4c0] sm:$0xff] }
 0x1f2   : > { %5407 = vmatpush1.bf16.xpose.msra.mxu1 %v9077_v9  ;;  %5377 = vmatprep.subr.bf16.mxu0 %v9078_v10  ;;  %v4632_v9 = vld [vmem:[%s6788_s8 + $0x4e0] sm:$0xff]  ;;  %v4630_v10 = vld [vmem:[%s6788_s8 + $0x4d0] sm:$0xff] }
 0x1f3   : > { %5409 = vmatprep.subr.bf16.mxu1 %v9079_v11  ;;  %v7546_v46 = vpack.c.bf16 %v4632_v9, %v4628_v63  ;;  %v4656_v63 = vld [vmem:[%s6788_s8 + $0x5a0] sm:$0xff]  ;;  %v4654_v9 = vld [vmem:[%s6788_s8 + $0x590] sm:$0xff] }
 0x1f9   : > { %5379 = vmatpush1.bf16.xpose.msra.mxu0 %v9080_v12  ;;  %v4634_v12 = vld [vmem:[%s6788_s8 + $0x4f0] sm:$0xff] }
 0x1fa   : > { %5411 = vmatpush1.bf16.xpose.msra.mxu1 %v9081_v21  ;;  %5381 = vmatprep.subr.bf16.mxu0 %v9082_v22  ;;  %v4637_v21 = vld [vmem:[%s6788_s8 + $0x508] sm:$0xff]  ;;  %v7548_v47 = vpack.c.bf16 %v4634_v12, %v4630_v10  ;;  %v4658_v10 = vld [vmem:[%s6788_s8 + $0x5b0] sm:$0xff] }
 0x1fb   : > { %5413 = vmatprep.subr.bf16.mxu1 %v9083_v23  ;;  %v4641_v22 = vld [vmem:[%s6788_s8 + $0x528] sm:$0xff] }
 0x1fc   : > { %v7550_v55 = vpack.c.bf16 %v4641_v22, %v4637_v21  ;;  %v4665_v12 = vld [vmem:[%s6788_s8 + $0x5e8] sm:$0xff]  ;;  %v4663_v21 = vld [vmem:[%s6788_s8 + $0x5d8] sm:$0xff] }
 0x1fd   : > { %v4667_v22 = vld [vmem:[%s6788_s8 + $0x5f8] sm:$0xff] }
 0x201   : > { %5383 = vmatpush1.bf16.xpose.msra.mxu0 %v9084_v24 }
 0x202   : > { %5415 = vmatpush1.bf16.xpose.msra.mxu1 %v9085_v35  ;;  %5385 = vmatprep.subr.bf16.mxu0 %v9086_v36  ;;  %v4639_v35 = vld [vmem:[%s6788_s8 + $0x518] sm:$0xff] }
 0x203   : > { %5417 = vmatprep.subr.bf16.mxu1 %v9087_v0  ;;  %v4643_v36 = vld [vmem:[%s6788_s8 + $0x538] sm:$0xff] }
 0x204   : > { %v7552_v4 = vpack.c.bf16 %v4643_v36, %v4639_v35  ;;  %v5484_v36 = vpack.c.bf16 %v4667_v22, %v4663_v21  ;;  %v4684_v21 = vld [vmem:[%s6788_s8 + $0x680] sm:$0xff] }
 0x205   : > { %v4688_v22 = vld [vmem:[%s6788_s8 + $0x6a0] sm:$0xff] }
 0x209   : > { %5387 = vmatpush1.bf16.xpose.msra.mxu0 %v7352_v32  ;;  %v4614_v32 = vld [vmem:[%s6788_s8 + $0x450] sm:$0xff] }
 0x20a   : > { %5419 = vmatpush1.bf16.xpose.msra.mxu1 %v7354_v52  ;;  %5389 = vmatprep.subr.bf16.mxu0 %v7356_v2  ;;  %v4618_v52 = vld [vmem:[%s6788_s8 + $0x470] sm:$0xff]  ;;  %v4621_v2 = vld [vmem:[%s6788_s8 + $0x488] sm:$0xff] }
 0x20b   : > { %5421 = vmatprep.subr.bf16.mxu1 %v7358_v30  ;;  %v1556_v30 = vrot.slane %v9089_v33, 2  ;;  %v7506_v42 = vpack.c.bf16 %v4618_v52, %v4614_v32  ;;  %v7508_v43 = vpack.c.bf16 %v4625_v31, %v4621_v2  ;;  %v4644_v52 = vld [vmem:[%s6788_s8 + $0x540] sm:$0xff]  ;;  %v4646_v31 = vld [vmem:[%s6788_s8 + $0x550] sm:$0xff] }
 0x20c   : > { %v4648_v2 = vld [vmem:[%s6788_s8 + $0x560] sm:$0xff] }
 0x20d   : > { %v7586_v37 = vpack.c.bf16 %v4648_v2, %v4644_v52  ;;  %v1705_v52 = vrot.slane %v7382_v56, 2  ;;  %v1704_v2 = vrot.slane %v7426_v40, 2 }
 0x211   : > { %5391 = vmatpush1.bf16.xpose.msra.mxu0 %v7370_v29  ;;  %v4623_v29 = vld [vmem:[%s6788_s8 + $0x498] sm:$0xff] }
 0x212   : > { %5423 = vmatpush1.bf16.xpose.msra.mxu1 %v7374_v54  ;;  %5425 = vmatprep.subr.bf16.mxu0 %v7464_v59  ;;  %v7504_v54 = vpack.c.bf16 %v4616_v57, %v4612_v53  ;;  %v7510_v13 = vpack.c.bf16 %v4627_v44, %v4623_v29  ;;  %v7568_v53 = vpack.c.bf16 %v4642_v7, %v4638_v15  ;;  %v4650_v29 = vld [vmem:[%s6788_s8 + $0x570] sm:$0xff]  ;;  %v4653_v44 = vld [vmem:[%s6788_s8 + $0x588] sm:$0xff] }
 0x213   : > { %5457 = vmatprep.subr.bf16.mxu1 %v7466_v1  ;;  %v7570_v57 = vpack.c.bf16 %v4649_v26, %v4645_v19  ;;  %v7588_v38 = vpack.c.bf16 %v4650_v29, %v4646_v31  ;;  %v7590_v48 = vpack.c.bf16 %v4657_v18, %v4653_v44  ;;  %v4666_v15 = vld [vmem:[%s6788_s8 + $0x5f0] sm:$0xff]  ;;  %v1553_v26 = vrot.slane %v7186_v45, 2 }
 0x214   : > { %v1917_v29 = vrot.slane %v9088_v16, 3  ;;  %v1919_v18 = vrot.slane %v9089_v33, 3 }
 0x218   : > { %1413 = vmatmul.mubr.f32.vlgmr.msra.gmra.mrb[14].mxu0 %v7423_v39 }
 0x219   : > { %1483 = vmatmul.mubr.f32.vlgmr.msra.gmra.mrb[14].mxu1 %v7426_v40  ;;  %5427 = vmatpush1.bf16.xpose.msra.mxu0 %v7478_v25 }
 0x21a   : > { %1625 = vmatprep.mubr.f32.mxu0 %v1554_v17  ;;  %5459 = vmatpush1.bf16.xpose.msra.mxu1 %v7482_v3  ;;  %v4651_v17 = vld [vmem:[%s6788_s8 + $0x578] sm:$0xff] }
 0x21b   : > { %1695 = vmatprep.mubr.f32.mxu1 %v1556_v30  ;;  %5429 = vmatprep.subr.bf16.mxu0 %v7484_v6  ;;  %v7566_v30 = vpack.c.bf16 %v4640_v14, %v4636_v8  ;;  %v7572_v32 = vpack.c.bf16 %v4651_v17, %v4647_v34  ;;  %v4664_v8 = vld [vmem:[%s6788_s8 + $0x5e0] sm:$0xff]  ;;  %v4662_v14 = vld [vmem:[%s6788_s8 + $0x5d0] sm:$0xff]  ;;  %v1555_v34 = vrot.slane %v7196_v58, 2  ;;  %v1703_v17 = vrot.slane %v7380_v5, 2 }
 0x21c   : > { %5461 = vmatprep.subr.bf16.mxu1 %v7488_v20  ;;  %v5486_v19 = vpack.c.bf16 %v4666_v15, %v4662_v14  ;;  %v7705_v14 = vpack.c.bf16 %v4688_v22, %v4684_v21  ;;  %v4717_v21 = vld [vmem:[%s6788_s8 + $0x788] sm:$0xff] }
 0x21d   : > { %v4721_v22 = vld [vmem:[%s6788_s8 + $0x7a8] sm:$0xff] }
 0x221   : > { %5431 = vmatpush1.bf16.xpose.msra.mxu0 %v7504_v54 }
 0x222   : > { %5463 = vmatpush1.bf16.xpose.msra.mxu1 %v7506_v42  ;;  %5433 = vmatprep.subr.bf16.mxu0 %v7508_v43 }
 0x223   : > { %5465 = vmatprep.subr.bf16.mxu1 %v7510_v13 }
 0x229   : > { %5435 = vmatpush1.bf16.xpose.msra.mxu0 %v7524_v51 }
 0x22a   : > { %5467 = vmatpush1.bf16.xpose.msra.mxu1 %v7526_v60  ;;  %5437 = vmatprep.subr.bf16.mxu0 %v7528_v61 }
 0x22b   : > { %v982_v11 = vpop.f32.mrb[8].mxu0  ;;  %5469 = vmatprep.subr.bf16.mxu1 %v7530_v62 }
 0x22c   : > { %v1052_v23 = vpop.f32.mrb[8].mxu1  ;;  %v984_v24 = vpop.f32.mrb[9].mxu0 }
 0x22d   : > { %v7544_v0 = vadd.f32 %v1052_v23, %v982_v11  ;;  %v1054_v41 = vpop.f32.mrb[9].mxu1  ;;  %v4661_v11 = vld [vmem:[%s6788_s8 + $0x5c8] sm:$0xff]  ;;  %v5450_v23 = vpack.c.bf16 %v4656_v63, %v4652_v50  ;;  %v5482_v24 = vpack.c.bf16 %v4658_v10, %v4654_v9  ;;  %v4687_v50 = vld [vmem:[%s6788_s8 + $0x698] sm:$0xff]  ;;  %v7685_v9 = vpack.c.bf16 %v4680_v28, %v4676_v27 }
 0x22e   : > { %v5452_v35 = vpack.c.bf16 %v4665_v12, %v4661_v11  ;;  %v4660_v41 = vld [vmem:[%s6788_s8 + $0x5c0] sm:$0xff]  ;;  %v4691_v63 = vld [vmem:[%s6788_s8 + $0x6b8] sm:$0xff] }
 0x22f   : > { %v5454_v7 = vpack.c.bf16 %v4664_v8, %v4660_v41  ;;  %v7691_v12 = vpack.c.bf16 %v4691_v63, %v4687_v50  ;;  %v4695_v41 = vld [vmem:[%s6788_s8 + $0x6d8] sm:$0xff]  ;;  %v4710_v50 = vld [vmem:[%s6788_s8 + $0x750] sm:$0xff] }
 0x230   : > { %v4699_v8 = vld [vmem:[%s6788_s8 + $0x6f8] sm:$0xff]  ;;  %v4714_v63 = vld [vmem:[%s6788_s8 + $0x770] sm:$0xff] }
 0x231   : > { %5439 = vmatpush1.bf16.xpose.msra.mxu0 %v7546_v46 }
 0x232   : > { %5471 = vmatpush1.bf16.xpose.msra.mxu1 %v7548_v47  ;;  %5441 = vmatprep.subr.bf16.mxu0 %v7550_v55 }
 0x233   : > { %5473 = vmatprep.subr.bf16.mxu1 %v7552_v4 }
 0x239   : > { %5443 = vmatpush1.bf16.xpose.msra.mxu0 %v7566_v30 }
 0x23a   : > { %5475 = vmatpush1.bf16.xpose.msra.mxu1 %v7568_v53  ;;  %5445 = vmatprep.subr.bf16.mxu0 %v7570_v57 }
 0x23b   : > { %5477 = vmatprep.subr.bf16.mxu1 %v7572_v32 }
 0x241   : > { %5447 = vmatpush1.bf16.xpose.msra.mxu0 %v7586_v37 }
 0x242   : > { %5479 = vmatpush1.bf16.xpose.msra.mxu1 %v7588_v38  ;;  %5449 = vmatprep.subr.bf16.mxu0 %v7590_v48 }
 0x243   : > { %5481 = vmatprep.subr.bf16.mxu1 %v7592_v49 }
 0x249   : > { %5451 = vmatpush1.bf16.xpose.msra.mxu0 %v5450_v23 }
 0x24a   : > { %5483 = vmatpush1.bf16.xpose.msra.mxu1 %v5482_v24  ;;  %5453 = vmatprep.subr.bf16.mxu0 %v5452_v35 }
 0x24b   : > { %5485 = vmatprep.subr.bf16.mxu1 %v5484_v36 }
 0x251   : > { %5455 = vmatpush1.bf16.xpose.msra.mxu0 %v5454_v7 }
 0x252   : > { %5487 = vmatpush1.bf16.xpose.msra.mxu1 %v5486_v19  ;;  %5489 = vmatprep.subr.bf16.mxu0 %v7464_v59 }
 0x253   : > { %5521 = vmatprep.subr.bf16.mxu1 %v7466_v1 }
 0x258   : > { %1626 = vmatmul.mubr.f32.vlgmr.msra.gmra.mrb[16].mxu0 %v1553_v26  ;;  %v4692_v26 = vld [vmem:[%s6788_s8 + $0x6c0] sm:$0xff] }
 0x259   : > { %1696 = vmatmul.mubr.f32.vlgmr.msra.gmra.mrb[16].mxu1 %v1555_v34  ;;  %5491 = vmatpush1.bf16.xpose.msra.mxu0 %v7478_v25  ;;  %v4696_v34 = vld [vmem:[%s6788_s8 + $0x6e0] sm:$0xff] }
 0x25a   : > { %1774 = vmatprep.mubr.f32.mxu0 %v1703_v17  ;;  %5523 = vmatpush1.bf16.xpose.msra.mxu1 %v7482_v3  ;;  %v4694_v17 = vld [vmem:[%s6788_s8 + $0x6d0] sm:$0xff] }
 0x25b   : > { %1844 = vmatprep.mubr.f32.mxu1 %v1705_v52  ;;  %5493 = vmatprep.subr.bf16.mxu0 %v7484_v6 }
 0x25c   : > { %5525 = vmatprep.subr.bf16.mxu1 %v7488_v20 }
 0x261   : > { %5495 = vmatpush1.bf16.xpose.msra.mxu0 %v7504_v54  ;;  %v4669_v54 = vld [vmem:[%s6788_s8 + $0x608] sm:$0xff] }
 0x262   : > { %5527 = vmatpush1.bf16.xpose.msra.mxu1 %v7506_v42  ;;  %5497 = vmatprep.subr.bf16.mxu0 %v7508_v43  ;;  %v4673_v42 = vld [vmem:[%s6788_s8 + $0x628] sm:$0xff]  ;;  %v4671_v43 = vld [vmem:[%s6788_s8 + $0x618] sm:$0xff] }
 0x263   : > { %5529 = vmatprep.subr.bf16.mxu1 %v7510_v13  ;;  %v4675_v13 = vld [vmem:[%s6788_s8 + $0x638] sm:$0xff] }
 0x269   : > { %5499 = vmatpush1.bf16.xpose.msra.mxu0 %v7524_v51  ;;  %v7647_v51 = vpack.c.bf16 %v4673_v42, %v4669_v54  ;;  %v4703_v54 = vld [vmem:[%s6788_s8 + $0x718] sm:$0xff] }
 0x26a   : > { %5531 = vmatpush1.bf16.xpose.msra.mxu1 %v7526_v60  ;;  %5501 = vmatprep.subr.bf16.mxu0 %v7528_v61  ;;  %v7649_v60 = vpack.c.bf16 %v4675_v13, %v4671_v43  ;;  %v4668_v61 = vld [vmem:[%s6788_s8 + $0x600] sm:$0xff]  ;;  %v4707_v42 = vld [vmem:[%s6788_s8 + $0x738] sm:$0xff] }
 0x26b   : > { %v1122_v59 = vpop.f32.mrb[10].mxu0  ;;  %5533 = vmatprep.subr.bf16.mxu1 %v7530_v62  ;;  %v4672_v62 = vld [vmem:[%s6788_s8 + $0x620] sm:$0xff] }
 0x26c   : > { %v1123_v1 = vadd.f32 %v1122_v59, %v7544_v0  ;;  %v1192_v25 = vpop.f32.mrb[10].mxu1  ;;  %v1124_v3 = vpop.f32.mrb[11].mxu0  ;;  %v4670_v0 = vld [vmem:[%s6788_s8 + $0x610] sm:$0xff] }
 0x26d   : > { %v1194_v6 = vpop.f32.mrb[11].mxu1  ;;  %v4698_v59 = vld [vmem:[%s6788_s8 + $0x6f0] sm:$0xff] }
 0x26e   : > { %v7629_v20 = vadd.f32 %v1192_v25, %v1123_v1  ;;  %v4701_v1 = vld [vmem:[%s6788_s8 + $0x708] sm:$0xff] }
 0x26f   : > { %v4705_v25 = vld [vmem:[%s6788_s8 + $0x728] sm:$0xff] }
 0x271   : > { %5503 = vmatpush1.bf16.xpose.msra.mxu0 %v7546_v46  ;;  %v4674_v46 = vld [vmem:[%s6788_s8 + $0x630] sm:$0xff] }
 0x272   : > { %5535 = vmatpush1.bf16.xpose.msra.mxu1 %v7548_v47  ;;  %5505 = vmatprep.subr.bf16.mxu0 %v7550_v55  ;;  %v4677_v47 = vld [vmem:[%s6788_s8 + $0x648] sm:$0xff] }
 0x273   : > { %5537 = vmatprep.subr.bf16.mxu1 %v7552_v4  ;;  %v4681_v55 = vld [vmem:[%s6788_s8 + $0x668] sm:$0xff]  ;;  %v7659_v4 = vpack.c.bf16 %v4672_v62, %v4668_v61  ;;  %v7727_v61 = vpack.c.bf16 %v4696_v34, %v4692_v26  ;;  %v7729_v62 = vpack.c.bf16 %v4698_v59, %v4694_v17  ;;  %v4716_v26 = vld [vmem:[%s6788_s8 + $0x780] sm:$0xff]  ;;  %v4718_v17 = vld [vmem:[%s6788_s8 + $0x790] sm:$0xff] }
 0x274   : > { %v7667_v31 = vpack.c.bf16 %v4681_v55, %v4677_v47  ;;  %v4700_v47 = vld [vmem:[%s6788_s8 + $0x700] sm:$0xff]  ;;  %v4725_v59 = vld [vmem:[%s6788_s8 + $0x7c8] sm:$0xff] }
 0x275   : > { %v4704_v55 = vld [vmem:[%s6788_s8 + $0x720] sm:$0xff] }
 0x276   : > { %v7747_v27 = vpack.c.bf16 %v4704_v55, %v4700_v47  ;;  %v4720_v34 = vld [vmem:[%s6788_s8 + $0x7a0] sm:$0xff] }
 0x277   : > { %v4724_v47 = vld [vmem:[%s6788_s8 + $0x7c0] sm:$0xff] }
 0x278   : > { %v4728_v55 = vld [vmem:[%s6788_s8 + $0x7e0] sm:$0xff] }
 0x279   : > { %5507 = vmatpush1.bf16.xpose.msra.mxu0 %v7566_v30  ;;  %v4679_v30 = vld [vmem:[%s6788_s8 + $0x658] sm:$0xff] }
 0x27a   : > { %5539 = vmatpush1.bf16.xpose.msra.mxu1 %v7568_v53  ;;  %5509 = vmatprep.subr.bf16.mxu0 %v7570_v57  ;;  %v4683_v53 = vld [vmem:[%s6788_s8 + $0x678] sm:$0xff]  ;;  %v1702_v57 = vrot.slane %v7423_v39, 2 }
 0x27b   : > { %5541 = vmatprep.subr.bf16.mxu1 %v7572_v32  ;;  %v7664_v32 = vpack.c.bf16 %v4674_v46, %v4670_v0  ;;  %v7670_v44 = vpack.c.bf16 %v4683_v53, %v4679_v30  ;;  %v7731_v0 = vpack.c.bf16 %v4705_v25, %v4701_v1  ;;  %v7733_v46 = vpack.c.bf16 %v4707_v42, %v4703_v54  ;;  %v4702_v30 = vld [vmem:[%s6788_s8 + $0x710] sm:$0xff]  ;;  %v4729_v1 = vld [vmem:[%s6788_s8 + $0x7e8] sm:$0xff]  ;;  %v4727_v25 = vld [vmem:[%s6788_s8 + $0x7d8] sm:$0xff] }
 0x27c   : > { %v4706_v53 = vld [vmem:[%s6788_s8 + $0x730] sm:$0xff]  ;;  %v5580_v42 = vpack.c.bf16 %v4729_v1, %v4725_v59 }
 0x27d   : > { %v7749_v28 = vpack.c.bf16 %v4706_v53, %v4702_v30  ;;  %v4726_v30 = vld [vmem:[%s6788_s8 + $0x7d0] sm:$0xff] }
 0x27e   : > { %v4730_v53 = vld [vmem:[%s6788_s8 + $0x7f0] sm:$0xff] }
 0x281   : > { %5511 = vmatpush1.bf16.xpose.msra.mxu0 %v7586_v37  ;;  %v4678_v37 = vld [vmem:[%s6788_s8 + $0x650] sm:$0xff] }
 0x282   : > { %5543 = vmatpush1.bf16.xpose.msra.mxu1 %v7588_v38  ;;  %5513 = vmatprep.subr.bf16.mxu0 %v7590_v48  ;;  %v4682_v38 = vld [vmem:[%s6788_s8 + $0x670] sm:$0xff]  ;;  %v4685_v48 = vld [vmem:[%s6788_s8 + $0x688] sm:$0xff] }
 0x283   : > { %5545 = vmatprep.subr.bf16.mxu1 %v7592_v49  ;;  %v4689_v49 = vld [vmem:[%s6788_s8 + $0x6a8] sm:$0xff]  ;;  %v7687_v10 = vpack.c.bf16 %v4682_v38, %v4678_v37 }
 0x284   : > { %v7689_v11 = vpack.c.bf16 %v4689_v49, %v4685_v48  ;;  %v4708_v48 = vld [vmem:[%s6788_s8 + $0x740] sm:$0xff] }
 0x285   : > { %v4712_v49 = vld [vmem:[%s6788_s8 + $0x760] sm:$0xff] }
 0x289   : > { %5515 = vmatpush1.bf16.xpose.msra.mxu0 %v5450_v23  ;;  %v4686_v23 = vld [vmem:[%s6788_s8 + $0x690] sm:$0xff] }
 0x28a   : > { %5547 = vmatpush1.bf16.xpose.msra.mxu1 %v5482_v24  ;;  %5517 = vmatprep.subr.bf16.mxu0 %v5452_v35  ;;  %v4690_v24 = vld [vmem:[%s6788_s8 + $0x6b0] sm:$0xff]  ;;  %v4693_v35 = vld [vmem:[%s6788_s8 + $0x6c8] sm:$0xff] }
 0x28b   : > { %5549 = vmatprep.subr.bf16.mxu1 %v5484_v36  ;;  %v4697_v36 = vld [vmem:[%s6788_s8 + $0x6e8] sm:$0xff]  ;;  %v7707_v15 = vpack.c.bf16 %v4690_v24, %v4686_v23  ;;  %v4719_v23 = vld [vmem:[%s6788_s8 + $0x798] sm:$0xff] }
 0x28c   : > { %v4723_v24 = vld [vmem:[%s6788_s8 + $0x7b8] sm:$0xff] }
 0x291   : > { %5519 = vmatpush1.bf16.xpose.msra.mxu0 %v5454_v7  ;;  %v7709_v7 = vpack.c.bf16 %v4697_v36, %v4693_v35  ;;  %v7767_v35 = vpack.c.bf16 %v4712_v49, %v4708_v48  ;;  %v7769_v36 = vpack.c.bf16 %v4714_v63, %v4710_v50  ;;  %v2066_v48 = vrot.slane %v7380_v5, 3 }
 0x292   : > { %5551 = vmatpush1.bf16.xpose.msra.mxu1 %v5486_v19  ;;  %5553 = vmatprep.subr.bf16.mxu0 %v7647_v51  ;;  %v7711_v19 = vpack.c.bf16 %v4699_v8, %v4695_v41  ;;  %v7771_v41 = vpack.c.bf16 %v4721_v22, %v4717_v21  ;;  %v7773_v8 = vpack.c.bf16 %v4723_v24, %v4719_v23  ;;  %v2068_v49 = vrot.slane %v7382_v56, 3  ;;  %v4740_v24 = vld [vmem:[%s6788_s8 + $0x840] sm:$0xff] }
 0x293   : > { %5585 = vmatprep.subr.bf16.mxu1 %v7649_v60  ;;  %v2067_v50 = vrot.slane %v7426_v40, 3  ;;  %v2280_v21 = vrot.slane %v9088_v16, 4  ;;  %v2282_v23 = vrot.slane %v9089_v33, 4 }
 0x298   : > { %1775 = vmatmul.mubr.f32.vlgmr.msra.gmra.mrb[18].mxu0 %v1702_v57  ;;  %v4709_v57 = vld [vmem:[%s6788_s8 + $0x748] sm:$0xff] }
 0x299   : > { %1845 = vmatmul.mubr.f32.vlgmr.msra.gmra.mrb[18].mxu1 %v1704_v2  ;;  %5555 = vmatpush1.bf16.xpose.msra.mxu0 %v7659_v4  ;;  %v4713_v2 = vld [vmem:[%s6788_s8 + $0x768] sm:$0xff] }
 0x29a   : > { %1988 = vmatprep.mubr.f32.mxu0 %v1917_v29  ;;  %5587 = vmatpush1.bf16.xpose.msra.mxu1 %v7664_v32  ;;  %v4711_v29 = vld [vmem:[%s6788_s8 + $0x758] sm:$0xff]  ;;  %v7751_v37 = vpack.c.bf16 %v4713_v2, %v4709_v57  ;;  %v5582_v57 = vpack.c.bf16 %v4728_v55, %v4724_v47  ;;  %v5614_v2 = vpack.c.bf16 %v4730_v53, %v4726_v30  ;;  %v4761_v47 = vld [vmem:[%s6788_s8 + $0x8e8] sm:$0xff] }
 0x29b   : > { %2058 = vmatprep.mubr.f32.mxu1 %v1919_v18  ;;  %5557 = vmatprep.subr.bf16.mxu0 %v7667_v31  ;;  %v4715_v18 = vld [vmem:[%s6788_s8 + $0x778] sm:$0xff] }
 0x29c   : > { %5589 = vmatprep.subr.bf16.mxu1 %v7670_v44  ;;  %v7753_v38 = vpack.c.bf16 %v4715_v18, %v4711_v29  ;;  %v1916_v29 = vrot.slane %v7186_v45, 3  ;;  %v1918_v18 = vrot.slane %v7196_v58, 3  ;;  %v4759_v55 = vld [vmem:[%s6788_s8 + $0x8d8] sm:$0xff] }
 0x29d   : > { %v4763_v30 = vld [vmem:[%s6788_s8 + $0x8f8] sm:$0xff] }
 0x2a1   : > { %5559 = vmatpush1.bf16.xpose.msra.mxu0 %v7685_v9 }
 0x2a2   : > { %5591 = vmatpush1.bf16.xpose.msra.mxu1 %v7687_v10  ;;  %5561 = vmatprep.subr.bf16.mxu0 %v7689_v11 }
 0x2a3   : > { %5593 = vmatprep.subr.bf16.mxu1 %v7691_v12 }
 0x2a9   : > { %5563 = vmatpush1.bf16.xpose.msra.mxu0 %v7705_v14 }
 0x2aa   : > { %5595 = vmatpush1.bf16.xpose.msra.mxu1 %v7707_v15  ;;  %5565 = vmatprep.subr.bf16.mxu0 %v7709_v7 }
 0x2ab   : > { %v1274_v52 = vpop.f32.mrb[12].mxu0  ;;  %5597 = vmatprep.subr.bf16.mxu1 %v7711_v19 }
 0x2ac   : > { %v1344_v3 = vpop.f32.mrb[12].mxu1  ;;  %v1276_v6 = vpop.f32.mrb[13].mxu0 }
 0x2ad   : > { %v7725_v43 = vadd.f32 %v1344_v3, %v1274_v52  ;;  %v1346_v13 = vpop.f32.mrb[13].mxu1  ;;  %v4722_v52 = vld [vmem:[%s6788_s8 + $0x7b0] sm:$0xff]  ;;  %v4731_v3 = vld [vmem:[%s6788_s8 + $0x7f8] sm:$0xff]  ;;  %v5578_v6 = vpack.c.bf16 %v4720_v34, %v4716_v26  ;;  %v4753_v26 = vld [vmem:[%s6788_s8 + $0x8a8] sm:$0xff] }
 0x2ae   : > { %v5610_v54 = vpack.c.bf16 %v4722_v52, %v4718_v17  ;;  %v5612_v13 = vpack.c.bf16 %v4731_v3, %v4727_v25  ;;  %v4751_v34 = vld [vmem:[%s6788_s8 + $0x898] sm:$0xff]  ;;  %v4748_v3 = vld [vmem:[%s6788_s8 + $0x880] sm:$0xff] }
 0x2af   : > { %v4755_v17 = vld [vmem:[%s6788_s8 + $0x8b8] sm:$0xff] }
 0x2b0   : > { %v7872_v25 = vpack.c.bf16 %v4755_v17, %v4751_v34  ;;  %v4776_v34 = vld [vmem:[%s6788_s8 + $0x960] sm:$0xff]  ;;  %v4774_v17 = vld [vmem:[%s6788_s8 + $0x950] sm:$0xff] }
 0x2b1   : > { %5567 = vmatpush1.bf16.xpose.msra.mxu0 %v7727_v61 }
 0x2b2   : > { %5599 = vmatpush1.bf16.xpose.msra.mxu1 %v7729_v62  ;;  %5569 = vmatprep.subr.bf16.mxu0 %v7731_v0 }
 0x2b3   : > { %5601 = vmatprep.subr.bf16.mxu1 %v7733_v46 }
 0x2b9   : > { %5571 = vmatpush1.bf16.xpose.msra.mxu0 %v7747_v27 }
 0x2ba   : > { %5603 = vmatpush1.bf16.xpose.msra.mxu1 %v7749_v28  ;;  %5573 = vmatprep.subr.bf16.mxu0 %v7751_v37 }
 0x2bb   : > { %5605 = vmatprep.subr.bf16.mxu1 %v7753_v38 }
 0x2c1   : > { %5575 = vmatpush1.bf16.xpose.msra.mxu0 %v7767_v35 }
 0x2c2   : > { %5607 = vmatpush1.bf16.xpose.msra.mxu1 %v7769_v36  ;;  %5577 = vmatprep.subr.bf16.mxu0 %v7771_v41 }
 0x2c3   : > { %5609 = vmatprep.subr.bf16.mxu1 %v7773_v8 }
 0x2c9   : > { %5579 = vmatpush1.bf16.xpose.msra.mxu0 %v5578_v6 }
 0x2ca   : > { %5611 = vmatpush1.bf16.xpose.msra.mxu1 %v5610_v54  ;;  %5581 = vmatprep.subr.bf16.mxu0 %v5580_v42 }
 0x2cb   : > { %5613 = vmatprep.subr.bf16.mxu1 %v5612_v13 }
 0x2d1   : > { %5583 = vmatpush1.bf16.xpose.msra.mxu0 %v5582_v57 }
 0x2d2   : > { %5615 = vmatpush1.bf16.xpose.msra.mxu1 %v5614_v2  ;;  %5617 = vmatprep.subr.bf16.mxu0 %v7647_v51 }
 0x2d3   : > { %5649 = vmatprep.subr.bf16.mxu1 %v7649_v60 }
 0x2d8   : > { %1989 = vmatmul.mubr.f32.vlgmr.msra.gmra.mrb[20].mxu0 %v1916_v29  ;;  %v7892_v29 = vpack.c.bf16 %v4763_v30, %v4759_v55 }
 0x2d9   : > { %2059 = vmatmul.mubr.f32.vlgmr.msra.gmra.mrb[20].mxu1 %v1918_v18  ;;  %5619 = vmatpush1.bf16.xpose.msra.mxu0 %v7659_v4  ;;  %v4756_v18 = vld [vmem:[%s6788_s8 + $0x8c0] sm:$0xff] }
 0x2da   : > { %2137 = vmatprep.mubr.f32.mxu0 %v2066_v48  ;;  %5651 = vmatpush1.bf16.xpose.msra.mxu1 %v7664_v32  ;;  %v4760_v48 = vld [vmem:[%s6788_s8 + $0x8e0] sm:$0xff] }
 0x2db   : > { %2207 = vmatprep.mubr.f32.mxu1 %v2068_v49  ;;  %5621 = vmatprep.subr.bf16.mxu0 %v7667_v31  ;;  %v4758_v49 = vld [vmem:[%s6788_s8 + $0x8d0] sm:$0xff] }
 0x2dc   : > { %5653 = vmatprep.subr.bf16.mxu1 %v7670_v44 }
 0x2e1   : > { %5623 = vmatpush1.bf16.xpose.msra.mxu0 %v7685_v9  ;;  %v4733_v9 = vld [vmem:[%s6788_s8 + $0x808] sm:$0xff] }
 0x2e2   : > { %5655 = vmatpush1.bf16.xpose.msra.mxu1 %v7687_v10  ;;  %5625 = vmatprep.subr.bf16.mxu0 %v7689_v11  ;;  %v4737_v10 = vld [vmem:[%s6788_s8 + $0x828] sm:$0xff]  ;;  %v4735_v11 = vld [vmem:[%s6788_s8 + $0x818] sm:$0xff] }
 0x2e3   : > { %5657 = vmatprep.subr.bf16.mxu1 %v7691_v12  ;;  %v4739_v12 = vld [vmem:[%s6788_s8 + $0x838] sm:$0xff] }
 0x2e9   : > { %5627 = vmatpush1.bf16.xpose.msra.mxu0 %v7705_v14  ;;  %v7828_v14 = vpack.c.bf16 %v4737_v10, %v4733_v9  ;;  %v4767_v10 = vld [vmem:[%s6788_s8 + $0x918] sm:$0xff] }
 0x2ea   : > { %5659 = vmatpush1.bf16.xpose.msra.mxu1 %v7707_v15  ;;  %5629 = vmatprep.subr.bf16.mxu0 %v7709_v7  ;;  %v7830_v15 = vpack.c.bf16 %v4739_v12, %v4735_v11  ;;  %v4732_v7 = vld [vmem:[%s6788_s8 + $0x800] sm:$0xff]  ;;  %v4771_v11 = vld [vmem:[%s6788_s8 + $0x938] sm:$0xff] }
 0x2eb   : > { %v1414_v51 = vpop.f32.mrb[14].mxu0  ;;  %5661 = vmatprep.subr.bf16.mxu1 %v7711_v19  ;;  %v4736_v19 = vld [vmem:[%s6788_s8 + $0x820] sm:$0xff] }
 0x2ec   : > { %v1415_v60 = vadd.f32 %v1414_v51, %v7725_v43  ;;  %v1484_v4 = vpop.f32.mrb[14].mxu1  ;;  %v1416_v32 = vpop.f32.mrb[15].mxu0  ;;  %v4734_v43 = vld [vmem:[%s6788_s8 + $0x810] sm:$0xff] }
 0x2ed   : > { %v1486_v31 = vpop.f32.mrb[15].mxu1  ;;  %v4769_v32 = vld [vmem:[%s6788_s8 + $0x928] sm:$0xff] }
 0x2ee   : > { %v7810_v44 = vadd.f32 %v1484_v4, %v1415_v60  ;;  %v4762_v60 = vld [vmem:[%s6788_s8 + $0x8f0] sm:$0xff]  ;;  %v4765_v4 = vld [vmem:[%s6788_s8 + $0x908] sm:$0xff] }
 0x2f1   : > { %5631 = vmatpush1.bf16.xpose.msra.mxu0 %v7727_v61  ;;  %v4738_v61 = vld [vmem:[%s6788_s8 + $0x830] sm:$0xff] }
 0x2f2   : > { %5663 = vmatpush1.bf16.xpose.msra.mxu1 %v7729_v62  ;;  %5633 = vmatprep.subr.bf16.mxu0 %v7731_v0  ;;  %v4741_v62 = vld [vmem:[%s6788_s8 + $0x848] sm:$0xff] }
 0x2f3   : > { %5665 = vmatprep.subr.bf16.mxu1 %v7733_v46  ;;  %v4745_v0 = vld [vmem:[%s6788_s8 + $0x868] sm:$0xff]  ;;  %v7840_v46 = vpack.c.bf16 %v4736_v19, %v4732_v7  ;;  %v7906_v19 = vpack.c.bf16 %v4760_v48, %v4756_v18  ;;  %v4780_v48 = vld [vmem:[%s6788_s8 + $0x980] sm:$0xff] }
 0x2f4   : > { %v7848_v63 = vpack.c.bf16 %v4745_v0, %v4741_v62  ;;  %v7915_v0 = vpack.c.bf16 %v4771_v11, %v4767_v10 }
 0x2f9   : > { %5635 = vmatpush1.bf16.xpose.msra.mxu0 %v7747_v27  ;;  %v4743_v27 = vld [vmem:[%s6788_s8 + $0x858] sm:$0xff] }
 0x2fa   : > { %5667 = vmatpush1.bf16.xpose.msra.mxu1 %v7749_v28  ;;  %5637 = vmatprep.subr.bf16.mxu0 %v7751_v37  ;;  %v4747_v28 = vld [vmem:[%s6788_s8 + $0x878] sm:$0xff]  ;;  %v2065_v37 = vrot.slane %v7423_v39, 3 }
 0x2fb   : > { %5669 = vmatprep.subr.bf16.mxu1 %v7753_v38  ;;  %v7845_v38 = vpack.c.bf16 %v4738_v61, %v4734_v43  ;;  %v7851_v22 = vpack.c.bf16 %v4747_v28, %v4743_v27  ;;  %v7908_v43 = vpack.c.bf16 %v4762_v60, %v4758_v49  ;;  %v7910_v61 = vpack.c.bf16 %v4769_v32, %v4765_v4  ;;  %v4764_v27 = vld [vmem:[%s6788_s8 + $0x900] sm:$0xff]  ;;  %v4786_v60 = vld [vmem:[%s6788_s8 + $0x9b0] sm:$0xff]  ;;  %v4789_v4 = vld [vmem:[%s6788_s8 + $0x9c8] sm:$0xff] }
 0x2fc   : > { %v4768_v28 = vld [vmem:[%s6788_s8 + $0x920] sm:$0xff]  ;;  %v4793_v32 = vld [vmem:[%s6788_s8 + $0x9e8] sm:$0xff] }
 0x2fd   : > { %v4784_v49 = vld [vmem:[%s6788_s8 + $0x9a0] sm:$0xff] }
 0x2fe   : > { %v5706_v10 = vpack.c.bf16 %v4784_v49, %v4780_v48  ;;  %v4817_v48 = vld [vmem:[%s6788_s8 + $0xaa8] sm:$0xff]  ;;  %v4815_v49 = vld [vmem:[%s6788_s8 + $0xa98] sm:$0xff] }
 0x301   : > { %5639 = vmatpush1.bf16.xpose.msra.mxu0 %v7767_v35  ;;  %v4744_v35 = vld [vmem:[%s6788_s8 + $0x860] sm:$0xff] }
 0x302   : > { %5671 = vmatpush1.bf16.xpose.msra.mxu1 %v7769_v36  ;;  %5641 = vmatprep.subr.bf16.mxu0 %v7771_v41  ;;  %v4742_v36 = vld [vmem:[%s6788_s8 + $0x850] sm:$0xff]  ;;  %v7866_v52 = vpack.c.bf16 %v4744_v35, %v4740_v24  ;;  %v4779_v24 = vld [vmem:[%s6788_s8 + $0x978] sm:$0xff]  ;;  %v7929_v35 = vpack.c.bf16 %v4768_v28, %v4764_v27  ;;  %v4788_v27 = vld [vmem:[%s6788_s8 + $0x9c0] sm:$0xff] }
 0x303   : > { %5673 = vmatprep.subr.bf16.mxu1 %v7773_v8  ;;  %v4746_v41 = vld [vmem:[%s6788_s8 + $0x870] sm:$0xff]  ;;  %v4749_v8 = vld [vmem:[%s6788_s8 + $0x888] sm:$0xff]  ;;  %v4792_v28 = vld [vmem:[%s6788_s8 + $0x9e0] sm:$0xff] }
 0x304   : > { %v7868_v59 = vpack.c.bf16 %v4746_v41, %v4742_v36  ;;  %v7870_v1 = vpack.c.bf16 %v4753_v26, %v4749_v8  ;;  %v4772_v26 = vld [vmem:[%s6788_s8 + $0x940] sm:$0xff] }
 0x309   : > { %5643 = vmatpush1.bf16.xpose.msra.mxu0 %v5578_v6  ;;  %v4752_v6 = vld [vmem:[%s6788_s8 + $0x8a0] sm:$0xff] }
 0x30a   : > { %5675 = vmatpush1.bf16.xpose.msra.mxu1 %v5610_v54  ;;  %5645 = vmatprep.subr.bf16.mxu0 %v5580_v42  ;;  %v4750_v54 = vld [vmem:[%s6788_s8 + $0x890] sm:$0xff]  ;;  %v7886_v53 = vpack.c.bf16 %v4752_v6, %v4748_v3  ;;  %v4781_v6 = vld [vmem:[%s6788_s8 + $0x988] sm:$0xff] }
 0x30b   : > { %5677 = vmatprep.subr.bf16.mxu1 %v5612_v13  ;;  %v4754_v42 = vld [vmem:[%s6788_s8 + $0x8b0] sm:$0xff]  ;;  %v4757_v13 = vld [vmem:[%s6788_s8 + $0x8c8] sm:$0xff] }
 0x30c   : > { %v4778_v3 = vld [vmem:[%s6788_s8 + $0x970] sm:$0xff] }
 0x30d   : > { %v7951_v55 = vpack.c.bf16 %v4778_v3, %v4774_v17  ;;  %v2430_v17 = vrot.slane %v7426_v40, 4 }
 0x311   : > { %5647 = vmatpush1.bf16.xpose.msra.mxu0 %v5582_v57  ;;  %v7888_v57 = vpack.c.bf16 %v4754_v42, %v4750_v54  ;;  %v4785_v54 = vld [vmem:[%s6788_s8 + $0x9a8] sm:$0xff]  ;;  %v4783_v42 = vld [vmem:[%s6788_s8 + $0x998] sm:$0xff] }
 0x312   : > { %5679 = vmatpush1.bf16.xpose.msra.mxu1 %v5614_v2  ;;  %5681 = vmatprep.subr.bf16.mxu0 %v7828_v14  ;;  %v7890_v2 = vpack.c.bf16 %v4761_v47, %v4757_v13  ;;  %v4787_v13 = vld [vmem:[%s6788_s8 + $0x9b8] sm:$0xff]  ;;  %v7949_v47 = vpack.c.bf16 %v4776_v34, %v4772_v26  ;;  %v7953_v30 = vpack.c.bf16 %v4785_v54, %v4781_v6  ;;  %v2429_v26 = vrot.slane %v7380_v5, 4 }
 0x313   : > { %5713 = vmatprep.subr.bf16.mxu1 %v7830_v15  ;;  %v7955_v18 = vpack.c.bf16 %v4787_v13, %v4783_v42  ;;  %v2431_v34 = vrot.slane %v7382_v56, 4  ;;  %v2643_v6 = vrot.slane %v9088_v16, 5  ;;  %v2645_v42 = vrot.slane %v9089_v33, 5  ;;  %v4804_v13 = vld [vmem:[%s6788_s8 + $0xa40] sm:$0xff] }
 0x318   : > { %2138 = vmatmul.mubr.f32.vlgmr.msra.gmra.mrb[22].mxu0 %v2065_v37  ;;  %v4766_v37 = vld [vmem:[%s6788_s8 + $0x910] sm:$0xff] }
 0x319   : > { %2208 = vmatmul.mubr.f32.vlgmr.msra.gmra.mrb[22].mxu1 %v2067_v50  ;;  %5683 = vmatpush1.bf16.xpose.msra.mxu0 %v7840_v46  ;;  %v4770_v50 = vld [vmem:[%s6788_s8 + $0x930] sm:$0xff] }
 0x31a   : > { %2351 = vmatprep.mubr.f32.mxu0 %v2280_v21  ;;  %5715 = vmatpush1.bf16.xpose.msra.mxu1 %v7845_v38  ;;  %v4777_v21 = vld [vmem:[%s6788_s8 + $0x968] sm:$0xff]  ;;  %v7931_v36 = vpack.c.bf16 %v4770_v50, %v4766_v37  ;;  %v4790_v37 = vld [vmem:[%s6788_s8 + $0x9d0] sm:$0xff] }
 0x31b   : > { %2421 = vmatprep.mubr.f32.mxu1 %v2282_v23  ;;  %5685 = vmatprep.subr.bf16.mxu0 %v7848_v63  ;;  %v4775_v23 = vld [vmem:[%s6788_s8 + $0x958] sm:$0xff]  ;;  %v4794_v50 = vld [vmem:[%s6788_s8 + $0x9f0] sm:$0xff] }
 0x31c   : > { %5717 = vmatprep.subr.bf16.mxu1 %v7851_v22  ;;  %v7935_v8 = vpack.c.bf16 %v4779_v24, %v4775_v23  ;;  %v2279_v23 = vrot.slane %v7186_v45, 4  ;;  %v2281_v24 = vrot.slane %v7196_v58, 4 }
 0x321   : > { %5687 = vmatpush1.bf16.xpose.msra.mxu0 %v7866_v52 }
 0x322   : > { %5719 = vmatpush1.bf16.xpose.msra.mxu1 %v7868_v59  ;;  %5689 = vmatprep.subr.bf16.mxu0 %v7870_v1 }
 0x323   : > { %5721 = vmatprep.subr.bf16.mxu1 %v7872_v25 }
 0x329   : > { %5691 = vmatpush1.bf16.xpose.msra.mxu0 %v7886_v53 }
 0x32a   : > { %5723 = vmatpush1.bf16.xpose.msra.mxu1 %v7888_v57  ;;  %5693 = vmatprep.subr.bf16.mxu0 %v7890_v2 }
 0x32b   : > { %v1627_v51 = vpop.f32.mrb[16].mxu0  ;;  %5725 = vmatprep.subr.bf16.mxu1 %v7892_v29 }
 0x32c   : > { %v1697_v31 = vpop.f32.mrb[16].mxu1  ;;  %v1629_v9 = vpop.f32.mrb[17].mxu0 }
 0x32d   : > { %v1698_v12 = vadd.f32 %v1697_v31, %v1627_v51  ;;  %v1699_v7 = vpop.f32.mrb[17].mxu1  ;;  %v4782_v51 = vld [vmem:[%s6788_s8 + $0x990] sm:$0xff]  ;;  %v4791_v31 = vld [vmem:[%s6788_s8 + $0x9d8] sm:$0xff] }
 0x32e   : > { %v4795_v9 = vld [vmem:[%s6788_s8 + $0x9f8] sm:$0xff]  ;;  %v5738_v11 = vpack.c.bf16 %v4786_v60, %v4782_v51 }
 0x32f   : > { %v7913_v62 = vadd.f32 %v1698_v12, %v7629_v20  ;;  %v4773_v20 = vld [vmem:[%s6788_s8 + $0x948] sm:$0xff]  ;;  %v5708_v12 = vpack.c.bf16 %v4793_v32, %v4789_v4  ;;  %v5740_v7 = vpack.c.bf16 %v4795_v9, %v4791_v31  ;;  %v4819_v51 = vld [vmem:[%s6788_s8 + $0xab8] sm:$0xff]  ;;  %v4812_v9 = vld [vmem:[%s6788_s8 + $0xa80] sm:$0xff] }
 0x330   : > { %v7933_v41 = vpack.c.bf16 %v4777_v21, %v4773_v20  ;;  %v5710_v20 = vpack.c.bf16 %v4792_v28, %v4788_v27  ;;  %v5742_v21 = vpack.c.bf16 %v4794_v50, %v4790_v37  ;;  %v8054_v31 = vpack.c.bf16 %v4819_v51, %v4815_v49  ;;  %v4825_v27 = vld [vmem:[%s6788_s8 + $0xae8] sm:$0xff]  ;;  %v4823_v28 = vld [vmem:[%s6788_s8 + $0xad8] sm:$0xff]  ;;  %v4840_v49 = vld [vmem:[%s6788_s8 + $0xb60] sm:$0xff] }
 0x331   : > { %5695 = vmatpush1.bf16.xpose.msra.mxu0 %v7906_v19  ;;  %v4827_v37 = vld [vmem:[%s6788_s8 + $0xaf8] sm:$0xff]  ;;  %v4838_v51 = vld [vmem:[%s6788_s8 + $0xb50] sm:$0xff] }
 0x332   : > { %5727 = vmatpush1.bf16.xpose.msra.mxu1 %v7908_v43  ;;  %5697 = vmatprep.subr.bf16.mxu0 %v7910_v61 }
 0x333   : > { %5729 = vmatprep.subr.bf16.mxu1 %v7915_v0 }
 0x339   : > { %5699 = vmatpush1.bf16.xpose.msra.mxu0 %v7929_v35 }
 0x33a   : > { %5731 = vmatpush1.bf16.xpose.msra.mxu1 %v7931_v36  ;;  %5701 = vmatprep.subr.bf16.mxu0 %v7933_v41 }
 0x33b   : > { %5733 = vmatprep.subr.bf16.mxu1 %v7935_v8 }
 0x341   : > { %5703 = vmatpush1.bf16.xpose.msra.mxu0 %v7949_v47 }
 0x342   : > { %5735 = vmatpush1.bf16.xpose.msra.mxu1 %v7951_v55  ;;  %5705 = vmatprep.subr.bf16.mxu0 %v7953_v30 }
 0x343   : > { %5737 = vmatprep.subr.bf16.mxu1 %v7955_v18 }
 0x349   : > { %5707 = vmatpush1.bf16.xpose.msra.mxu0 %v5706_v10 }
 0x34a   : > { %5739 = vmatpush1.bf16.xpose.msra.mxu1 %v5738_v11  ;;  %5709 = vmatprep.subr.bf16.mxu0 %v5708_v12 }
 0x34b   : > { %5741 = vmatprep.subr.bf16.mxu1 %v5740_v7 }
 0x351   : > { %5711 = vmatpush1.bf16.xpose.msra.mxu0 %v5710_v20 }
 0x352   : > { %5743 = vmatpush1.bf16.xpose.msra.mxu1 %v5742_v21  ;;  %5745 = vmatprep.subr.bf16.mxu0 %v7828_v14 }
 0x353   : > { %5777 = vmatprep.subr.bf16.mxu1 %v7830_v15 }
 0x358   : > { %2352 = vmatmul.mubr.f32.vlgmr.msra.gmra.mrb[24].mxu0 %v2279_v23  ;;  %v8074_v23 = vpack.c.bf16 %v4827_v37, %v4823_v28 }
 0x359   : > { %2422 = vmatmul.mubr.f32.vlgmr.msra.gmra.mrb[24].mxu1 %v2281_v24  ;;  %5747 = vmatpush1.bf16.xpose.msra.mxu0 %v7840_v46  ;;  %v4820_v24 = vld [vmem:[%s6788_s8 + $0xac0] sm:$0xff] }
 0x35a   : > { %2500 = vmatprep.mubr.f32.mxu0 %v2429_v26  ;;  %5779 = vmatpush1.bf16.xpose.msra.mxu1 %v7845_v38  ;;  %v4824_v26 = vld [vmem:[%s6788_s8 + $0xae0] sm:$0xff] }
 0x35b   : > { %2570 = vmatprep.mubr.f32.mxu1 %v2431_v34  ;;  %5749 = vmatprep.subr.bf16.mxu0 %v7848_v63  ;;  %v4822_v34 = vld [vmem:[%s6788_s8 + $0xad0] sm:$0xff] }
 0x35c   : > { %5781 = vmatprep.subr.bf16.mxu1 %v7851_v22 }
 0x361   : > { %5751 = vmatpush1.bf16.xpose.msra.mxu0 %v7866_v52  ;;  %v4801_v52 = vld [vmem:[%s6788_s8 + $0xa28] sm:$0xff] }
 0x362   : > { %5783 = vmatpush1.bf16.xpose.msra.mxu1 %v7868_v59  ;;  %5753 = vmatprep.subr.bf16.mxu0 %v7870_v1  ;;  %v4799_v59 = vld [vmem:[%s6788_s8 + $0xa18] sm:$0xff] }
 0x363   : > { %5785 = vmatprep.subr.bf16.mxu1 %v7872_v25  ;;  %v4803_v1 = vld [vmem:[%s6788_s8 + $0xa38] sm:$0xff] }
 0x369   : > { %5755 = vmatpush1.bf16.xpose.msra.mxu0 %v7886_v53  ;;  %v8012_v53 = vpack.c.bf16 %v4803_v1, %v4799_v59  ;;  %v4835_v59 = vld [vmem:[%s6788_s8 + $0xb38] sm:$0xff] }
 0x36a   : > { %5787 = vmatpush1.bf16.xpose.msra.mxu1 %v7888_v57  ;;  %5757 = vmatprep.subr.bf16.mxu0 %v7890_v2  ;;  %v4796_v57 = vld [vmem:[%s6788_s8 + $0xa00] sm:$0xff] }
 0x36b   : > { %v1776_v14 = vpop.f32.mrb[18].mxu0  ;;  %5789 = vmatprep.subr.bf16.mxu1 %v7892_v29  ;;  %v4800_v2 = vld [vmem:[%s6788_s8 + $0xa20] sm:$0xff]  ;;  %v4798_v29 = vld [vmem:[%s6788_s8 + $0xa10] sm:$0xff] }
 0x36c   : > { %v1846_v15 = vpop.f32.mrb[18].mxu1  ;;  %v1778_v46 = vpop.f32.mrb[19].mxu0 }
 0x36d   : > { %v1847_v38 = vadd.f32 %v1846_v15, %v1776_v14  ;;  %v1848_v63 = vpop.f32.mrb[19].mxu1  ;;  %v4826_v15 = vld [vmem:[%s6788_s8 + $0xaf0] sm:$0xff]  ;;  %v4829_v46 = vld [vmem:[%s6788_s8 + $0xb08] sm:$0xff] }
 0x36f   : > { %v7992_v22 = vadd.f32 %v1847_v38, %v7810_v44  ;;  %v4797_v44 = vld [vmem:[%s6788_s8 + $0xa08] sm:$0xff] }
 0x370   : > { %v8010_v25 = vpack.c.bf16 %v4801_v52, %v4797_v44  ;;  %v4833_v38 = vld [vmem:[%s6788_s8 + $0xb28] sm:$0xff]  ;;  %v4831_v52 = vld [vmem:[%s6788_s8 + $0xb18] sm:$0xff] }
 0x371   : > { %5759 = vmatpush1.bf16.xpose.msra.mxu0 %v7906_v19  ;;  %v4802_v19 = vld [vmem:[%s6788_s8 + $0xa30] sm:$0xff] }
 0x372   : > { %5791 = vmatpush1.bf16.xpose.msra.mxu1 %v7908_v43  ;;  %5761 = vmatprep.subr.bf16.mxu0 %v7910_v61  ;;  %v4805_v43 = vld [vmem:[%s6788_s8 + $0xa48] sm:$0xff] }
 0x373   : > { %5793 = vmatprep.subr.bf16.mxu1 %v7915_v0  ;;  %v4809_v61 = vld [vmem:[%s6788_s8 + $0xa68] sm:$0xff]  ;;  %v8022_v0 = vpack.c.bf16 %v4800_v2, %v4796_v57  ;;  %v8088_v2 = vpack.c.bf16 %v4824_v26, %v4820_v24  ;;  %v4844_v26 = vld [vmem:[%s6788_s8 + $0xb80] sm:$0xff] }
 0x374   : > { %v8030_v3 = vpack.c.bf16 %v4809_v61, %v4805_v43  ;;  %v8097_v61 = vpack.c.bf16 %v4835_v59, %v4831_v52 }
 0x379   : > { %5763 = vmatpush1.bf16.xpose.msra.mxu0 %v7929_v35  ;;  %v4807_v35 = vld [vmem:[%s6788_s8 + $0xa58] sm:$0xff] }
 0x37a   : > { %5795 = vmatpush1.bf16.xpose.msra.mxu1 %v7931_v36  ;;  %5765 = vmatprep.subr.bf16.mxu0 %v7933_v41  ;;  %v4811_v36 = vld [vmem:[%s6788_s8 + $0xa78] sm:$0xff]  ;;  %v2428_v41 = vrot.slane %v7423_v39, 4 }
 0x37b   : > { %5797 = vmatprep.subr.bf16.mxu1 %v7935_v8  ;;  %v8027_v8 = vpack.c.bf16 %v4802_v19, %v4798_v29  ;;  %v8033_v54 = vpack.c.bf16 %v4811_v36, %v4807_v35  ;;  %v8090_v29 = vpack.c.bf16 %v4826_v15, %v4822_v34  ;;  %v8092_v19 = vpack.c.bf16 %v4833_v38, %v4829_v46  ;;  %v4828_v35 = vld [vmem:[%s6788_s8 + $0xb00] sm:$0xff]  ;;  %v4850_v15 = vld [vmem:[%s6788_s8 + $0xbb0] sm:$0xff]  ;;  %v4853_v46 = vld [vmem:[%s6788_s8 + $0xbc8] sm:$0xff] }
 0x37c   : > { %v4832_v36 = vld [vmem:[%s6788_s8 + $0xb20] sm:$0xff]  ;;  %v4857_v38 = vld [vmem:[%s6788_s8 + $0xbe8] sm:$0xff] }
 0x37d   : > { %v4848_v34 = vld [vmem:[%s6788_s8 + $0xba0] sm:$0xff] }
 0x37e   : > { %v5834_v52 = vpack.c.bf16 %v4848_v34, %v4844_v26  ;;  %v4881_v26 = vld [vmem:[%s6788_s8 + $0xca8] sm:$0xff]  ;;  %v4879_v34 = vld [vmem:[%s6788_s8 + $0xc98] sm:$0xff] }
 0x381   : > { %5767 = vmatpush1.bf16.xpose.msra.mxu0 %v7949_v47  ;;  %v4808_v47 = vld [vmem:[%s6788_s8 + $0xa60] sm:$0xff] }
 0x382   : > { %5799 = vmatpush1.bf16.xpose.msra.mxu1 %v7951_v55  ;;  %5769 = vmatprep.subr.bf16.mxu0 %v7953_v30  ;;  %v4806_v55 = vld [vmem:[%s6788_s8 + $0xa50] sm:$0xff]  ;;  %v8048_v60 = vpack.c.bf16 %v4808_v47, %v4804_v13  ;;  %v4843_v13 = vld [vmem:[%s6788_s8 + $0xb78] sm:$0xff]  ;;  %v8111_v47 = vpack.c.bf16 %v4832_v36, %v4828_v35  ;;  %v4852_v35 = vld [vmem:[%s6788_s8 + $0xbc0] sm:$0xff] }
 0x383   : > { %5801 = vmatprep.subr.bf16.mxu1 %v7955_v18  ;;  %v4810_v30 = vld [vmem:[%s6788_s8 + $0xa70] sm:$0xff]  ;;  %v4813_v18 = vld [vmem:[%s6788_s8 + $0xa88] sm:$0xff]  ;;  %v4856_v36 = vld [vmem:[%s6788_s8 + $0xbe0] sm:$0xff] }
 0x384   : > { %v8050_v4 = vpack.c.bf16 %v4810_v30, %v4806_v55  ;;  %v8052_v32 = vpack.c.bf16 %v4817_v48, %v4813_v18  ;;  %v4836_v48 = vld [vmem:[%s6788_s8 + $0xb40] sm:$0xff] }
 0x389   : > { %5771 = vmatpush1.bf16.xpose.msra.mxu0 %v5706_v10  ;;  %v4816_v10 = vld [vmem:[%s6788_s8 + $0xaa0] sm:$0xff] }
 0x38a   : > { %5803 = vmatpush1.bf16.xpose.msra.mxu1 %v5738_v11  ;;  %5773 = vmatprep.subr.bf16.mxu0 %v5708_v12  ;;  %v4814_v11 = vld [vmem:[%s6788_s8 + $0xa90] sm:$0xff]  ;;  %v8068_v50 = vpack.c.bf16 %v4816_v10, %v4812_v9  ;;  %v4845_v10 = vld [vmem:[%s6788_s8 + $0xb88] sm:$0xff] }
 0x38b   : > { %5805 = vmatprep.subr.bf16.mxu1 %v5740_v7  ;;  %v4818_v12 = vld [vmem:[%s6788_s8 + $0xab0] sm:$0xff]  ;;  %v4821_v7 = vld [vmem:[%s6788_s8 + $0xac8] sm:$0xff] }
 0x38c   : > { %v4842_v9 = vld [vmem:[%s6788_s8 + $0xb70] sm:$0xff] }
 0x38d   : > { %v8133_v28 = vpack.c.bf16 %v4842_v9, %v4838_v51  ;;  %v2793_v51 = vrot.slane %v7426_v40, 5 }
 0x391   : > { %5775 = vmatpush1.bf16.xpose.msra.mxu0 %v5710_v20  ;;  %v8070_v20 = vpack.c.bf16 %v4818_v12, %v4814_v11  ;;  %v4849_v11 = vld [vmem:[%s6788_s8 + $0xba8] sm:$0xff]  ;;  %v4847_v12 = vld [vmem:[%s6788_s8 + $0xb98] sm:$0xff] }
 0x392   : > { %5807 = vmatpush1.bf16.xpose.msra.mxu1 %v5742_v21  ;;  %5809 = vmatprep.subr.bf16.mxu0 %v8010_v25  ;;  %v8072_v21 = vpack.c.bf16 %v4825_v27, %v4821_v7  ;;  %v4851_v7 = vld [vmem:[%s6788_s8 + $0xbb8] sm:$0xff]  ;;  %v8131_v27 = vpack.c.bf16 %v4840_v49, %v4836_v48  ;;  %v8135_v37 = vpack.c.bf16 %v4849_v11, %v4845_v10  ;;  %v2792_v48 = vrot.slane %v7380_v5, 5 }
 0x393   : > { %5841 = vmatprep.subr.bf16.mxu1 %v8012_v53  ;;  %v8137_v24 = vpack.c.bf16 %v4851_v7, %v4847_v12  ;;  %v2794_v49 = vrot.slane %v7382_v56, 5  ;;  %v3006_v10 = vrot.slane %v9088_v16, 6  ;;  %v3008_v12 = vrot.slane %v9089_v33, 6  ;;  %v4868_v7 = vld [vmem:[%s6788_s8 + $0xc40] sm:$0xff] }
 0x398   : > { %2501 = vmatmul.mubr.f32.vlgmr.msra.gmra.mrb[26].mxu0 %v2428_v41  ;;  %v4830_v41 = vld [vmem:[%s6788_s8 + $0xb10] sm:$0xff] }
 0x399   : > { %2571 = vmatmul.mubr.f32.vlgmr.msra.gmra.mrb[26].mxu1 %v2430_v17  ;;  %5811 = vmatpush1.bf16.xpose.msra.mxu0 %v8022_v0  ;;  %v4834_v17 = vld [vmem:[%s6788_s8 + $0xb30] sm:$0xff] }
 0x39a   : > { %2714 = vmatprep.mubr.f32.mxu0 %v2643_v6  ;;  %5843 = vmatpush1.bf16.xpose.msra.mxu1 %v8027_v8  ;;  %v4841_v6 = vld [vmem:[%s6788_s8 + $0xb68] sm:$0xff]  ;;  %v8113_v55 = vpack.c.bf16 %v4834_v17, %v4830_v41  ;;  %v4854_v41 = vld [vmem:[%s6788_s8 + $0xbd0] sm:$0xff] }
 0x39b   : > { %2784 = vmatprep.mubr.f32.mxu1 %v2645_v42  ;;  %5813 = vmatprep.subr.bf16.mxu0 %v8030_v3  ;;  %v4839_v42 = vld [vmem:[%s6788_s8 + $0xb58] sm:$0xff]  ;;  %v4858_v17 = vld [vmem:[%s6788_s8 + $0xbf0] sm:$0xff] }
 0x39c   : > { %5845 = vmatprep.subr.bf16.mxu1 %v8033_v54  ;;  %v8117_v18 = vpack.c.bf16 %v4843_v13, %v4839_v42  ;;  %v2642_v42 = vrot.slane %v7186_v45, 5  ;;  %v2644_v13 = vrot.slane %v7196_v58, 5 }
 0x3a1   : > { %5815 = vmatpush1.bf16.xpose.msra.mxu0 %v8048_v60 }
 0x3a2   : > { %5847 = vmatpush1.bf16.xpose.msra.mxu1 %v8050_v4  ;;  %5817 = vmatprep.subr.bf16.mxu0 %v8052_v32 }
 0x3a3   : > { %5849 = vmatprep.subr.bf16.mxu1 %v8054_v31 }
 0x3a9   : > { %5819 = vmatpush1.bf16.xpose.msra.mxu0 %v8068_v50 }
 0x3aa   : > { %5851 = vmatpush1.bf16.xpose.msra.mxu1 %v8070_v20  ;;  %5821 = vmatprep.subr.bf16.mxu0 %v8072_v21 }
 0x3ab   : > { %v1990_v14 = vpop.f32.mrb[20].mxu0  ;;  %5853 = vmatprep.subr.bf16.mxu1 %v8074_v23 }
 0x3ac   : > { %v2060_v63 = vpop.f32.mrb[20].mxu1  ;;  %v1992_v44 = vpop.f32.mrb[21].mxu0 }
 0x3ad   : > { %v2061_v1 = vadd.f32 %v2060_v63, %v1990_v14  ;;  %v2062_v57 = vpop.f32.mrb[21].mxu1  ;;  %v4846_v14 = vld [vmem:[%s6788_s8 + $0xb90] sm:$0xff]  ;;  %v4855_v63 = vld [vmem:[%s6788_s8 + $0xbd8] sm:$0xff] }
 0x3ae   : > { %v4859_v44 = vld [vmem:[%s6788_s8 + $0xbf8] sm:$0xff]  ;;  %v5866_v59 = vpack.c.bf16 %v4850_v15, %v4846_v14 }
 0x3af   : > { %v8095_v43 = vadd.f32 %v2061_v1, %v7913_v62  ;;  %v4837_v62 = vld [vmem:[%s6788_s8 + $0xb48] sm:$0xff]  ;;  %v5836_v1 = vpack.c.bf16 %v4857_v38, %v4853_v46  ;;  %v5868_v57 = vpack.c.bf16 %v4859_v44, %v4855_v63  ;;  %v4883_v14 = vld [vmem:[%s6788_s8 + $0xcb8] sm:$0xff]  ;;  %v4876_v44 = vld [vmem:[%s6788_s8 + $0xc80] sm:$0xff] }
 0x3b0   : > { %v8115_v30 = vpack.c.bf16 %v4841_v6, %v4837_v62  ;;  %v5838_v62 = vpack.c.bf16 %v4856_v36, %v4852_v35  ;;  %v5870_v6 = vpack.c.bf16 %v4858_v17, %v4854_v41  ;;  %v8236_v63 = vpack.c.bf16 %v4883_v14, %v4879_v34  ;;  %v4889_v35 = vld [vmem:[%s6788_s8 + $0xce8] sm:$0xff]  ;;  %v4887_v36 = vld [vmem:[%s6788_s8 + $0xcd8] sm:$0xff]  ;;  %v4904_v34 = vld [vmem:[%s6788_s8 + $0xd60] sm:$0xff] }
 0x3b1   : > { %5823 = vmatpush1.bf16.xpose.msra.mxu0 %v8088_v2  ;;  %v4891_v41 = vld [vmem:[%s6788_s8 + $0xcf8] sm:$0xff]  ;;  %v4902_v14 = vld [vmem:[%s6788_s8 + $0xd50] sm:$0xff] }
 0x3b2   : > { %5855 = vmatpush1.bf16.xpose.msra.mxu1 %v8090_v29  ;;  %5825 = vmatprep.subr.bf16.mxu0 %v8092_v19 }
 0x3b3   : > { %5857 = vmatprep.subr.bf16.mxu1 %v8097_v61 }
 0x3b9   : > { %5827 = vmatpush1.bf16.xpose.msra.mxu0 %v8111_v47 }
 0x3ba   : > { %5859 = vmatpush1.bf16.xpose.msra.mxu1 %v8113_v55  ;;  %5829 = vmatprep.subr.bf16.mxu0 %v8115_v30 }
 0x3bb   : > { %5861 = vmatprep.subr.bf16.mxu1 %v8117_v18 }
 0x3c1   : > { %5831 = vmatpush1.bf16.xpose.msra.mxu0 %v8131_v27 }
 0x3c2   : > { %5863 = vmatpush1.bf16.xpose.msra.mxu1 %v8133_v28  ;;  %5833 = vmatprep.subr.bf16.mxu0 %v8135_v37 }
 0x3c3   : > { %5865 = vmatprep.subr.bf16.mxu1 %v8137_v24 }
 0x3c9   : > { %5835 = vmatpush1.bf16.xpose.msra.mxu0 %v5834_v52 }
 0x3ca   : > { %5867 = vmatpush1.bf16.xpose.msra.mxu1 %v5866_v59  ;;  %5837 = vmatprep.subr.bf16.mxu0 %v5836_v1 }
 0x3cb   : > { %5869 = vmatprep.subr.bf16.mxu1 %v5868_v57 }
 0x3d1   : > { %5839 = vmatpush1.bf16.xpose.msra.mxu0 %v5838_v62 }
 0x3d2   : > { %5871 = vmatpush1.bf16.xpose.msra.mxu1 %v5870_v6  ;;  %5873 = vmatprep.subr.bf16.mxu0 %v8010_v25 }
 0x3d3   : > { %5905 = vmatprep.subr.bf16.mxu1 %v8012_v53 }
 0x3d8   : > { %2715 = vmatmul.mubr.f32.vlgmr.msra.gmra.mrb[28].mxu0 %v2642_v42  ;;  %v8256_v42 = vpack.c.bf16 %v4891_v41, %v4887_v36 }
 0x3d9   : > { %2785 = vmatmul.mubr.f32.vlgmr.msra.gmra.mrb[28].mxu1 %v2644_v13  ;;  %5875 = vmatpush1.bf16.xpose.msra.mxu0 %v8022_v0  ;;  %v4884_v13 = vld [vmem:[%s6788_s8 + $0xcc0] sm:$0xff] }
 0x3da   : > { %2863 = vmatprep.mubr.f32.mxu0 %v2792_v48  ;;  %5907 = vmatpush1.bf16.xpose.msra.mxu1 %v8027_v8  ;;  %v4888_v48 = vld [vmem:[%s6788_s8 + $0xce0] sm:$0xff] }
 0x3db   : > { %2933 = vmatprep.mubr.f32.mxu1 %v2794_v49  ;;  %5877 = vmatprep.subr.bf16.mxu0 %v8030_v3  ;;  %v4886_v49 = vld [vmem:[%s6788_s8 + $0xcd0] sm:$0xff] }
 0x3dc   : > { %5909 = vmatprep.subr.bf16.mxu1 %v8033_v54 }
 0x3e1   : > { %5879 = vmatpush1.bf16.xpose.msra.mxu0 %v8048_v60  ;;  %v4865_v60 = vld [vmem:[%s6788_s8 + $0xc28] sm:$0xff] }
 0x3e2   : > { %5911 = vmatpush1.bf16.xpose.msra.mxu1 %v8050_v4  ;;  %5881 = vmatprep.subr.bf16.mxu0 %v8052_v32  ;;  %v4863_v4 = vld [vmem:[%s6788_s8 + $0xc18] sm:$0xff] }
 0x3e3   : > { %5913 = vmatprep.subr.bf16.mxu1 %v8054_v31  ;;  %v4867_v32 = vld [vmem:[%s6788_s8 + $0xc38] sm:$0xff] }
 0x3e9   : > { %5883 = vmatpush1.bf16.xpose.msra.mxu0 %v8068_v50  ;;  %v8194_v50 = vpack.c.bf16 %v4867_v32, %v4863_v4  ;;  %v4899_v4 = vld [vmem:[%s6788_s8 + $0xd38] sm:$0xff] }
 0x3ea   : > { %5915 = vmatpush1.bf16.xpose.msra.mxu1 %v8070_v20  ;;  %5885 = vmatprep.subr.bf16.mxu0 %v8072_v21  ;;  %v4860_v20 = vld [vmem:[%s6788_s8 + $0xc00] sm:$0xff] }
 0x3eb   : > { %v2139_v25 = vpop.f32.mrb[22].mxu0  ;;  %5917 = vmatprep.subr.bf16.mxu1 %v8074_v23  ;;  %v4864_v21 = vld [vmem:[%s6788_s8 + $0xc20] sm:$0xff]  ;;  %v4862_v23 = vld [vmem:[%s6788_s8 + $0xc10] sm:$0xff] }
 0x3ec   : > { %v2209_v53 = vpop.f32.mrb[22].mxu1  ;;  %v2141_v0 = vpop.f32.mrb[23].mxu0 }
 0x3ed   : > { %v2210_v8 = vadd.f32 %v2209_v53, %v2139_v25  ;;  %v2211_v3 = vpop.f32.mrb[23].mxu1  ;;  %v4890_v53 = vld [vmem:[%s6788_s8 + $0xcf0] sm:$0xff]  ;;  %v4893_v0 = vld [vmem:[%s6788_s8 + $0xd08] sm:$0xff] }
 0x3ef   : > { %v8174_v54 = vadd.f32 %v2210_v8, %v7992_v22  ;;  %v4861_v22 = vld [vmem:[%s6788_s8 + $0xc08] sm:$0xff] }
 0x3f0   : > { %v8192_v31 = vpack.c.bf16 %v4865_v60, %v4861_v22  ;;  %v4897_v8 = vld [vmem:[%s6788_s8 + $0xd28] sm:$0xff]  ;;  %v4895_v60 = vld [vmem:[%s6788_s8 + $0xd18] sm:$0xff] }
 0x3f1   : > { %5887 = vmatpush1.bf16.xpose.msra.mxu0 %v8088_v2  ;;  %v4866_v2 = vld [vmem:[%s6788_s8 + $0xc30] sm:$0xff] }
 0x3f2   : > { %5919 = vmatpush1.bf16.xpose.msra.mxu1 %v8090_v29  ;;  %5889 = vmatprep.subr.bf16.mxu0 %v8092_v19  ;;  %v4869_v29 = vld [vmem:[%s6788_s8 + $0xc48] sm:$0xff] }
 0x3f3   : > { %5921 = vmatprep.subr.bf16.mxu1 %v8097_v61  ;;  %v4873_v19 = vld [vmem:[%s6788_s8 + $0xc68] sm:$0xff]  ;;  %v8204_v61 = vpack.c.bf16 %v4864_v21, %v4860_v20  ;;  %v8270_v21 = vpack.c.bf16 %v4888_v48, %v4884_v13  ;;  %v4908_v48 = vld [vmem:[%s6788_s8 + $0xd80] sm:$0xff] }
 0x3f4   : > { %v8212_v9 = vpack.c.bf16 %v4873_v19, %v4869_v29  ;;  %v8279_v19 = vpack.c.bf16 %v4899_v4, %v4895_v60 }
 0x3f9   : > { %5891 = vmatpush1.bf16.xpose.msra.mxu0 %v8111_v47  ;;  %v4871_v47 = vld [vmem:[%s6788_s8 + $0xc58] sm:$0xff] }
 0x3fa   : > { %5923 = vmatpush1.bf16.xpose.msra.mxu1 %v8113_v55  ;;  %5893 = vmatprep.subr.bf16.mxu0 %v8115_v30  ;;  %v4875_v55 = vld [vmem:[%s6788_s8 + $0xc78] sm:$0xff]  ;;  %v2791_v30 = vrot.slane %v7423_v39, 5 }
 0x3fb   : > { %5925 = vmatprep.subr.bf16.mxu1 %v8117_v18  ;;  %v8209_v18 = vpack.c.bf16 %v4866_v2, %v4862_v23  ;;  %v8215_v11 = vpack.c.bf16 %v4875_v55, %v4871_v47  ;;  %v8272_v23 = vpack.c.bf16 %v4890_v53, %v4886_v49  ;;  %v8274_v2 = vpack.c.bf16 %v4897_v8, %v4893_v0  ;;  %v4892_v47 = vld [vmem:[%s6788_s8 + $0xd00] sm:$0xff]  ;;  %v4914_v53 = vld [vmem:[%s6788_s8 + $0xdb0] sm:$0xff]  ;;  %v4917_v0 = vld [vmem:[%s6788_s8 + $0xdc8] sm:$0xff] }
 0x3fc   : > { %v4896_v55 = vld [vmem:[%s6788_s8 + $0xd20] sm:$0xff]  ;;  %v4921_v8 = vld [vmem:[%s6788_s8 + $0xde8] sm:$0xff] }
 0x3fd   : > { %v4912_v49 = vld [vmem:[%s6788_s8 + $0xda0] sm:$0xff] }
 0x3fe   : > { %v5962_v60 = vpack.c.bf16 %v4912_v49, %v4908_v48  ;;  %v4947_v48 = vld [vmem:[%s6788_s8 + $0xeb8] sm:$0xff] }
 0x401   : > { %5895 = vmatpush1.bf16.xpose.msra.mxu0 %v8131_v27  ;;  %v4872_v27 = vld [vmem:[%s6788_s8 + $0xc60] sm:$0xff] }
 0x402   : > { %5927 = vmatpush1.bf16.xpose.msra.mxu1 %v8133_v28  ;;  %5897 = vmatprep.subr.bf16.mxu0 %v8135_v37  ;;  %v4870_v28 = vld [vmem:[%s6788_s8 + $0xc50] sm:$0xff]  ;;  %v8230_v15 = vpack.c.bf16 %v4872_v27, %v4868_v7  ;;  %v4907_v7 = vld [vmem:[%s6788_s8 + $0xd78] sm:$0xff]  ;;  %v8293_v27 = vpack.c.bf16 %v4896_v55, %v4892_v47  ;;  %v4916_v47 = vld [vmem:[%s6788_s8 + $0xdc0] sm:$0xff] }
 0x403   : > { %5929 = vmatprep.subr.bf16.mxu1 %v8137_v24  ;;  %v4874_v37 = vld [vmem:[%s6788_s8 + $0xc70] sm:$0xff]  ;;  %v4877_v24 = vld [vmem:[%s6788_s8 + $0xc88] sm:$0xff]  ;;  %v4920_v55 = vld [vmem:[%s6788_s8 + $0xde0] sm:$0xff] }
 0x404   : > { %v8232_v46 = vpack.c.bf16 %v4874_v37, %v4870_v28  ;;  %v8234_v38 = vpack.c.bf16 %v4881_v26, %v4877_v24  ;;  %v4900_v26 = vld [vmem:[%s6788_s8 + $0xd40] sm:$0xff] }
 0x409   : > { %5899 = vmatpush1.bf16.xpose.msra.mxu0 %v5834_v52  ;;  %v4880_v52 = vld [vmem:[%s6788_s8 + $0xca0] sm:$0xff] }
 0x40a   : > { %5931 = vmatpush1.bf16.xpose.msra.mxu1 %v5866_v59  ;;  %5901 = vmatprep.subr.bf16.mxu0 %v5836_v1  ;;  %v4878_v59 = vld [vmem:[%s6788_s8 + $0xc90] sm:$0xff]  ;;  %v8250_v17 = vpack.c.bf16 %v4880_v52, %v4876_v44  ;;  %v4909_v52 = vld [vmem:[%s6788_s8 + $0xd88] sm:$0xff] }
 0x40b   : > { %5933 = vmatprep.subr.bf16.mxu1 %v5868_v57  ;;  %v4882_v1 = vld [vmem:[%s6788_s8 + $0xcb0] sm:$0xff]  ;;  %v4885_v57 = vld [vmem:[%s6788_s8 + $0xcc8] sm:$0xff] }
 0x40c   : > { %v4906_v44 = vld [vmem:[%s6788_s8 + $0xd70] sm:$0xff] }
 0x40d   : > { %v8315_v36 = vpack.c.bf16 %v4906_v44, %v4902_v14  ;;  %v3156_v14 = vrot.slane %v7426_v40, 6 }
 0x411   : > { %5903 = vmatpush1.bf16.xpose.msra.mxu0 %v5838_v62  ;;  %v8252_v62 = vpack.c.bf16 %v4882_v1, %v4878_v59  ;;  %v4913_v59 = vld [vmem:[%s6788_s8 + $0xda8] sm:$0xff]  ;;  %v4911_v1 = vld [vmem:[%s6788_s8 + $0xd98] sm:$0xff] }
 0x412   : > { %5935 = vmatpush1.bf16.xpose.msra.mxu1 %v5870_v6  ;;  %5937 = vmatprep.subr.bf16.mxu0 %v8192_v31  ;;  %v8254_v6 = vpack.c.bf16 %v4889_v35, %v4885_v57  ;;  %v4915_v57 = vld [vmem:[%s6788_s8 + $0xdb8] sm:$0xff]  ;;  %v8313_v35 = vpack.c.bf16 %v4904_v34, %v4900_v26  ;;  %v8317_v41 = vpack.c.bf16 %v4913_v59, %v4909_v52  ;;  %v3155_v26 = vrot.slane %v7380_v5, 6 }
 0x413   : > { %5969 = vmatprep.subr.bf16.mxu1 %v8194_v50  ;;  %v8319_v13 = vpack.c.bf16 %v4915_v57, %v4911_v1  ;;  %v3157_v34 = vrot.slane %v7382_v56, 6  ;;  %v3369_v52 = vrot.slane %v9088_v16, 7  ;;  %v3371_v1 = vrot.slane %v9089_v33, 7  ;;  %v4932_v57 = vld [vmem:[%s6788_s8 + $0xe40] sm:$0xff]  ;;  %v4938_v16 = vld [vmem:[%s6788_s8 + $0xe70] sm:$0xff]  ;;  %v4943_v33 = vld [vmem:[%s6788_s8 + $0xe98] sm:$0xff] }
 0x418   : > { %2864 = vmatmul.mubr.f32.vlgmr.msra.gmra.mrb[30].mxu0 %v2791_v30  ;;  %v4894_v30 = vld [vmem:[%s6788_s8 + $0xd10] sm:$0xff] }
 0x419   : > { %2934 = vmatmul.mubr.f32.vlgmr.msra.gmra.mrb[30].mxu1 %v2793_v51  ;;  %5939 = vmatpush1.bf16.xpose.msra.mxu0 %v8204_v61  ;;  %v4898_v51 = vld [vmem:[%s6788_s8 + $0xd30] sm:$0xff] }
 0x41a   : > { %3077 = vmatprep.mubr.f32.mxu0 %v3006_v10  ;;  %5971 = vmatpush1.bf16.xpose.msra.mxu1 %v8209_v18  ;;  %v4905_v10 = vld [vmem:[%s6788_s8 + $0xd68] sm:$0xff]  ;;  %v8295_v28 = vpack.c.bf16 %v4898_v51, %v4894_v30  ;;  %v4918_v30 = vld [vmem:[%s6788_s8 + $0xdd0] sm:$0xff] }
 0x41b   : > { %3147 = vmatprep.mubr.f32.mxu1 %v3008_v12  ;;  %5941 = vmatprep.subr.bf16.mxu0 %v8212_v9  ;;  %v4903_v12 = vld [vmem:[%s6788_s8 + $0xd58] sm:$0xff]  ;;  %v4922_v51 = vld [vmem:[%s6788_s8 + $0xdf0] sm:$0xff] }
 0x41c   : > { %5973 = vmatprep.subr.bf16.mxu1 %v8215_v11  ;;  %v8299_v24 = vpack.c.bf16 %v4907_v7, %v4903_v12  ;;  %v3005_v12 = vrot.slane %v7186_v45, 6  ;;  %v3007_v7 = vrot.slane %v7196_v58, 6 }
 0x421   : > { %5943 = vmatpush1.bf16.xpose.msra.mxu0 %v8230_v15 }
 0x422   : > { %5975 = vmatpush1.bf16.xpose.msra.mxu1 %v8232_v46  ;;  %5945 = vmatprep.subr.bf16.mxu0 %v8234_v38 }
 0x423   : > { %5977 = vmatprep.subr.bf16.mxu1 %v8236_v63 }
 0x429   : > { %5947 = vmatpush1.bf16.xpose.msra.mxu0 %v8250_v17 }
 0x42a   : > { %5979 = vmatpush1.bf16.xpose.msra.mxu1 %v8252_v62  ;;  %5949 = vmatprep.subr.bf16.mxu0 %v8254_v6 }
 0x42b   : > { %v2353_v25 = vpop.f32.mrb[24].mxu0  ;;  %5981 = vmatprep.subr.bf16.mxu1 %v8256_v42 }
 0x42c   : > { %v2423_v3 = vpop.f32.mrb[24].mxu1  ;;  %v2355_v22 = vpop.f32.mrb[25].mxu0 }
 0x42d   : > { %v2424_v32 = vadd.f32 %v2423_v3, %v2353_v25  ;;  %v2425_v20 = vpop.f32.mrb[25].mxu1  ;;  %v4910_v25 = vld [vmem:[%s6788_s8 + $0xd90] sm:$0xff]  ;;  %v4919_v3 = vld [vmem:[%s6788_s8 + $0xdd8] sm:$0xff] }
 0x42e   : > { %v4923_v22 = vld [vmem:[%s6788_s8 + $0xdf8] sm:$0xff]  ;;  %v5994_v4 = vpack.c.bf16 %v4914_v53, %v4910_v25 }
 0x42f   : > { %v8277_v29 = vadd.f32 %v2424_v32, %v8095_v43  ;;  %v4901_v43 = vld [vmem:[%s6788_s8 + $0xd48] sm:$0xff]  ;;  %v5964_v32 = vpack.c.bf16 %v4921_v8, %v4917_v0  ;;  %v5996_v20 = vpack.c.bf16 %v4923_v22, %v4919_v3  ;;  %v8418_v0 = vpack.c.bf16 %v4947_v48, %v4943_v33  ;;  %v4940_v8 = vld [vmem:[%s6788_s8 + $0xe80] sm:$0xff]  ;;  %v4942_v22 = vld [vmem:[%s6788_s8 + $0xe90] sm:$0xff] }
 0x430   : > { %v8297_v37 = vpack.c.bf16 %v4905_v10, %v4901_v43  ;;  %v5966_v43 = vpack.c.bf16 %v4920_v55, %v4916_v47  ;;  %v5998_v10 = vpack.c.bf16 %v4922_v51, %v4918_v30  ;;  %v4944_v3 = vld [vmem:[%s6788_s8 + $0xea0] sm:$0xff]  ;;  %v4955_v47 = vld [vmem:[%s6788_s8 + $0xef8] sm:$0xff]  ;;  %v4970_v33 = vld [vmem:[%s6788_s8 + $0xf70] sm:$0xff] }
 0x431   : > { %5951 = vmatpush1.bf16.xpose.msra.mxu0 %v8270_v21  ;;  %v8432_v55 = vpack.c.bf16 %v4944_v3, %v4940_v8  ;;  %v4973_v48 = vld [vmem:[%s6788_s8 + $0xf88] sm:$0xff]  ;;  %v4975_v3 = vld [vmem:[%s6788_s8 + $0xf98] sm:$0xff] }
 0x432   : > { %5983 = vmatpush1.bf16.xpose.msra.mxu1 %v8272_v23  ;;  %5953 = vmatprep.subr.bf16.mxu0 %v8274_v2  ;;  %v4977_v8 = vld [vmem:[%s6788_s8 + $0xfa8] sm:$0xff] }
 0x433   : > { %5985 = vmatprep.subr.bf16.mxu1 %v8279_v19 }
 0x439   : > { %5955 = vmatpush1.bf16.xpose.msra.mxu0 %v8293_v27 }
 0x43a   : > { %5987 = vmatpush1.bf16.xpose.msra.mxu1 %v8295_v28  ;;  %5957 = vmatprep.subr.bf16.mxu0 %v8297_v37 }
 0x43b   : > { %5989 = vmatprep.subr.bf16.mxu1 %v8299_v24 }
 0x441   : > { %5959 = vmatpush1.bf16.xpose.msra.mxu0 %v8313_v35 }
 0x442   : > { %5991 = vmatpush1.bf16.xpose.msra.mxu1 %v8315_v36  ;;  %5961 = vmatprep.subr.bf16.mxu0 %v8317_v41 }
 0x443   : > { %5993 = vmatprep.subr.bf16.mxu1 %v8319_v13 }
 0x449   : > { %5963 = vmatpush1.bf16.xpose.msra.mxu0 %v5962_v60 }
 0x44a   : > { %5995 = vmatpush1.bf16.xpose.msra.mxu1 %v5994_v4  ;;  %5965 = vmatprep.subr.bf16.mxu0 %v5964_v32 }
 0x44b   : > { %5997 = vmatprep.subr.bf16.mxu1 %v5996_v20 }
 0x451   : > { %5967 = vmatpush1.bf16.xpose.msra.mxu0 %v5966_v43 }
 0x452   : > { %5999 = vmatpush1.bf16.xpose.msra.mxu1 %v5998_v10  ;;  %6001 = vmatprep.subr.bf16.mxu0 %v8192_v31 }
 0x453   : > { %6033 = vmatprep.subr.bf16.mxu1 %v8194_v50 }
 0x458   : > { %3078 = vmatmul.mubr.f32.vlgmr.msra.gmra.mrb[32].mxu0 %v3005_v12  ;;  %v4952_v12 = vld [vmem:[%s6788_s8 + $0xee0] sm:$0xff] }
 0x459   : > { %3148 = vmatmul.mubr.f32.vlgmr.msra.gmra.mrb[32].mxu1 %v3007_v7  ;;  %6003 = vmatpush1.bf16.xpose.msra.mxu0 %v8204_v61  ;;  %v4950_v7 = vld [vmem:[%s6788_s8 + $0xed0] sm:$0xff] }
 0x45a   : > { %3226 = vmatprep.mubr.f32.mxu0 %v3155_v26  ;;  %6035 = vmatpush1.bf16.xpose.msra.mxu1 %v8209_v18 }
 0x45b   : > { %3296 = vmatprep.mubr.f32.mxu1 %v3157_v34  ;;  %6005 = vmatprep.subr.bf16.mxu0 %v8212_v9  ;;  %v4954_v34 = vld [vmem:[%s6788_s8 + $0xef0] sm:$0xff] }
 0x45c   : > { %6037 = vmatprep.subr.bf16.mxu1 %v8215_v11 }
 0x461   : > { %6007 = vmatpush1.bf16.xpose.msra.mxu0 %v8230_v15  ;;  %v4929_v15 = vld [vmem:[%s6788_s8 + $0xe28] sm:$0xff] }
 0x462   : > { %6039 = vmatpush1.bf16.xpose.msra.mxu1 %v8232_v46  ;;  %6009 = vmatprep.subr.bf16.mxu0 %v8234_v38  ;;  %v4927_v46 = vld [vmem:[%s6788_s8 + $0xe18] sm:$0xff] }
 0x463   : > { %6041 = vmatprep.subr.bf16.mxu1 %v8236_v63  ;;  %v4931_v38 = vld [vmem:[%s6788_s8 + $0xe38] sm:$0xff] }
 0x469   : > { %6011 = vmatpush1.bf16.xpose.msra.mxu0 %v8250_v17  ;;  %v8376_v17 = vpack.c.bf16 %v4931_v38, %v4927_v46 }
 0x46a   : > { %6043 = vmatpush1.bf16.xpose.msra.mxu1 %v8252_v62  ;;  %6013 = vmatprep.subr.bf16.mxu0 %v8254_v6  ;;  %v4924_v62 = vld [vmem:[%s6788_s8 + $0xe00] sm:$0xff] }
 0x46b   : > { %v2502_v31 = vpop.f32.mrb[26].mxu0  ;;  %6045 = vmatprep.subr.bf16.mxu1 %v8256_v42  ;;  %v4928_v6 = vld [vmem:[%s6788_s8 + $0xe20] sm:$0xff]  ;;  %v4926_v42 = vld [vmem:[%s6788_s8 + $0xe10] sm:$0xff] }
 0x46c   : > { %v2572_v50 = vpop.f32.mrb[26].mxu1  ;;  %v2504_v61 = vpop.f32.mrb[27].mxu0 }
 0x46d   : > { %v2573_v18 = vadd.f32 %v2572_v50, %v2502_v31  ;;  %v2574_v9 = vpop.f32.mrb[27].mxu1  ;;  %v4957_v31 = vld [vmem:[%s6788_s8 + $0xf08] sm:$0xff] }
 0x46e   : > { %v4961_v50 = vld [vmem:[%s6788_s8 + $0xf28] sm:$0xff]  ;;  %v4959_v9 = vld [vmem:[%s6788_s8 + $0xf18] sm:$0xff] }
 0x46f   : > { %v8356_v11 = vadd.f32 %v2573_v18, %v8174_v54  ;;  %v4925_v54 = vld [vmem:[%s6788_s8 + $0xe08] sm:$0xff] }
 0x470   : > { %v8374_v63 = vpack.c.bf16 %v4929_v15, %v4925_v54  ;;  %v4963_v54 = vld [vmem:[%s6788_s8 + $0xf38] sm:$0xff] }
 0x471   : > { %6015 = vmatpush1.bf16.xpose.msra.mxu0 %v8270_v21  ;;  %v4930_v21 = vld [vmem:[%s6788_s8 + $0xe30] sm:$0xff] }
 0x472   : > { %6047 = vmatpush1.bf16.xpose.msra.mxu1 %v8272_v23  ;;  %6017 = vmatprep.subr.bf16.mxu0 %v8274_v2  ;;  %v4933_v23 = vld [vmem:[%s6788_s8 + $0xe48] sm:$0xff] }
 0x473   : > { %6049 = vmatprep.subr.bf16.mxu1 %v8279_v19  ;;  %v4937_v2 = vld [vmem:[%s6788_s8 + $0xe68] sm:$0xff]  ;;  %v8386_v19 = vpack.c.bf16 %v4928_v6, %v4924_v62  ;;  %v8454_v62 = vpack.c.bf16 %v4954_v34, %v4950_v7  ;;  %v8456_v6 = vpack.c.bf16 %v4961_v50, %v4957_v31  ;;  %v4978_v7 = vld [vmem:[%s6788_s8 + $0xfb0] sm:$0xff]  ;;  %v4983_v31 = vld [vmem:[%s6788_s8 + $0xfd8] sm:$0xff] }
 0x474   : > { %v8394_v44 = vpack.c.bf16 %v4937_v2, %v4933_v23  ;;  %v4956_v23 = vld [vmem:[%s6788_s8 + $0xf00] sm:$0xff]  ;;  %v4985_v34 = vld [vmem:[%s6788_s8 + $0xfe8] sm:$0xff]  ;;  %v4987_v50 = vld [vmem:[%s6788_s8 + $0xff8] sm:$0xff] }
 0x475   : > { %v4960_v2 = vld [vmem:[%s6788_s8 + $0xf20] sm:$0xff] }
 0x479   : > { %6019 = vmatpush1.bf16.xpose.msra.mxu0 %v8293_v27  ;;  %v4935_v27 = vld [vmem:[%s6788_s8 + $0xe58] sm:$0xff] }
 0x47a   : > { %6051 = vmatpush1.bf16.xpose.msra.mxu1 %v8295_v28  ;;  %6021 = vmatprep.subr.bf16.mxu0 %v8297_v37  ;;  %v4939_v28 = vld [vmem:[%s6788_s8 + $0xe78] sm:$0xff]  ;;  %v3154_v37 = vrot.slane %v7423_v39, 6 }
 0x47b   : > { %6053 = vmatprep.subr.bf16.mxu1 %v8299_v24  ;;  %v8391_v24 = vpack.c.bf16 %v4930_v21, %v4926_v42  ;;  %v8397_v59 = vpack.c.bf16 %v4939_v28, %v4935_v27  ;;  %v8461_v21 = vpack.c.bf16 %v4963_v54, %v4959_v9  ;;  %v4958_v27 = vld [vmem:[%s6788_s8 + $0xf10] sm:$0xff]  ;;  %v6124_v54 = vpack.c.bf16 %v4987_v50, %v4983_v31  ;;  %v5004_v31 = vld [vmem:[%s6788_s8 + $0x1080] sm:$0xff] }
 0x47c   : > { %v4962_v28 = vld [vmem:[%s6788_s8 + $0xf30] sm:$0xff]  ;;  %v5008_v50 = vld [vmem:[%s6788_s8 + $0x10a0] sm:$0xff] }
 0x481   : > { %6023 = vmatpush1.bf16.xpose.msra.mxu0 %v8313_v35  ;;  %v4936_v35 = vld [vmem:[%s6788_s8 + $0xe60] sm:$0xff] }
 0x482   : > { %6055 = vmatpush1.bf16.xpose.msra.mxu1 %v8315_v36  ;;  %6025 = vmatprep.subr.bf16.mxu0 %v8317_v41  ;;  %v4934_v36 = vld [vmem:[%s6788_s8 + $0xe50] sm:$0xff]  ;;  %v4941_v41 = vld [vmem:[%s6788_s8 + $0xe88] sm:$0xff]  ;;  %v8412_v49 = vpack.c.bf16 %v4936_v35, %v4932_v57  ;;  %v8477_v57 = vpack.c.bf16 %v4962_v28, %v4958_v27 }
 0x483   : > { %6057 = vmatprep.subr.bf16.mxu1 %v8319_v13  ;;  %v4945_v13 = vld [vmem:[%s6788_s8 + $0xea8] sm:$0xff]  ;;  %v8414_v25 = vpack.c.bf16 %v4938_v16, %v4934_v36  ;;  %v4964_v16 = vld [vmem:[%s6788_s8 + $0xf40] sm:$0xff] }
 0x484   : > { %v8416_v53 = vpack.c.bf16 %v4945_v13, %v4941_v41  ;;  %v4968_v41 = vld [vmem:[%s6788_s8 + $0xf60] sm:$0xff]  ;;  %v4966_v13 = vld [vmem:[%s6788_s8 + $0xf50] sm:$0xff] }
 0x489   : > { %6027 = vmatpush1.bf16.xpose.msra.mxu0 %v5962_v60  ;;  %v4946_v60 = vld [vmem:[%s6788_s8 + $0xeb0] sm:$0xff] }
 0x48a   : > { %6059 = vmatpush1.bf16.xpose.msra.mxu1 %v5994_v4  ;;  %6029 = vmatprep.subr.bf16.mxu0 %v5964_v32  ;;  %v4949_v4 = vld [vmem:[%s6788_s8 + $0xec8] sm:$0xff]  ;;  %v8434_v30 = vpack.c.bf16 %v4946_v60, %v4942_v22  ;;  %v4979_v22 = vld [vmem:[%s6788_s8 + $0xfb8] sm:$0xff]  ;;  %v8495_v60 = vpack.c.bf16 %v4968_v41, %v4964_v16  ;;  %v3517_v41 = vrot.slane %v7423_v39, 7 }
 0x48b   : > { %6061 = vmatprep.subr.bf16.mxu1 %v5996_v20  ;;  %v4953_v32 = vld [vmem:[%s6788_s8 + $0xee8] sm:$0xff]  ;;  %v4951_v20 = vld [vmem:[%s6788_s8 + $0xed8] sm:$0xff] }
 0x48c   : > { %v8436_v51 = vpack.c.bf16 %v4953_v32, %v4949_v4  ;;  %v8497_v4 = vpack.c.bf16 %v4970_v33, %v4966_v13  ;;  %v8499_v32 = vpack.c.bf16 %v4977_v8, %v4973_v48  ;;  %v3519_v33 = vrot.slane %v7426_v40, 7 }
 0x491   : > { %6031 = vmatpush1.bf16.xpose.msra.mxu0 %v5966_v43  ;;  %v8438_v43 = vpack.c.bf16 %v4955_v47, %v4951_v20  ;;  %v8501_v20 = vpack.c.bf16 %v4979_v22, %v4975_v3  ;;  %v4972_v47 = vld [vmem:[%s6788_s8 + $0xf80] sm:$0xff] }
 0x492   : > { %6063 = vmatpush1.bf16.xpose.msra.mxu1 %v5998_v10  ;;  %6065 = vmatprep.subr.bf16.mxu0 %v8374_v63  ;;  %v4948_v10 = vld [vmem:[%s6788_s8 + $0xec0] sm:$0xff] }
 0x493   : > { %6097 = vmatprep.subr.bf16.mxu1 %v8376_v17  ;;  %v8452_v38 = vpack.c.bf16 %v4952_v12, %v4948_v10  ;;  %v4976_v10 = vld [vmem:[%s6788_s8 + $0xfa0] sm:$0xff]  ;;  %v4974_v12 = vld [vmem:[%s6788_s8 + $0xf90] sm:$0xff] }
 0x494   : > { %v4996_v3 = vld [vmem:[%s6788_s8 + $0x1040] sm:$0xff] }
 0x495   : > { %v5000_v22 = vld [vmem:[%s6788_s8 + $0x1060] sm:$0xff] }
 0x498   : > { %3227 = vmatmul.mubr.f32.vlgmr.msra.gmra.mrb[34].mxu0 %v3154_v37  ;;  %v4969_v37 = vld [vmem:[%s6788_s8 + $0xf68] sm:$0xff] }
 0x499   : > { %3297 = vmatmul.mubr.f32.vlgmr.msra.gmra.mrb[34].mxu1 %v3156_v14  ;;  %6067 = vmatpush1.bf16.xpose.msra.mxu0 %v8386_v19  ;;  %v4967_v14 = vld [vmem:[%s6788_s8 + $0xf58] sm:$0xff] }
 0x49a   : > { %3440 = vmatprep.mubr.f32.mxu0 %v3369_v52  ;;  %6099 = vmatpush1.bf16.xpose.msra.mxu1 %v8391_v24  ;;  %v4971_v52 = vld [vmem:[%s6788_s8 + $0xf78] sm:$0xff] }
 0x49b   : > { %3510 = vmatprep.mubr.f32.mxu1 %v3371_v1  ;;  %6069 = vmatprep.subr.bf16.mxu0 %v8394_v44  ;;  %v8475_v1 = vpack.c.bf16 %v4960_v2, %v4956_v23  ;;  %v8481_v36 = vpack.c.bf16 %v4971_v52, %v4967_v14  ;;  %v4982_v23 = vld [vmem:[%s6788_s8 + $0xfd0] sm:$0xff]  ;;  %v3518_v14 = vrot.slane %v7380_v5, 7  ;;  %v3520_v52 = vrot.slane %v7382_v56, 7 }
 0x49c   : > { %6101 = vmatprep.subr.bf16.mxu1 %v8397_v59  ;;  %v4986_v2 = vld [vmem:[%s6788_s8 + $0xff0] sm:$0xff] }
 0x49d   : > { %v6126_v28 = vpack.c.bf16 %v4986_v2, %v4982_v23  ;;  %v8622_v23 = vpack.c.bf16 %v5008_v50, %v5004_v31 }
 0x4a1   : > { %6071 = vmatpush1.bf16.xpose.msra.mxu0 %v8412_v49 }
 0x4a2   : > { %6103 = vmatpush1.bf16.xpose.msra.mxu1 %v8414_v25  ;;  %6073 = vmatprep.subr.bf16.mxu0 %v8416_v53 }
 0x4a3   : > { %6105 = vmatprep.subr.bf16.mxu1 %v8418_v0 }
 0x4a9   : > { %6075 = vmatpush1.bf16.xpose.msra.mxu0 %v8432_v55 }
 0x4aa   : > { %6107 = vmatpush1.bf16.xpose.msra.mxu1 %v8434_v30  ;;  %6077 = vmatprep.subr.bf16.mxu0 %v8436_v51 }
 0x4ab   : > { %v2716_v26 = vpop.f32.mrb[28].mxu0  ;;  %6109 = vmatprep.subr.bf16.mxu1 %v8438_v43 }
 0x4ac   : > { %v2786_v61 = vpop.f32.mrb[28].mxu1  ;;  %v2718_v18 = vpop.f32.mrb[29].mxu0 }
 0x4ad   : > { %v2787_v15 = vadd.f32 %v2786_v61, %v2716_v26  ;;  %v2788_v46 = vpop.f32.mrb[29].mxu1  ;;  %v4981_v26 = vld [vmem:[%s6788_s8 + $0xfc8] sm:$0xff]  ;;  %v6090_v61 = vpack.c.bf16 %v4976_v10, %v4972_v47  ;;  %v6122_v18 = vpack.c.bf16 %v4978_v7, %v4974_v12  ;;  %v5007_v47 = vld [vmem:[%s6788_s8 + $0x1098] sm:$0xff]  ;;  %v8602_v12 = vpack.c.bf16 %v5000_v22, %v4996_v3  ;;  %v5028_v3 = vld [vmem:[%s6788_s8 + $0x1140] sm:$0xff] }
 0x4ae   : > { %v6092_v9 = vpack.c.bf16 %v4985_v34, %v4981_v26  ;;  %v4984_v46 = vld [vmem:[%s6788_s8 + $0xfe0] sm:$0xff]  ;;  %v5011_v10 = vld [vmem:[%s6788_s8 + $0x10b8] sm:$0xff] }
 0x4af   : > { %v8459_v42 = vadd.f32 %v2787_v15, %v8277_v29  ;;  %v4965_v29 = vld [vmem:[%s6788_s8 + $0xf48] sm:$0xff]  ;;  %v4980_v15 = vld [vmem:[%s6788_s8 + $0xfc0] sm:$0xff]  ;;  %v8608_v34 = vpack.c.bf16 %v5011_v10, %v5007_v47  ;;  %v5039_v47 = vld [vmem:[%s6788_s8 + $0x1198] sm:$0xff] }
 0x4b0   : > { %v8479_v35 = vpack.c.bf16 %v4969_v37, %v4965_v29  ;;  %v6094_v27 = vpack.c.bf16 %v4984_v46, %v4980_v15  ;;  %v3368_v29 = vrot.slane %v7186_v45, 7  ;;  %v3370_v37 = vrot.slane %v7196_v58, 7  ;;  %v5015_v15 = vld [vmem:[%s6788_s8 + $0x10d8] sm:$0xff]  ;;  %v5032_v22 = vld [vmem:[%s6788_s8 + $0x1160] sm:$0xff] }
 0x4b1   : > { %6079 = vmatpush1.bf16.xpose.msra.mxu0 %v8452_v38  ;;  %v5019_v46 = vld [vmem:[%s6788_s8 + $0x10f8] sm:$0xff]  ;;  %v8685_v31 = vpack.c.bf16 %v5032_v22, %v5028_v3 }
 0x4b2   : > { %6111 = vmatpush1.bf16.xpose.msra.mxu1 %v8454_v62  ;;  %6081 = vmatprep.subr.bf16.mxu0 %v8456_v6  ;;  %v5043_v10 = vld [vmem:[%s6788_s8 + $0x11b8] sm:$0xff] }
 0x4b3   : > { %6113 = vmatprep.subr.bf16.mxu1 %v8461_v21  ;;  %v9096_v22 = vld [vmem:[#allocation23_spill] sm:$0xff] }
 0x4b4   : > { %vm758_vm15 = vcmp.gt.f32.partialorder %v9096_v22, 0.0 }
 0x4b9   : > { %6083 = vmatpush1.bf16.xpose.msra.mxu0 %v8475_v1 }
 0x4ba   : > { %6115 = vmatpush1.bf16.xpose.msra.mxu1 %v8477_v57  ;;  %6085 = vmatprep.subr.bf16.mxu0 %v8479_v35 }
 0x4bb   : > { %6117 = vmatprep.subr.bf16.mxu1 %v8481_v36 }
 0x4c1   : > { %6087 = vmatpush1.bf16.xpose.msra.mxu0 %v8495_v60 }
 0x4c2   : > { %6119 = vmatpush1.bf16.xpose.msra.mxu1 %v8497_v4  ;;  %6089 = vmatprep.subr.bf16.mxu0 %v8499_v32 }
 0x4c3   : > { %6121 = vmatprep.subr.bf16.mxu1 %v8501_v20 }
 0x4c9   : > { %6091 = vmatpush1.bf16.xpose.msra.mxu0 %v6090_v61 }
 0x4ca   : > { %6123 = vmatpush1.bf16.xpose.msra.mxu1 %v6122_v18  ;;  %6093 = vmatprep.subr.bf16.mxu0 %v6092_v9 }
 0x4cb   : > { %6125 = vmatprep.subr.bf16.mxu1 %v6124_v54 }
 0x4d1   : > { %6095 = vmatpush1.bf16.xpose.msra.mxu0 %v6094_v27 }
 0x4d2   : > { %6127 = vmatpush1.bf16.xpose.msra.mxu1 %v6126_v28  ;;  %6129 = vmatprep.subr.bf16.mxu0 %v8374_v63 }
 0x4d3   : > { %6161 = vmatprep.subr.bf16.mxu1 %v8376_v17 }
 0x4d8   : > { %3441 = vmatmul.mubr.f32.vlgmr.msra.gmra.mrb[36].mxu0 %v3368_v29  ;;  %v5012_v29 = vld [vmem:[%s6788_s8 + $0x10c0] sm:$0xff] }
 0x4d9   : > { %3511 = vmatmul.mubr.f32.vlgmr.msra.gmra.mrb[36].mxu1 %v3370_v37  ;;  %6131 = vmatpush1.bf16.xpose.msra.mxu0 %v8386_v19  ;;  %v4993_v19 = vld [vmem:[%s6788_s8 + $0x1028] sm:$0xff]  ;;  %v5016_v37 = vld [vmem:[%s6788_s8 + $0x10e0] sm:$0xff] }
 0x4da   : > { %3589 = vmatprep.mubr.f32.mxu0 %v3518_v14  ;;  %6163 = vmatpush1.bf16.xpose.msra.mxu1 %v8391_v24  ;;  %v4991_v24 = vld [vmem:[%s6788_s8 + $0x1018] sm:$0xff]  ;;  %v5014_v14 = vld [vmem:[%s6788_s8 + $0x10d0] sm:$0xff] }
 0x4db   : > { %3659 = vmatprep.mubr.f32.mxu1 %v3520_v52  ;;  %6133 = vmatprep.subr.bf16.mxu0 %v8394_v44  ;;  %v4995_v44 = vld [vmem:[%s6788_s8 + $0x1038] sm:$0xff] }
 0x4dc   : > { %6165 = vmatprep.subr.bf16.mxu1 %v8397_v59 }
 0x4e1   : > { %6135 = vmatpush1.bf16.xpose.msra.mxu0 %v8412_v49  ;;  %v8558_v49 = vpack.c.bf16 %v4995_v44, %v4991_v24 }
 0x4e2   : > { %6167 = vmatpush1.bf16.xpose.msra.mxu1 %v8414_v25  ;;  %6137 = vmatprep.subr.bf16.mxu0 %v8416_v53  ;;  %v9090_v25 = vld [vmem:[#allocation19_spill] sm:$0xff] }
 0x4e3   : > { %6169 = vmatprep.subr.bf16.mxu1 %v8418_v0  ;;  %v9091_v53 = vld [vmem:[#allocation15_spill] sm:$0xff] }
 0x4e4   : > { %v453_v0 = vadd.f32 %v9091_v53, %v9090_v25  ;;  %v8642_v53 = vpack.c.bf16 %v5016_v37, %v5012_v29  ;;  %v5045_v29 = vld [vmem:[%s6788_s8 + $0x11c8] sm:$0xff] }
 0x4e5   : > { %v5049_v37 = vld [vmem:[%s6788_s8 + $0x11e8] sm:$0xff] }
 0x4e6   : > { %vm537_vm10 = vcmp.gt.f32.partialorder %v453_v0, 0.0 }
 0x4e9   : > { %6139 = vmatpush1.bf16.xpose.msra.mxu0 %v8432_v55  ;;  %v9092_v55 = vld [vmem:[#allocation16_spill] sm:$0xff] }
 0x4ea   : > { %6171 = vmatpush1.bf16.xpose.msra.mxu1 %v8434_v30  ;;  %6141 = vmatprep.subr.bf16.mxu0 %v8436_v51  ;;  %v530_v30 = vadd.f32 %v9092_v55, %v9090_v25  ;;  %v4988_v51 = vld [vmem:[%s6788_s8 + $0x1000] sm:$0xff] }
 0x4eb   : > { %v2865_v45 = vpop.f32.mrb[30].mxu0  ;;  %6173 = vmatprep.subr.bf16.mxu1 %v8438_v43  ;;  %v4992_v43 = vld [vmem:[%s6788_s8 + $0x1020] sm:$0xff] }
 0x4ec   : > { %v2935_v58 = vpop.f32.mrb[30].mxu1  ;;  %v2867_v5 = vpop.f32.mrb[31].mxu0  ;;  %v547_v16 = vmul.f32 0.01, %v530_v30  ;;  %vm539_vm11 = vcmp.gt.f32.partialorder %v530_v30, 0.0 }
 0x4ed   : > { %v2936_v56 = vadd.f32 %v2935_v58, %v2865_v45  ;;  %v2937_v63 = vpop.f32.mrb[31].mxu1  ;;  %v5018_v45 = vld [vmem:[%s6788_s8 + $0x10f0] sm:$0xff]  ;;  %v5021_v58 = vld [vmem:[%s6788_s8 + $0x1108] sm:$0xff] }
 0x4ee   : > { %v8589_v40 = vsel %vm539_vm11, %v530_v30, %v547_v16  ;;  %v5025_v5 = vld [vmem:[%s6788_s8 + $0x1128] sm:$0xff] }
 0x4ef   : > { %v8538_v17 = vadd.f32 %v2936_v56, %v8356_v11  ;;  %v4989_v11 = vld [vmem:[%s6788_s8 + $0x1008] sm:$0xff]  ;;  %v8646_v55 = vpack.c.bf16 %v5025_v5, %v5021_v58  ;;  %v8709_v5 = vpack.c.bf16 %v5049_v37, %v5045_v29  ;;  %v5062_v29 = vld [vmem:[%s6788_s8 + $0x1250] sm:$0xff] }
 0x4f0   : > { %v8556_v59 = vpack.c.bf16 %v4993_v19, %v4989_v11  ;;  %v5023_v11 = vld [vmem:[%s6788_s8 + $0x1118] sm:$0xff]  ;;  %v5066_v37 = vld [vmem:[%s6788_s8 + $0x1270] sm:$0xff] }
 0x4f1   : > { %6143 = vmatpush1.bf16.xpose.msra.mxu0 %v8452_v38  ;;  %v4990_v38 = vld [vmem:[%s6788_s8 + $0x1010] sm:$0xff]  ;;  %v5027_v19 = vld [vmem:[%s6788_s8 + $0x1138] sm:$0xff] }
 0x4f2   : > { %6175 = vmatpush1.bf16.xpose.msra.mxu1 %v8454_v62  ;;  %6145 = vmatprep.subr.bf16.mxu0 %v8456_v6  ;;  %v4994_v62 = vld [vmem:[%s6788_s8 + $0x1030] sm:$0xff]  ;;  %v4997_v6 = vld [vmem:[%s6788_s8 + $0x1048] sm:$0xff] }
 0x4f3   : > { %6177 = vmatprep.subr.bf16.mxu1 %v8461_v21  ;;  %v5001_v21 = vld [vmem:[%s6788_s8 + $0x1068] sm:$0xff]  ;;  %v8577_v13 = vpack.c.bf16 %v4994_v62, %v4990_v38  ;;  %v5024_v38 = vld [vmem:[%s6788_s8 + $0x1120] sm:$0xff]  ;;  %v5022_v62 = vld [vmem:[%s6788_s8 + $0x1110] sm:$0xff] }
 0x4f4   : > { %v8580_v48 = vpack.c.bf16 %v5001_v21, %v4997_v6  ;;  %v5026_v6 = vld [vmem:[%s6788_s8 + $0x1130] sm:$0xff]  ;;  %v5033_v21 = vld [vmem:[%s6788_s8 + $0x1168] sm:$0xff] }
 0x4f5   : > { %v8667_v16 = vpack.c.bf16 %v5026_v6, %v5022_v62  ;;  %v9094_v6 = vld [vmem:[#allocation13_spill] sm:$0xff] }
 0x4f9   : > { %6147 = vmatpush1.bf16.xpose.msra.mxu0 %v8475_v1  ;;  %v545_v1 = vmul.f32 0.01, %v453_v0 }
 0x4fa   : > { %6179 = vmatpush1.bf16.xpose.msra.mxu1 %v8477_v57  ;;  %6149 = vmatprep.subr.bf16.mxu0 %v8479_v35  ;;  %v8572_v57 = vpack.c.bf16 %v4992_v43, %v4988_v51  ;;  %v4999_v35 = vld [vmem:[%s6788_s8 + $0x1058] sm:$0xff]  ;;  %v8651_v51 = vpack.c.bf16 %v5027_v19, %v5023_v11  ;;  %v5020_v43 = vld [vmem:[%s6788_s8 + $0x1100] sm:$0xff]  ;;  %v5046_v19 = vld [vmem:[%s6788_s8 + $0x11d0] sm:$0xff] }
 0x4fb   : > { %6181 = vmatprep.subr.bf16.mxu1 %v8481_v36  ;;  %v5003_v36 = vld [vmem:[%s6788_s8 + $0x1078] sm:$0xff]  ;;  %v8585_v39 = vsel %vm537_vm10, %v453_v0, %v545_v1  ;;  %v8644_v0 = vpack.c.bf16 %v5018_v45, %v5014_v14  ;;  %v5048_v11 = vld [vmem:[%s6788_s8 + $0x11e0] sm:$0xff] }
 0x4fc   : > { %v8582_v8 = vpack.c.bf16 %v5003_v36, %v4999_v35  ;;  %v5031_v1 = vld [vmem:[%s6788_s8 + $0x1158] sm:$0xff]  ;;  %v8665_v36 = vpack.c.bf16 %v5024_v38, %v5020_v43  ;;  %v9093_v38 = vld [vmem:[#allocation12_spill] sm:$0xff] }
 0x4fd   : > { %v5035_v35 = vld [vmem:[%s6788_s8 + $0x1178] sm:$0xff]  ;;  %v451_v62 = vadd.f32 %v9093_v38, %v9090_v25  ;;  %v5081_v38 = vld [vmem:[%s6788_s8 + $0x12e8] sm:$0xff] }
 0x4fe   : > { %v5047_v14 = vld [vmem:[%s6788_s8 + $0x11d8] sm:$0xff] }
 0x4ff   : > { %vm536_vm12 = vcmp.gt.f32.partialorder %v451_v62, 0.0 }
 0x501   : > { %6151 = vmatpush1.bf16.xpose.msra.mxu0 %v8495_v60  ;;  %v4998_v60 = vld [vmem:[%s6788_s8 + $0x1050] sm:$0xff] }
 0x502   : > { %6183 = vmatpush1.bf16.xpose.msra.mxu1 %v8497_v4  ;;  %6153 = vmatprep.subr.bf16.mxu0 %v8499_v32  ;;  %v5002_v4 = vld [vmem:[%s6788_s8 + $0x1070] sm:$0xff]  ;;  %v5005_v32 = vld [vmem:[%s6788_s8 + $0x1088] sm:$0xff] }
 0x503   : > { %6185 = vmatprep.subr.bf16.mxu1 %v8501_v20  ;;  %v5009_v20 = vld [vmem:[%s6788_s8 + $0x10a8] sm:$0xff]  ;;  %v8604_v7 = vpack.c.bf16 %v5002_v4, %v4998_v60  ;;  %v5030_v60 = vld [vmem:[%s6788_s8 + $0x1150] sm:$0xff] }
 0x504   : > { %v8606_v26 = vpack.c.bf16 %v5009_v20, %v5005_v32  ;;  %v5034_v4 = vld [vmem:[%s6788_s8 + $0x1170] sm:$0xff]  ;;  %v5037_v32 = vld [vmem:[%s6788_s8 + $0x1188] sm:$0xff] }
 0x505   : > { %v5041_v20 = vld [vmem:[%s6788_s8 + $0x11a8] sm:$0xff]  ;;  %v8687_v50 = vpack.c.bf16 %v5034_v4, %v5030_v60  ;;  %v766_v60 = vmul.f32 0.01, %v9096_v22 }
 0x509   : > { %6155 = vmatpush1.bf16.xpose.msra.mxu0 %v6090_v61  ;;  %v5006_v61 = vld [vmem:[%s6788_s8 + $0x1090] sm:$0xff] }
 0x50a   : > { %6187 = vmatpush1.bf16.xpose.msra.mxu1 %v6122_v18  ;;  %6157 = vmatprep.subr.bf16.mxu0 %v6092_v9  ;;  %v5010_v18 = vld [vmem:[%s6788_s8 + $0x10b0] sm:$0xff]  ;;  %v5013_v9 = vld [vmem:[%s6788_s8 + $0x10c8] sm:$0xff] }
 0x50b   : > { %6189 = vmatprep.subr.bf16.mxu1 %v6124_v54  ;;  %v5017_v54 = vld [vmem:[%s6788_s8 + $0x10e8] sm:$0xff]  ;;  %v8624_v2 = vpack.c.bf16 %v5010_v18, %v5006_v61  ;;  %v8689_v61 = vpack.c.bf16 %v5041_v20, %v5037_v32  ;;  %v8691_v18 = vpack.c.bf16 %v5043_v10, %v5039_v47  ;;  %v5063_v47 = vld [vmem:[%s6788_s8 + $0x1258] sm:$0xff] }
 0x50c   : > { %v5067_v10 = vld [vmem:[%s6788_s8 + $0x1278] sm:$0xff] }
 0x511   : > { %6159 = vmatpush1.bf16.xpose.msra.mxu0 %v6094_v27  ;;  %v8626_v27 = vpack.c.bf16 %v5017_v54, %v5013_v9  ;;  %v5036_v9 = vld [vmem:[%s6788_s8 + $0x1180] sm:$0xff] }
 0x512   : > { %6191 = vmatpush1.bf16.xpose.msra.mxu1 %v6126_v28  ;;  %6193 = vmatprep.subr.bf16.mxu0 %v8556_v59  ;;  %v8628_v28 = vpack.c.bf16 %v5019_v46, %v5015_v15  ;;  %v5040_v54 = vld [vmem:[%s6788_s8 + $0x11a0] sm:$0xff]  ;;  %v5038_v15 = vld [vmem:[%s6788_s8 + $0x1190] sm:$0xff] }
 0x513   : > { %6225 = vmatprep.subr.bf16.mxu1 %v8558_v49  ;;  %v5042_v46 = vld [vmem:[%s6788_s8 + $0x11b0] sm:$0xff]  ;;  %v8705_v45 = vpack.c.bf16 %v5040_v54, %v5036_v9  ;;  %v8820_v54 = vpack.c.bf16 %v5067_v10, %v5063_v47  ;;  %v5097_v47 = vld [vmem:[%s6788_s8 + $0x1368] sm:$0xff]  ;;  %v5095_v10 = vld [vmem:[%s6788_s8 + $0x1358] sm:$0xff] }
 0x514   : > { %v8707_v58 = vpack.c.bf16 %v5042_v46, %v5038_v15  ;;  %v4085_v15 = vrot.slane %v8589_v40, 1  ;;  %v5064_v46 = vld [vmem:[%s6788_s8 + $0x1260] sm:$0xff] }
 0x518   : > { %3590 = vmatmul.mubr.f32.vlgmr.msra.gmra.mrb[38].mxu0 %v3517_v41 }
 0x519   : > { %3660 = vmatmul.mubr.f32.vlgmr.msra.gmra.mrb[38].mxu1 %v3519_v33  ;;  %6195 = vmatpush1.bf16.xpose.msra.mxu0 %v8572_v57  ;;  %v8671_v33 = vpack.c.bf16 %v5035_v35, %v5031_v1  ;;  %v9095_v35 = vld [vmem:[#allocation22_spill] sm:$0xff] }
 0x51a   : > { %3795 = vmatprep.mubr.f32.mxu0 %v8585_v39  ;;  %6227 = vmatpush1.bf16.xpose.msra.mxu1 %v8577_v13  ;;  %v764_v3 = vmul.f32 0.01, %v9095_v35  ;;  %vm756_vm14 = vcmp.gt.f32.partialorder %v9095_v35, 0.0 }
 0x51b   : > { %3865 = vmatprep.mubr.f32.mxu1 %v8589_v40  ;;  %6197 = vmatprep.subr.bf16.mxu0 %v8580_v48  ;;  %v5073_v40 = vld [vmem:[%s6788_s8 + $0x12a8] sm:$0xff] }
 0x51c   : > { %6229 = vmatprep.subr.bf16.mxu1 %v8582_v8 }
 0x521   : > { %6199 = vmatpush1.bf16.xpose.msra.mxu0 %v8602_v12 }
 0x522   : > { %6231 = vmatpush1.bf16.xpose.msra.mxu1 %v8604_v7  ;;  %6201 = vmatprep.subr.bf16.mxu0 %v8606_v26 }
 0x523   : > { %6233 = vmatprep.subr.bf16.mxu1 %v8608_v34 }
 0x529   : > { %6203 = vmatpush1.bf16.xpose.msra.mxu0 %v8622_v23 }
 0x52a   : > { %6235 = vmatpush1.bf16.xpose.msra.mxu1 %v8624_v2  ;;  %6205 = vmatprep.subr.bf16.mxu0 %v8626_v27 }
 0x52b   : > { %v3079_v52 = vpop.f32.mrb[32].mxu0  ;;  %6237 = vmatprep.subr.bf16.mxu1 %v8628_v28 }
 0x52c   : > { %v3149_v56 = vpop.f32.mrb[32].mxu1  ;;  %v3081_v63 = vpop.f32.mrb[33].mxu0 }
 0x52d   : > { %v3150_v24 = vadd.f32 %v3149_v56, %v3079_v52  ;;  %v3151_v44 = vpop.f32.mrb[33].mxu1  ;;  %v5051_v52 = vld [vmem:[%s6788_s8 + $0x11f8] sm:$0xff]  ;;  %v5044_v63 = vld [vmem:[%s6788_s8 + $0x11c0] sm:$0xff] }
 0x52e   : > { %v8711_v56 = vpack.c.bf16 %v5051_v52, %v5047_v14  ;;  %v8721_v44 = vpack.c.bf16 %v5048_v11, %v5044_v63  ;;  %v5069_v14 = vld [vmem:[%s6788_s8 + $0x1288] sm:$0xff]  ;;  %v5071_v52 = vld [vmem:[%s6788_s8 + $0x1298] sm:$0xff]  ;;  %v5068_v11 = vld [vmem:[%s6788_s8 + $0x1280] sm:$0xff] }
 0x52f   : > { %v8649_v30 = vadd.f32 %v3150_v24, %v8459_v42  ;;  %v5029_v42 = vld [vmem:[%s6788_s8 + $0x1148] sm:$0xff]  ;;  %v5050_v24 = vld [vmem:[%s6788_s8 + $0x11f0] sm:$0xff] }
 0x530   : > { %v8669_v41 = vpack.c.bf16 %v5033_v21, %v5029_v42  ;;  %v8723_v43 = vpack.c.bf16 %v5050_v24, %v5046_v19  ;;  %v528_v42 = vadd.f32 %v9094_v6, %v9090_v25  ;;  %v544_v21 = vmul.f32 0.01, %v451_v62  ;;  %v5072_v19 = vld [vmem:[%s6788_s8 + $0x12a0] sm:$0xff]  ;;  %v5070_v24 = vld [vmem:[%s6788_s8 + $0x1290] sm:$0xff]  ;;  %v5083_v6 = vld [vmem:[%s6788_s8 + $0x12f8] sm:$0xff] }
 0x531   : > { %6207 = vmatpush1.bf16.xpose.msra.mxu0 %v8642_v53 }
 0x532   : > { %6239 = vmatpush1.bf16.xpose.msra.mxu1 %v8644_v0  ;;  %6209 = vmatprep.subr.bf16.mxu0 %v8646_v55  ;;  %v546_v1 = vmul.f32 0.01, %v528_v42  ;;  %vm538_vm13 = vcmp.gt.f32.partialorder %v528_v42, 0.0  ;;  %v8736_v4 = vsel %vm536_vm12, %v451_v62, %v544_v21  ;;  %v5079_v62 = vld [vmem:[%s6788_s8 + $0x12d8] sm:$0xff] }
 0x533   : > { %6241 = vmatprep.subr.bf16.mxu1 %v8651_v51 }
 0x534   : > { %v8740_v25 = vsel %vm538_vm13, %v528_v42, %v546_v1  ;;  %v8856_v42 = vpack.c.bf16 %v5072_v19, %v5068_v11  ;;  %v5105_v11 = vld [vmem:[%s6788_s8 + $0x13a8] sm:$0xff]  ;;  %v5103_v19 = vld [vmem:[%s6788_s8 + $0x1398] sm:$0xff] }
 0x539   : > { %6211 = vmatpush1.bf16.xpose.msra.mxu0 %v8665_v36 }
 0x53a   : > { %6243 = vmatpush1.bf16.xpose.msra.mxu1 %v8667_v16  ;;  %6213 = vmatprep.subr.bf16.mxu0 %v8669_v41 }
 0x53b   : > { %6245 = vmatprep.subr.bf16.mxu1 %v8671_v33 }
 0x541   : > { %6215 = vmatpush1.bf16.xpose.msra.mxu0 %v8685_v31 }
 0x542   : > { %6247 = vmatpush1.bf16.xpose.msra.mxu1 %v8687_v50  ;;  %6217 = vmatprep.subr.bf16.mxu0 %v8689_v61 }
 0x543   : > { %6249 = vmatprep.subr.bf16.mxu1 %v8691_v18 }
 0x549   : > { %6219 = vmatpush1.bf16.xpose.msra.mxu0 %v8705_v45 }
 0x54a   : > { %6251 = vmatpush1.bf16.xpose.msra.mxu1 %v8707_v58  ;;  %6221 = vmatprep.subr.bf16.mxu0 %v8709_v5 }
 0x54b   : > { %6253 = vmatprep.subr.bf16.mxu1 %v8711_v56 }
 0x551   : > { %6223 = vmatpush1.bf16.xpose.msra.mxu0 %v8721_v44 }
 0x552   : > { %6255 = vmatpush1.bf16.xpose.msra.mxu1 %v8723_v43  ;;  %6257 = vmatprep.subr.bf16.mxu0 %v8556_v59  ;;  %v8745_v59 = vsel %vm756_vm14, %v9095_v35, %v764_v3  ;;  %v8862_v35 = vpack.c.bf16 %v5083_v6, %v5079_v62  ;;  %v5076_v3 = vld [vmem:[%s6788_s8 + $0x12c0] sm:$0xff] }
 0x553   : > { %6289 = vmatprep.subr.bf16.mxu1 %v8558_v49  ;;  %v8750_v49 = vsel %vm758_vm15, %v9096_v22, %v766_v60  ;;  %v5080_v22 = vld [vmem:[%s6788_s8 + $0x12e0] sm:$0xff]  ;;  %v5078_v60 = vld [vmem:[%s6788_s8 + $0x12d0] sm:$0xff] }
 0x554   : > { %v5100_v6 = vld [vmem:[%s6788_s8 + $0x1380] sm:$0xff] }
 0x558   : > { %3796 = vmatmul.mubr.f32.vlgmr.msra.gmra.mrb[40].mxu0 %v8736_v4 }
 0x559   : > { %3866 = vmatmul.mubr.f32.vlgmr.msra.gmra.mrb[40].mxu1 %v8740_v25  ;;  %6259 = vmatpush1.bf16.xpose.msra.mxu0 %v8572_v57 }
 0x55a   : > { %3936 = vmatprep.mubr.f32.mxu0 %v8745_v59  ;;  %6291 = vmatpush1.bf16.xpose.msra.mxu1 %v8577_v13 }
 0x55b   : > { %4006 = vmatprep.mubr.f32.mxu1 %v8750_v49  ;;  %6261 = vmatprep.subr.bf16.mxu0 %v8580_v48 }
 0x55c   : > { %6293 = vmatprep.subr.bf16.mxu1 %v8582_v8 }
 0x561   : > { %6263 = vmatpush1.bf16.xpose.msra.mxu0 %v8602_v12 }
 0x562   : > { %6295 = vmatpush1.bf16.xpose.msra.mxu1 %v8604_v7  ;;  %6265 = vmatprep.subr.bf16.mxu0 %v8606_v26  ;;  %v5057_v7 = vld [vmem:[%s6788_s8 + $0x1228] sm:$0xff]  ;;  %v5055_v26 = vld [vmem:[%s6788_s8 + $0x1218] sm:$0xff] }
 0x563   : > { %6297 = vmatprep.subr.bf16.mxu1 %v8608_v34  ;;  %v5059_v34 = vld [vmem:[%s6788_s8 + $0x1238] sm:$0xff] }
 0x569   : > { %6267 = vmatpush1.bf16.xpose.msra.mxu0 %v8622_v23 }
 0x56a   : > { %6299 = vmatpush1.bf16.xpose.msra.mxu1 %v8624_v2  ;;  %6269 = vmatprep.subr.bf16.mxu0 %v8626_v27  ;;  %v8788_v2 = vpack.c.bf16 %v5059_v34, %v5055_v26  ;;  %v5052_v27 = vld [vmem:[%s6788_s8 + $0x1200] sm:$0xff]  ;;  %v5091_v26 = vld [vmem:[%s6788_s8 + $0x1338] sm:$0xff] }
 0x56b   : > { %v3228_v57 = vpop.f32.mrb[34].mxu0  ;;  %6301 = vmatprep.subr.bf16.mxu1 %v8628_v28  ;;  %v5056_v28 = vld [vmem:[%s6788_s8 + $0x1220] sm:$0xff] }
 0x56c   : > { %v3298_v13 = vpop.f32.mrb[34].mxu1  ;;  %v3230_v48 = vpop.f32.mrb[35].mxu0  ;;  %v8804_v20 = vpack.c.bf16 %v5056_v28, %v5052_v27  ;;  %v8876_v28 = vpack.c.bf16 %v5080_v22, %v5076_v3  ;;  %v5104_v3 = vld [vmem:[%s6788_s8 + $0x13a0] sm:$0xff]  ;;  %v5102_v22 = vld [vmem:[%s6788_s8 + $0x1390] sm:$0xff] }
 0x56d   : > { %v3299_v8 = vadd.f32 %v3298_v13, %v3228_v57  ;;  %v3300_v32 = vpop.f32.mrb[35].mxu1  ;;  %v5082_v13 = vld [vmem:[%s6788_s8 + $0x12f0] sm:$0xff]  ;;  %v5085_v48 = vld [vmem:[%s6788_s8 + $0x1308] sm:$0xff] }
 0x56f   : > { %v8764_v12 = vadd.f32 %v3299_v8, %v8538_v17  ;;  %v5053_v17 = vld [vmem:[%s6788_s8 + $0x1208] sm:$0xff] }
 0x570   : > { %v8786_v23 = vpack.c.bf16 %v5057_v7, %v5053_v17  ;;  %v5089_v8 = vld [vmem:[%s6788_s8 + $0x1328] sm:$0xff]  ;;  %v5087_v7 = vld [vmem:[%s6788_s8 + $0x1318] sm:$0xff] }
 0x571   : > { %6271 = vmatpush1.bf16.xpose.msra.mxu0 %v8642_v53  ;;  %v9097_v53 = vld [vmem:[#allocation20_spill] sm:$0xff] }
 0x572   : > { %6303 = vmatpush1.bf16.xpose.msra.mxu1 %v8644_v0  ;;  %6273 = vmatprep.subr.bf16.mxu0 %v8646_v55  ;;  %v763_v0 = vmul.f32 0.01, %v9097_v53  ;;  %v5054_v55 = vld [vmem:[%s6788_s8 + $0x1210] sm:$0xff]  ;;  %vm755_vm0 = vcmp.gt.f32.partialorder %v9097_v53, 0.0 }
 0x573   : > { %6305 = vmatprep.subr.bf16.mxu1 %v8651_v51  ;;  %v5058_v51 = vld [vmem:[%s6788_s8 + $0x1230] sm:$0xff] }
 0x579   : > { %6275 = vmatpush1.bf16.xpose.msra.mxu0 %v8665_v36  ;;  %v9098_v36 = vld [vmem:[#allocation21_spill] sm:$0xff] }
 0x57a   : > { %6307 = vmatpush1.bf16.xpose.msra.mxu1 %v8667_v16  ;;  %6277 = vmatprep.subr.bf16.mxu0 %v8669_v41  ;;  %v765_v16 = vmul.f32 0.01, %v9098_v36  ;;  %v5061_v41 = vld [vmem:[%s6788_s8 + $0x1248] sm:$0xff]  ;;  %vm757_vm1 = vcmp.gt.f32.partialorder %v9098_v36, 0.0 }
 0x57b   : > { %6309 = vmatprep.subr.bf16.mxu1 %v8671_v33  ;;  %v5065_v33 = vld [vmem:[%s6788_s8 + $0x1268] sm:$0xff] }
 0x57c   : > { %v8818_v9 = vsel %vm757_vm1, %v9098_v36, %v765_v16  ;;  %v5084_v36 = vld [vmem:[%s6788_s8 + $0x1300] sm:$0xff] }
 0x57d   : > { %v5088_v16 = vld [vmem:[%s6788_s8 + $0x1320] sm:$0xff] }
 0x581   : > { %6279 = vmatpush1.bf16.xpose.msra.mxu0 %v8685_v31  ;;  %v8808_v31 = vpack.c.bf16 %v5058_v51, %v5054_v55  ;;  %v8885_v51 = vpack.c.bf16 %v5091_v26, %v5087_v7 }
 0x582   : > { %6311 = vmatpush1.bf16.xpose.msra.mxu1 %v8687_v50  ;;  %6281 = vmatprep.subr.bf16.mxu0 %v8689_v61  ;;  %v8811_v50 = vsel %vm755_vm0, %v9097_v53, %v763_v0  ;;  %v8813_v61 = vpack.c.bf16 %v5065_v33, %v5061_v41  ;;  %v8878_v53 = vpack.c.bf16 %v5082_v13, %v5078_v60  ;;  %v5086_v41 = vld [vmem:[%s6788_s8 + $0x1310] sm:$0xff]  ;;  %v5113_v13 = vld [vmem:[%s6788_s8 + $0x13e8] sm:$0xff] }
 0x583   : > { %6313 = vmatprep.subr.bf16.mxu1 %v8691_v18  ;;  %v4083_v18 = vrot.slane %v8585_v39, 1  ;;  %v5060_v39 = vld [vmem:[%s6788_s8 + $0x1240] sm:$0xff]  ;;  %v8880_v0 = vpack.c.bf16 %v5089_v8, %v5085_v48  ;;  %v5090_v33 = vld [vmem:[%s6788_s8 + $0x1330] sm:$0xff]  ;;  %v5111_v48 = vld [vmem:[%s6788_s8 + $0x13d8] sm:$0xff] }
 0x584   : > { %v5106_v60 = vld [vmem:[%s6788_s8 + $0x13b0] sm:$0xff]  ;;  %v5115_v8 = vld [vmem:[%s6788_s8 + $0x13f8] sm:$0xff] }
 0x585   : > { %v6380_v26 = vpack.c.bf16 %v5115_v8, %v5111_v48 }
 0x589   : > { %6283 = vmatpush1.bf16.xpose.msra.mxu0 %v8705_v45  ;;  %v5075_v45 = vld [vmem:[%s6788_s8 + $0x12b8] sm:$0xff] }
 0x58a   : > { %6315 = vmatpush1.bf16.xpose.msra.mxu1 %v8707_v58  ;;  %6285 = vmatprep.subr.bf16.mxu0 %v8709_v5  ;;  %v8836_v58 = vpack.c.bf16 %v5064_v46, %v5060_v39  ;;  %v8838_v5 = vpack.c.bf16 %v5066_v37, %v5062_v29  ;;  %v8842_v63 = vpack.c.bf16 %v5075_v45, %v5071_v52  ;;  %v5092_v37 = vld [vmem:[%s6788_s8 + $0x1340] sm:$0xff]  ;;  %v5098_v52 = vld [vmem:[%s6788_s8 + $0x1370] sm:$0xff]  ;;  %v5101_v45 = vld [vmem:[%s6788_s8 + $0x1388] sm:$0xff] }
 0x58b   : > { %6317 = vmatprep.subr.bf16.mxu1 %v8711_v56  ;;  %v8840_v56 = vpack.c.bf16 %v5073_v40, %v5069_v14  ;;  %v8901_v39 = vpack.c.bf16 %v5090_v33, %v5086_v41  ;;  %v5096_v14 = vld [vmem:[%s6788_s8 + $0x1360] sm:$0xff]  ;;  %v5094_v40 = vld [vmem:[%s6788_s8 + $0x1350] sm:$0xff] }
 0x591   : > { %6287 = vmatpush1.bf16.xpose.msra.mxu0 %v8721_v44  ;;  %v5074_v44 = vld [vmem:[%s6788_s8 + $0x12b0] sm:$0xff] }
 0x592   : > { %6319 = vmatpush1.bf16.xpose.msra.mxu1 %v8723_v43  ;;  %6321 = vmatprep.subr.bf16.mxu0 %v8786_v23  ;;  %v5077_v43 = vld [vmem:[%s6788_s8 + $0x12c8] sm:$0xff]  ;;  %v8858_v21 = vpack.c.bf16 %v5074_v44, %v5070_v24  ;;  %v5107_v24 = vld [vmem:[%s6788_s8 + $0x13b8] sm:$0xff]  ;;  %v8919_v44 = vpack.c.bf16 %v5096_v14, %v5092_v37 }
 0x593   : > { %6353 = vmatprep.subr.bf16.mxu1 %v8788_v2  ;;  %v8860_v1 = vpack.c.bf16 %v5081_v38, %v5077_v43  ;;  %v8921_v43 = vpack.c.bf16 %v5098_v52, %v5094_v40  ;;  %v8923_v38 = vpack.c.bf16 %v5105_v11, %v5101_v45  ;;  %v8925_v62 = vpack.c.bf16 %v5107_v24, %v5103_v19 }
 0x598   : > { %3937 = vmatmul.mubr.f32.vlgmr.msra.gmra.mrb[42].mxu0 %v8811_v50 }
 0x599   : > { %4007 = vmatmul.mubr.f32.vlgmr.msra.gmra.mrb[42].mxu1 %v8818_v9  ;;  %6323 = vmatpush1.bf16.xpose.msra.mxu0 %v8804_v20 }
 0x59a   : > { %4154 = vmatprep.mubr.f32.mxu0 %v4083_v18  ;;  %6355 = vmatpush1.bf16.xpose.msra.mxu1 %v8808_v31  ;;  %v5099_v18 = vld [vmem:[%s6788_s8 + $0x1378] sm:$0xff] }
 0x59b   : > { %4224 = vmatprep.mubr.f32.mxu1 %v4085_v15  ;;  %6325 = vmatprep.subr.bf16.mxu0 %v8813_v61  ;;  %v8899_v15 = vpack.c.bf16 %v5088_v16, %v5084_v36  ;;  %v8905_v29 = vpack.c.bf16 %v5099_v18, %v5095_v10  ;;  %v5110_v36 = vld [vmem:[%s6788_s8 + $0x13d0] sm:$0xff]  ;;  %v4236_v10 = vrot.slane %v8745_v59, 1  ;;  %v4238_v18 = vrot.slane %v8750_v49, 1 }
 0x59c   : > { %6357 = vmatprep.subr.bf16.mxu1 %v8820_v54  ;;  %v5114_v16 = vld [vmem:[%s6788_s8 + $0x13f0] sm:$0xff] }
 0x59d   : > { %v6382_v33 = vpack.c.bf16 %v5114_v16, %v5110_v36 }
 0x5a1   : > { %6327 = vmatpush1.bf16.xpose.msra.mxu0 %v8836_v58 }
 0x5a2   : > { %6359 = vmatpush1.bf16.xpose.msra.mxu1 %v8838_v5  ;;  %6329 = vmatprep.subr.bf16.mxu0 %v8840_v56 }
 0x5a3   : > { %6361 = vmatprep.subr.bf16.mxu1 %v8842_v63 }
 0x5a9   : > { %6331 = vmatpush1.bf16.xpose.msra.mxu0 %v8856_v42 }
 0x5aa   : > { %6363 = vmatpush1.bf16.xpose.msra.mxu1 %v8858_v21  ;;  %6333 = vmatprep.subr.bf16.mxu0 %v8860_v1 }
 0x5ab   : > { %v3442_v57 = vpop.f32.mrb[36].mxu0  ;;  %6365 = vmatprep.subr.bf16.mxu1 %v8862_v35 }
 0x5ac   : > { %v3512_v32 = vpop.f32.mrb[36].mxu1  ;;  %v3444_v17 = vpop.f32.mrb[37].mxu0 }
 0x5ad   : > { %v3513_v34 = vadd.f32 %v3512_v32, %v3442_v57  ;;  %v3514_v27 = vpop.f32.mrb[37].mxu1  ;;  %v5109_v57 = vld [vmem:[%s6788_s8 + $0x13c8] sm:$0xff]  ;;  %v6346_v32 = vpack.c.bf16 %v5104_v3, %v5100_v6  ;;  %v6378_v17 = vpack.c.bf16 %v5106_v60, %v5102_v22 }
 0x5ae   : > { %v6348_v7 = vpack.c.bf16 %v5113_v13, %v5109_v57  ;;  %v5112_v27 = vld [vmem:[%s6788_s8 + $0x13e0] sm:$0xff] }
 0x5af   : > { %v8883_v55 = vadd.f32 %v3513_v34, %v8649_v30  ;;  %v5093_v30 = vld [vmem:[%s6788_s8 + $0x1348] sm:$0xff]  ;;  %v5108_v34 = vld [vmem:[%s6788_s8 + $0x13c0] sm:$0xff]  ;;  %s4495_s8 = sshll.u32 %s9104_s22, 1 }
 0x5b0   : > { %v8903_v46 = vpack.c.bf16 %v5097_v47, %v5093_v30  ;;  %v6350_v41 = vpack.c.bf16 %v5112_v27, %v5108_v34  ;;  %v4082_v30 = vrot.slane %v8736_v4, 1  ;;  %v4084_v47 = vrot.slane %v8740_v25, 1  ;;  %s315_s30 = scalar_lea.vmem %s9002_s5, %s4495_s8 }
 0x5b1   : > { %6335 = vmatpush1.bf16.xpose.msra.mxu0 %v8876_v28 }
 0x5b2   : > { %6367 = vmatpush1.bf16.xpose.msra.mxu1 %v8878_v53  ;;  %6337 = vmatprep.subr.bf16.mxu0 %v8880_v0 }
 0x5b3   : > { %6369 = vmatprep.subr.bf16.mxu1 %v8885_v51 }
 0x5b9   : > { %6339 = vmatpush1.bf16.xpose.msra.mxu0 %v8899_v15 }
 0x5ba   : > { %6371 = vmatpush1.bf16.xpose.msra.mxu1 %v8901_v39  ;;  %6341 = vmatprep.subr.bf16.mxu0 %v8903_v46 }
 0x5bb   : > { %6373 = vmatprep.subr.bf16.mxu1 %v8905_v29 }
 0x5c1   : > { %6343 = vmatpush1.bf16.xpose.msra.mxu0 %v8919_v44 }
 0x5c2   : > { %6375 = vmatpush1.bf16.xpose.msra.mxu1 %v8921_v43  ;;  %6345 = vmatprep.subr.bf16.mxu0 %v8923_v38 }
 0x5c3   : > { %6377 = vmatprep.subr.bf16.mxu1 %v8925_v62 }
 0x5c9   : > { %6347 = vmatpush1.bf16.xpose.msra.mxu0 %v6346_v32 }
 0x5ca   : > { %6379 = vmatpush1.bf16.xpose.msra.mxu1 %v6378_v17  ;;  %6349 = vmatprep.subr.bf16.mxu0 %v6348_v7 }
 0x5cb   : > { %6381 = vmatprep.subr.bf16.mxu1 %v6380_v26 }
 0x5d1   : > { %6351 = vmatpush1.bf16.xpose.msra.mxu0 %v6350_v41 }
 0x5d2   : > { %6383 = vmatpush1.bf16.xpose.msra.mxu1 %v6382_v33  ;;  %6385 = vmatprep.subr.bf16.mxu0 %v8786_v23 }
 0x5d3   : > { %6417 = vmatprep.subr.bf16.mxu1 %v8788_v2 }
 0x5d8   : > { %4155 = vmatmul.mubr.f32.vlgmr.msra.gmra.mrb[44].mxu0 %v4082_v30 }
 0x5d9   : > { %4225 = vmatmul.mubr.f32.vlgmr.msra.gmra.mrb[44].mxu1 %v4084_v47  ;;  %6387 = vmatpush1.bf16.xpose.msra.mxu0 %v8804_v20  ;;  %v4237_v20 = vrot.slane %v8818_v9, 1 }
 0x5da   : > { %4307 = vmatprep.mubr.f32.mxu0 %v4236_v10  ;;  %6419 = vmatpush1.bf16.xpose.msra.mxu1 %v8808_v31 }
 0x5db   : > { %4377 = vmatprep.mubr.f32.mxu1 %v4238_v18  ;;  %6389 = vmatprep.subr.bf16.mxu0 %v8813_v61 }
 0x5dc   : > { %6421 = vmatprep.subr.bf16.mxu1 %v8820_v54 }
 0x5e1   : > { %6391 = vmatpush1.bf16.xpose.msra.mxu0 %v8836_v58 }
 0x5e2   : > { %6423 = vmatpush1.bf16.xpose.msra.mxu1 %v8838_v5  ;;  %6393 = vmatprep.subr.bf16.mxu0 %v8840_v56 }
 0x5e3   : > { %6425 = vmatprep.subr.bf16.mxu1 %v8842_v63 }
 0x5e9   : > { %6395 = vmatpush1.bf16.xpose.msra.mxu0 %v8856_v42 }
 0x5ea   : > { %6427 = vmatpush1.bf16.xpose.msra.mxu1 %v8858_v21  ;;  %6397 = vmatprep.subr.bf16.mxu0 %v8860_v1 }
 0x5eb   : > { %v3591_v4 = vpop.f32.mrb[38].mxu0  ;;  %6429 = vmatprep.subr.bf16.mxu1 %v8862_v35 }
 0x5ec   : > { %v3661_v25 = vpop.f32.mrb[38].mxu1  ;;  %v3593_v59 = vpop.f32.mrb[39].mxu0 }
 0x5ed   : > { %v3662_v49 = vadd.f32 %v3661_v25, %v3591_v4  ;;  %v3663_v23 = vpop.f32.mrb[39].mxu1 }
 0x5ef   : > { %v3665_v2 = vadd.f32 %v3662_v49, %v8764_v12  ;;  %v4235_v12 = vrot.slane %v8811_v50, 1 }
 0x5f1   : > { %6399 = vmatpush1.bf16.xpose.msra.mxu0 %v8876_v28 }
 0x5f2   : > { %6431 = vmatpush1.bf16.xpose.msra.mxu1 %v8878_v53  ;;  %6401 = vmatprep.subr.bf16.mxu0 %v8880_v0 }
 0x5f3   : > { %6433 = vmatprep.subr.bf16.mxu1 %v8885_v51 }
 0x5f9   : > { %6403 = vmatpush1.bf16.xpose.msra.mxu0 %v8899_v15  ;;  %v4384_v15 = vld [vmem:[%s281_s21] sm:$0x1] }
 0x5fa   : > { %6435 = vmatpush1.bf16.xpose.msra.mxu1 %v8901_v39  ;;  %6405 = vmatprep.subr.bf16.mxu0 %v8903_v46 }
 0x5fb   : > { %6437 = vmatprep.subr.bf16.mxu1 %v8905_v29 }
 0x601   : > { %6407 = vmatpush1.bf16.xpose.msra.mxu0 %v8919_v44 }
 0x602   : > { %6439 = vmatpush1.bf16.xpose.msra.mxu1 %v8921_v43  ;;  %6409 = vmatprep.subr.bf16.mxu0 %v8923_v38 }
 0x603   : > { %6441 = vmatprep.subr.bf16.mxu1 %v8925_v62 }
 0x609   : > { %6411 = vmatpush1.bf16.xpose.msra.mxu0 %v6346_v32 }
 0x60a   : > { %6443 = vmatpush1.bf16.xpose.msra.mxu1 %v6378_v17  ;;  %6413 = vmatprep.subr.bf16.mxu0 %v6348_v7 }
 0x60b   : > { %6445 = vmatprep.subr.bf16.mxu1 %v6380_v26 }
 0x611   : > { %6415 = vmatpush1.bf16.xpose.msra.mxu0 %v6350_v41 }
 0x612   : > { %6447 = vmatpush1.bf16.xpose.msra.mxu1 %v6382_v33 }
 0x618   : > { %4308 = vmatmul.mubr.f32.vlgmr.msra.gmra.mrb[46].mxu0 %v4235_v12 }
 0x619   : > { %4378 = vmatmul.mubr.f32.vlgmr.msra.gmra.mrb[46].mxu1 %v4237_v20 }
 0x62b   : > { %v3797_v31 = vpop.f32.mrb[40].mxu0 }
 0x62c   : > { %v3867_v61 = vpop.f32.mrb[40].mxu1  ;;  %v3799_v54 = vpop.f32.mrb[41].mxu0 }
 0x62d   : > { %v3868_v58 = vadd.f32 %v3867_v61, %v3797_v31  ;;  %v3869_v5 = vpop.f32.mrb[41].mxu1 }
 0x62f   : > { %v3871_v56 = vadd.f32 %v3868_v58, %v8883_v55 }
 0x66b   : > { %v3938_v63 = vpop.f32.mrb[42].mxu0 }
 0x66c   : > { %v4008_v42 = vpop.f32.mrb[42].mxu1  ;;  %v3940_v21 = vpop.f32.mrb[43].mxu0 }
 0x66d   : > { %v4009_v1 = vadd.f32 %v4008_v42, %v3938_v63  ;;  %v4010_v35 = vpop.f32.mrb[43].mxu1 }
 0x66f   : > { %v4012_v50 = vadd.f32 %v4009_v1, %v3665_v2 }
 0x6ab   : > { %v4156_v9 = vpop.f32.mrb[44].mxu0 }
 0x6ac   : > { %v4226_v28 = vpop.f32.mrb[44].mxu1  ;;  %v4158_v53 = vpop.f32.mrb[45].mxu0 }
 0x6ad   : > { %v4227_v0 = vadd.f32 %v4226_v28, %v4156_v9  ;;  %v4228_v51 = vpop.f32.mrb[45].mxu1 }
 0x6af   : > { %v4230_v39 = vadd.f32 %v4227_v0, %v3871_v56 }
 0x6b1   : > { %v4385_v55 = vadd.f32 %v4384_v15, %v4230_v39 }
 0x6b3   : > { %4386 = vst [vmem:[%s315_s30] sm:$0x1] %v4385_v55 }
 0x6eb   : > { %v4309_v46 = vpop.f32.mrb[46].mxu0 }
 0x6ec   : > { %v4379_v29 = vpop.f32.mrb[46].mxu1  ;;  %v4311_v37 = vpop.f32.mrb[47].mxu0 }
 0x6ed   : > { %v4380_v14 = vadd.f32 %v4379_v29, %v4309_v46  ;;  %v4381_v40 = vpop.f32.mrb[47].mxu1 }
 0x6ef   : > { %v4383_v52 = vadd.f32 %v4380_v14, %v4012_v50 }
 0x6f1   : > { %v4387_v45 = vadd.f32 %v4384_v15, %v4383_v52 }
 0x6f3   : > { %4388 = vst [vmem:[%s315_s30 + $0x1] sm:$0x1] %v4387_v45 }
 0x6f4 PF: > { %p16_p2 = scmp.ge.s32.totalorder %s6675_s23, 10   ;;  %s9099_s18 = smov %s6601_s19 }
 0x6f5   : > { %s9100_s19 = smov %s6605_s20  ;;  %s9101_s20 = smov %s6685_s26 }
 0x6f6   : > { %s9102_s21 = smov %s6675_s23  ;;  %18 = sbr.rel (!%p16_p2) target bundleno = 4 (0x4), region = 111 }
 0x6fd   :  { %4408 = vsyncpa [#allocation3], 1 }
 0x6fe   :  { %4410 = vsyncpa [#allocation3 + $0x1], 1 }
 0x6ff   :  { %4411 = vsyncpa [#allocation5], 1 }
 0x700   :  { %4413 = vsyncpa [#allocation5 + $0x1], 1 }

</bundles_post_ra>
